<compile_context>
chip_gen: v7x
topology: tpu7x:2x2x1
jax: 0.10.0
libtpu: 0.0.40
codegen_flags: <defaults>
</compile_context>

<pallas_src>
import functools

import jax
import jax.numpy as jnp
from jax.experimental import pallas as pl
from jax.experimental.pallas import tpu as pltpu


def _round_up(x, m):
    return (x + m - 1) // m * m


_TH_MAX = 8                      # output rows per grid step (static unroll)
_VMEM_LIMIT = 32 * 1024 * 1024   # > v5e 16 MiB scoped default, < v7x 64 MiB


def _s2d_conv_kernel(s_main_ref, s_halo_ref, w_ref, b_ref, o_ref, *,
                     th, apply_leaky):
    """One grid step: `th` output rows of a 4x4 / stride-2 conv, expressed as
    a 2x2 / stride-1 conv over the space-to-depth input (channels = 4*Cin).

    s_main_ref: (1, th, Wp2, C4)  s2d rows [i*th, i*th + th)
    s_halo_ref: (1, 1,  Wp2, C4)  s2d row  i*th + th   (the +1 halo row)
    w_ref:      (4, C4, Op)       W2[dh*2 + dw]  (bf16, VMEM-resident)
    b_ref:      (1, Op)           f32 bias
    o_ref:      (1, th, Wo, Op)   output rows (Wo = Wp2 - 1)
    """
    wp2 = s_main_ref.shape[2]
    wo = wp2 - 1

    # Weights / bias have constant index_maps -> fetched once; hoist the loads
    # out of the row loop so any materialization happens once per call.
    w00 = w_ref[0]
    w01 = w_ref[1]
    w10 = w_ref[2]
    w11 = w_ref[3]
    bias = b_ref[...]                                   # (1, Op) f32

    for r in range(th):                                 # static unroll, th <= 8
        top = s_main_ref[0, r]                          # (Wp2, C4)  dh = 0
        if r + 1 < th:                                  # dh = 1 row
            bot = s_main_ref[0, r + 1]
        else:
            bot = s_halo_ref[0, 0]
        # Four shifted windows x resident weights, f32 MXU accumulation.
        acc = jnp.dot(top[:wo, :], w00, preferred_element_type=jnp.float32)
        acc += jnp.dot(top[1:, :], w01, preferred_element_type=jnp.float32)
        acc += jnp.dot(bot[:wo, :], w10, preferred_element_type=jnp.float32)
        acc += jnp.dot(bot[1:, :], w11, preferred_element_type=jnp.float32)
        out = acc + bias                                # f32 epilogue (v5e-safe)
        if apply_leaky:
            out = jnp.where(out >= 0.0, out, 0.2 * out)  # LeakyReLU(0.2)
        o_ref[0, r] = out.astype(o_ref.dtype)


def conv4x4_s2_p1_nhwc(x_nhwc, w, b, *, apply_leaky, out_dtype=jnp.bfloat16):
    """Conv2d(kernel=4, stride=2, padding=1) [+ LeakyReLU(0.2)], NHWC.

    x_nhwc: (N, H, W, Cx) activations; only the first Cin = w.shape[1]
            channels are real (extra channels are carried lane padding).
    w:      PyTorch layout (O, Cin, 4, 4);  b: (O,).
    Returns (N, Ho, Wo, Op) with Op = round_up(O, 128); channels >= O are 0.
    """
    O, Cin, KH, KW = w.shape
    assert (KH, KW) == (4, 4)
    N, H, W_, Cx = x_nhwc.shape
    assert Cx >= Cin
    assert H % 2 == 0 and W_ % 2 == 0, "spatial dims must be even"
    Ho, Wo = H // 2, W_ // 2
    Hp2, Wp2 = Ho + 1, Wo + 1
    C4 = 4 * Cin
    Op = _round_up(O, 128)

    # ---- space-to-depth: ONE fused pass (slice real channels, cast bf16,
    # spatial zero-pad of 1, fold the 2x2 stride phase into channels). ----
    xp = jnp.pad(x_nhwc[..., :Cin].astype(jnp.bfloat16),
                 ((0, 0), (1, 1), (1, 1), (0, 0)))
    s2d = xp.reshape(N, Hp2, 2, Wp2, 2, Cin)
    s2d = jnp.transpose(s2d, (0, 1, 3, 2, 4, 5)).reshape(N, Hp2, Wp2, C4)

    # ---- weights: (O, Cin, 4, 4) -> W2[(dh,dw), (ph,pw,cin), O], O padded.
    w4 = w.reshape(O, Cin, 2, 2, 2, 2)                     # (O,C,dh,ph,dw,pw)
    w2 = jnp.transpose(w4, (2, 4, 3, 5, 1, 0)).reshape(4, C4, O)
    w2 = jnp.pad(w2, ((0, 0), (0, 0), (0, Op - O))).astype(jnp.bfloat16)
    b2 = jnp.pad(b.astype(jnp.float32), (0, Op - O)).reshape(1, Op)

    # ---- row-block tiling: th output rows per grid step, th | Ho.
    th = min(_TH_MAX, Ho)
    while Ho % th:
        th -= 1
    grid = (N, Ho // th)

    flops = 2 * N * Ho * Wo * C4 * Op
    bytes_accessed = (s2d.size * 2 + w2.size * 2 + b2.size * 4
                      + N * Ho * Wo * Op * jnp.dtype(out_dtype).itemsize)

    kernel = functools.partial(_s2d_conv_kernel, th=th, apply_leaky=apply_leaky)
    out = pl.pallas_call(
        kernel,
        out_shape=jax.ShapeDtypeStruct((N, Ho, Wo, Op), out_dtype),
        grid_spec=pltpu.PrefetchScalarGridSpec(
            num_scalar_prefetch=0,
            grid=grid,
            in_specs=[
                # main row block: s2d rows [i*th, i*th + th)
                pl.BlockSpec((1, th, Wp2, C4), lambda n, i: (n, i, 0, 0)),
                # halo: single s2d row i*th + th (block size 1 along Hp2)
                pl.BlockSpec((1, 1, Wp2, C4),
                             lambda n, i: (n, (i + 1) * th, 0, 0)),
                # weights + bias: constant index_map -> VMEM-resident
                pl.BlockSpec((4, C4, Op), lambda n, i: (0, 0, 0)),
                pl.BlockSpec((1, Op), lambda n, i: (0, 0)),
            ],
            out_specs=pl.BlockSpec((1, th, Wo, Op), lambda n, i: (n, i, 0, 0)),
        ),
        compiler_params=pltpu.CompilerParams(
            dimension_semantics=("parallel", "parallel"),
            vmem_limit_bytes=_VMEM_LIMIT),
        cost_estimate=pl.CostEstimate(
            flops=flops, transcendentals=0, bytes_accessed=bytes_accessed),
    )(s2d, s2d, w2, b2)
    return out


def init_fc_discriminator_params(num_classes, ndf=64, seed=0):
    """Deterministic synthetic parameters (same shapes as the nn.Module)."""
    key = jax.random.PRNGKey(seed)
    shapes = [
        (ndf, num_classes, 4, 4),
        (ndf * 2, ndf, 4, 4),
        (ndf * 4, ndf * 2, 4, 4),
        (ndf * 8, ndf * 4, 4, 4),
        (1, ndf * 8, 4, 4),
    ]
    params = []
    for shp in shapes:
        key, kw_, kb_ = jax.random.split(key, 3)
        fan_in = shp[1] * shp[2] * shp[3]
        bound = 1.0 / jnp.sqrt(fan_in)
        w = jax.random.uniform(kw_, shp, jnp.float32, -bound, bound)
        b = jax.random.uniform(kb_, (shp[0],), jnp.float32, -bound, bound)
        params.append((w, b))
    return params


def fc_discriminator_forward(x_nchw, params):
    """FCDiscriminator forward.  NCHW in / NCHW out (PyTorch layout).
    Activations stay NHWC bf16 with lane-padded channels between layers;
    the NCHW<->NHWC transposes happen once at the API boundary."""
    h = jnp.transpose(x_nchw, (0, 2, 3, 1))            # NCHW -> NHWC, once
    n = len(params)
    for i, (w, b) in enumerate(params):
        last = i == n - 1
        h = conv4x4_s2_p1_nhwc(
            h, w, b,
            apply_leaky=not last,
            out_dtype=jnp.float32 if last else jnp.bfloat16)
    h = h[..., :params[-1][0].shape[0]]                 # drop lane padding (O=1)
    return jnp.transpose(h, (0, 3, 1, 2))               # NHWC -> NCHW, once


if __name__ == "__main__":
    # Small shapes: batch=2, num_classes=4, spatial=32, ndf=8.
    # Spatial trace: 32 -> 16 -> 8 -> 4 -> 2 -> 1 (five stride-2 convs).
    num_classes, ndf = 4, 8
    key = jax.random.PRNGKey(0)
    x = jax.random.normal(key, (2, num_classes, 32, 32), jnp.float32)
    params = init_fc_discriminator_params(num_classes, ndf=ndf, seed=0)

    fwd = jax.jit(fc_discriminator_forward)
    out = jax.block_until_ready(fwd(x, params))
    assert out.shape == (2, 1, 1, 1), out.shape
    assert bool(jnp.all(jnp.isfinite(out)))

    # Per-layer correctness check against XLA's native conv using identical
    # bf16 input/weight quantization (kernel accumulates in f32; only the
    # summation order differs -> tight tolerance).
    h_ref = jnp.transpose(x, (0, 2, 3, 1))  # f32 NHWC reference activations
    for i, (w, b) in enumerate(params):
        last = i == len(params) - 1
        o_real = w.shape[0]
        mine = conv4x4_s2_p1_nhwc(
            h_ref, w, b, apply_leaky=not last, out_dtype=jnp.float32)
        mine_real = mine[..., :o_real]
        if mine.shape[-1] > o_real:      # carried lane padding must be inert
            assert float(jnp.max(jnp.abs(mine[..., o_real:]))) == 0.0, i
        xq = jnp.transpose(h_ref, (0, 3, 1, 2)).astype(jnp.bfloat16)
        wq = w.astype(jnp.bfloat16)
        ref = jax.lax.conv_general_dilated(
            xq, wq, window_strides=(2, 2), padding=((1, 1), (1, 1)),
            dimension_numbers=("NCHW", "OIHW", "NCHW"),
            preferred_element_type=jnp.float32) + b.reshape(1, -1, 1, 1)
        if not last:
            ref = jnp.where(ref >= 0, ref, 0.2 * ref)
        ref = jnp.transpose(ref, (0, 2, 3, 1))
        err = float(jnp.max(jnp.abs(mine_real - ref)))
        tol = 1e-4 + 1e-3 * float(jnp.max(jnp.abs(ref)))
        assert err <= tol, (i, err, tol)
        h_ref = ref  # feed the f32 reference activation to the next layer

    print("KERNEL_OK")
</pallas_src>

<mosaic_0001>
module attributes {stable_mosaic.version = 11 : i64} {
  func.func @_s2d_conv_kernel(%arg0: i32, %arg1: i32, %arg2: memref<1x8x17x16xbf16, #tpu.memory_space<vmem>>, %arg3: memref<1x1x17x16xbf16, #tpu.memory_space<vmem>>, %arg4: memref<4x16x128xbf16, #tpu.memory_space<vmem>>, %arg5: memref<1x128xf32, #tpu.memory_space<vmem>>, %arg6: memref<1x8x16x128xbf16, #tpu.memory_space<vmem>>) attributes {dimension_semantics = [#tpu.dimension_semantics<parallel>, #tpu.dimension_semantics<parallel>], iteration_bounds = array<i64: 2, 2>, scalar_prefetch = 0 : i64, scratch_operands = 0 : i64, tpu.core_type = #tpu.core_type<tc>, window_params = [{transform_indices = @transform_0, window_bounds = array<i64: 1, 8, 17, 16>}, {transform_indices = @transform_1, window_bounds = array<i64: 1, 1, 17, 16>}, {pipeline_mode = #tpu.pipeline_mode<synchronous>, transform_indices = @transform_2, window_bounds = array<i64: 4, 16, 128>}, {pipeline_mode = #tpu.pipeline_mode<synchronous>, transform_indices = @transform_3, window_bounds = array<i64: 1, 128>}, {transform_indices = @transform_4, window_bounds = array<i64: 1, 8, 16, 128>}]} {
    %c0 = arith.constant 0 : index
    %c0_0 = arith.constant 0 : index
    %c0_1 = arith.constant 0 : index
    %0 = vector.load %arg4[%c0, %c0_0, %c0_1] : memref<4x16x128xbf16, #tpu.memory_space<vmem>>, vector<1x16x128xbf16>
    %1 = vector.shape_cast %0 : vector<1x16x128xbf16> to vector<16x128xbf16>
    %c1 = arith.constant 1 : index
    %c0_2 = arith.constant 0 : index
    %c0_3 = arith.constant 0 : index
    %2 = vector.load %arg4[%c1, %c0_2, %c0_3] : memref<4x16x128xbf16, #tpu.memory_space<vmem>>, vector<1x16x128xbf16>
    %3 = vector.shape_cast %2 : vector<1x16x128xbf16> to vector<16x128xbf16>
    %c2 = arith.constant 2 : index
    %c0_4 = arith.constant 0 : index
    %c0_5 = arith.constant 0 : index
    %4 = vector.load %arg4[%c2, %c0_4, %c0_5] : memref<4x16x128xbf16, #tpu.memory_space<vmem>>, vector<1x16x128xbf16>
    %5 = vector.shape_cast %4 : vector<1x16x128xbf16> to vector<16x128xbf16>
    %c3 = arith.constant 3 : index
    %c0_6 = arith.constant 0 : index
    %c0_7 = arith.constant 0 : index
    %6 = vector.load %arg4[%c3, %c0_6, %c0_7] : memref<4x16x128xbf16, #tpu.memory_space<vmem>>, vector<1x16x128xbf16>
    %7 = vector.shape_cast %6 : vector<1x16x128xbf16> to vector<16x128xbf16>
    %c0_8 = arith.constant 0 : index
    %c0_9 = arith.constant 0 : index
    %8 = vector.load %arg5[%c0_8, %c0_9] : memref<1x128xf32, #tpu.memory_space<vmem>>, vector<1x128xf32>
    %c0_10 = arith.constant 0 : index
    %c0_11 = arith.constant 0 : index
    %c0_12 = arith.constant 0 : index
    %c0_13 = arith.constant 0 : index
    %9 = vector.load %arg2[%c0_10, %c0_11, %c0_12, %c0_13] : memref<1x8x17x16xbf16, #tpu.memory_space<vmem>>, vector<1x1x17x16xbf16>
    %10 = vector.shape_cast %9 : vector<1x1x17x16xbf16> to vector<17x16xbf16>
    %c0_14 = arith.constant 0 : index
    %c1_15 = arith.constant 1 : index
    %c0_16 = arith.constant 0 : index
    %c0_17 = arith.constant 0 : index
    %11 = vector.load %arg2[%c0_14, %c1_15, %c0_16, %c0_17] : memref<1x8x17x16xbf16, #tpu.memory_space<vmem>>, vector<1x1x17x16xbf16>
    %12 = vector.shape_cast %11 : vector<1x1x17x16xbf16> to vector<17x16xbf16>
    %13 = vector.extract_strided_slice %10 {offsets = [0, 0], sizes = [16, 16], strides = [1, 1]} : vector<17x16xbf16> to vector<16x16xbf16>
    %cst = arith.constant dense<0.000000e+00> : vector<16x128xf32>
    %14 = tpu.matmul %13, %1, %cst {dimension_numbers = #tpu.dot_dimension_numbers<[1], [0], [0], [1], [0, 0, 1, 1], [], []>} : vector<16x16xbf16>, vector<16x128xbf16>, vector<16x128xf32> -> vector<16x128xf32>
    %15 = vector.extract_strided_slice %10 {offsets = [1, 0], sizes = [16, 16], strides = [1, 1]} : vector<17x16xbf16> to vector<16x16xbf16>
    %cst_18 = arith.constant dense<0.000000e+00> : vector<16x128xf32>
    %16 = tpu.matmul %15, %3, %cst_18 {dimension_numbers = #tpu.dot_dimension_numbers<[1], [0], [0], [1], [0, 0, 1, 1], [], []>} : vector<16x16xbf16>, vector<16x128xbf16>, vector<16x128xf32> -> vector<16x128xf32>
    %17 = arith.addf %14, %16 : vector<16x128xf32>
    %18 = vector.extract_strided_slice %12 {offsets = [0, 0], sizes = [16, 16], strides = [1, 1]} : vector<17x16xbf16> to vector<16x16xbf16>
    %cst_19 = arith.constant dense<0.000000e+00> : vector<16x128xf32>
    %19 = tpu.matmul %18, %5, %cst_19 {dimension_numbers = #tpu.dot_dimension_numbers<[1], [0], [0], [1], [0, 0, 1, 1], [], []>} : vector<16x16xbf16>, vector<16x128xbf16>, vector<16x128xf32> -> vector<16x128xf32>
    %20 = arith.addf %17, %19 : vector<16x128xf32>
    %21 = vector.extract_strided_slice %12 {offsets = [1, 0], sizes = [16, 16], strides = [1, 1]} : vector<17x16xbf16> to vector<16x16xbf16>
    %cst_20 = arith.constant dense<0.000000e+00> : vector<16x128xf32>
    %22 = tpu.matmul %21, %7, %cst_20 {dimension_numbers = #tpu.dot_dimension_numbers<[1], [0], [0], [1], [0, 0, 1, 1], [], []>} : vector<16x16xbf16>, vector<16x128xbf16>, vector<16x128xf32> -> vector<16x128xf32>
    %23 = arith.addf %20, %22 : vector<16x128xf32>
    %24 = vector.broadcast %8 : vector<1x128xf32> to vector<16x128xf32>
    %25 = arith.addf %23, %24 : vector<16x128xf32>
    %cst_21 = arith.constant 0.000000e+00 : f32
    %26 = vector.broadcast %cst_21 : f32 to vector<16x128xf32>
    %27 = arith.cmpf oge, %25, %26 : vector<16x128xf32>
    %cst_22 = arith.constant 2.000000e-01 : f32
    %28 = vector.broadcast %cst_22 : f32 to vector<16x128xf32>
    %29 = arith.mulf %28, %25 : vector<16x128xf32>
    %30 = arith.select %27, %25, %29 : vector<16x128xi1>, vector<16x128xf32>
    %31 = arith.truncf %30 : vector<16x128xf32> to vector<16x128xbf16>
    %c0_23 = arith.constant 0 : index
    %c0_24 = arith.constant 0 : index
    %c0_25 = arith.constant 0 : index
    %c0_26 = arith.constant 0 : index
    %32 = vector.load %arg6[%c0_23, %c0_24, %c0_25, %c0_26] : memref<1x8x16x128xbf16, #tpu.memory_space<vmem>>, vector<1x1x16x128xbf16>
    %33 = vector.shape_cast %32 : vector<1x1x16x128xbf16> to vector<16x128xbf16>
    %34 = vector.shape_cast %31 : vector<16x128xbf16> to vector<1x1x16x128xbf16>
    tpu.vector_store %arg6[%c0_23, %c0_24, %c0_25, %c0_26], %34 {strides = array<i32>} : memref<1x8x16x128xbf16, #tpu.memory_space<vmem>>, vector<1x1x16x128xbf16>,
    %c0_27 = arith.constant 0 : index
    %c1_28 = arith.constant 1 : index
    %c0_29 = arith.constant 0 : index
    %c0_30 = arith.constant 0 : index
    %35 = vector.load %arg2[%c0_27, %c1_28, %c0_29, %c0_30] : memref<1x8x17x16xbf16, #tpu.memory_space<vmem>>, vector<1x1x17x16xbf16>
    %36 = vector.shape_cast %35 : vector<1x1x17x16xbf16> to vector<17x16xbf16>
    %c0_31 = arith.constant 0 : index
    %c2_32 = arith.constant 2 : index
    %c0_33 = arith.constant 0 : index
    %c0_34 = arith.constant 0 : index
    %37 = vector.load %arg2[%c0_31, %c2_32, %c0_33, %c0_34] : memref<1x8x17x16xbf16, #tpu.memory_space<vmem>>, vector<1x1x17x16xbf16>
    %38 = vector.shape_cast %37 : vector<1x1x17x16xbf16> to vector<17x16xbf16>
    %39 = vector.extract_strided_slice %36 {offsets = [0, 0], sizes = [16, 16], strides = [1, 1]} : vector<17x16xbf16> to vector<16x16xbf16>
    %cst_35 = arith.constant dense<0.000000e+00> : vector<16x128xf32>
    %40 = tpu.matmul %39, %1, %cst_35 {dimension_numbers = #tpu.dot_dimension_numbers<[1], [0], [0], [1], [0, 0, 1, 1], [], []>} : vector<16x16xbf16>, vector<16x128xbf16>, vector<16x128xf32> -> vector<16x128xf32>
    %41 = vector.extract_strided_slice %36 {offsets = [1, 0], sizes = [16, 16], strides = [1, 1]} : vector<17x16xbf16> to vector<16x16xbf16>
    %cst_36 = arith.constant dense<0.000000e+00> : vector<16x128xf32>
    %42 = tpu.matmul %41, %3, %cst_36 {dimension_numbers = #tpu.dot_dimension_numbers<[1], [0], [0], [1], [0, 0, 1, 1], [], []>} : vector<16x16xbf16>, vector<16x128xbf16>, vector<16x128xf32> -> vector<16x128xf32>
    %43 = arith.addf %40, %42 : vector<16x128xf32>
    %44 = vector.extract_strided_slice %38 {offsets = [0, 0], sizes = [16, 16], strides = [1, 1]} : vector<17x16xbf16> to vector<16x16xbf16>
    %cst_37 = arith.constant dense<0.000000e+00> : vector<16x128xf32>
    %45 = tpu.matmul %44, %5, %cst_37 {dimension_numbers = #tpu.dot_dimension_numbers<[1], [0], [0], [1], [0, 0, 1, 1], [], []>} : vector<16x16xbf16>, vector<16x128xbf16>, vector<16x128xf32> -> vector<16x128xf32>
    %46 = arith.addf %43, %45 : vector<16x128xf32>
    %47 = vector.extract_strided_slice %38 {offsets = [1, 0], sizes = [16, 16], strides = [1, 1]} : vector<17x16xbf16> to vector<16x16xbf16>
    %cst_38 = arith.constant dense<0.000000e+00> : vector<16x128xf32>
    %48 = tpu.matmul %47, %7, %cst_38 {dimension_numbers = #tpu.dot_dimension_numbers<[1], [0], [0], [1], [0, 0, 1, 1], [], []>} : vector<16x16xbf16>, vector<16x128xbf16>, vector<16x128xf32> -> vector<16x128xf32>
    %49 = arith.addf %46, %48 : vector<16x128xf32>
    %50 = vector.broadcast %8 : vector<1x128xf32> to vector<16x128xf32>
    %51 = arith.addf %49, %50 : vector<16x128xf32>
    %cst_39 = arith.constant 0.000000e+00 : f32
    %52 = vector.broadcast %cst_39 : f32 to vector<16x128xf32>
    %53 = arith.cmpf oge, %51, %52 : vector<16x128xf32>
    %cst_40 = arith.constant 2.000000e-01 : f32
    %54 = vector.broadcast %cst_40 : f32 to vector<16x128xf32>
    %55 = arith.mulf %54, %51 : vector<16x128xf32>
    %56 = arith.select %53, %51, %55 : vector<16x128xi1>, vector<16x128xf32>
    %57 = arith.truncf %56 : vector<16x128xf32> to vector<16x128xbf16>
    %c0_41 = arith.constant 0 : index
    %c1_42 = arith.constant 1 : index
    %c0_43 = arith.constant 0 : index
    %c0_44 = arith.constant 0 : index
    %58 = vector.load %arg6[%c0_41, %c1_42, %c0_43, %c0_44] : memref<1x8x16x128xbf16, #tpu.memory_space<vmem>>, vector<1x1x16x128xbf16>
    %59 = vector.shape_cast %58 : vector<1x1x16x128xbf16> to vector<16x128xbf16>
    %60 = vector.shape_cast %57 : vector<16x128xbf16> to vector<1x1x16x128xbf16>
    tpu.vector_store %arg6[%c0_41, %c1_42, %c0_43, %c0_44], %60 {strides = array<i32>} : memref<1x8x16x128xbf16, #tpu.memory_space<vmem>>, vector<1x1x16x128xbf16>,
    %c0_45 = arith.constant 0 : index
    %c2_46 = arith.constant 2 : index
    %c0_47 = arith.constant 0 : index
    %c0_48 = arith.constant 0 : index
    %61 = vector.load %arg2[%c0_45, %c2_46, %c0_47, %c0_48] : memref<1x8x17x16xbf16, #tpu.memory_space<vmem>>, vector<1x1x17x16xbf16>
    %62 = vector.shape_cast %61 : vector<1x1x17x16xbf16> to vector<17x16xbf16>
    %c0_49 = arith.constant 0 : index
    %c3_50 = arith.constant 3 : index
    %c0_51 = arith.constant 0 : index
    %c0_52 = arith.constant 0 : index
    %63 = vector.load %arg2[%c0_49, %c3_50, %c0_51, %c0_52] : memref<1x8x17x16xbf16, #tpu.memory_space<vmem>>, vector<1x1x17x16xbf16>
    %64 = vector.shape_cast %63 : vector<1x1x17x16xbf16> to vector<17x16xbf16>
    %65 = vector.extract_strided_slice %62 {offsets = [0, 0], sizes = [16, 16], strides = [1, 1]} : vector<17x16xbf16> to vector<16x16xbf16>
    %cst_53 = arith.constant dense<0.000000e+00> : vector<16x128xf32>
    %66 = tpu.matmul %65, %1, %cst_53 {dimension_numbers = #tpu.dot_dimension_numbers<[1], [0], [0], [1], [0, 0, 1, 1], [], []>} : vector<16x16xbf16>, vector<16x128xbf16>, vector<16x128xf32> -> vector<16x128xf32>
    %67 = vector.extract_strided_slice %62 {offsets = [1, 0], sizes = [16, 16], strides = [1, 1]} : vector<17x16xbf16> to vector<16x16xbf16>
    %cst_54 = arith.constant dense<0.000000e+00> : vector<16x128xf32>
    %68 = tpu.matmul %67, %3, %cst_54 {dimension_numbers = #tpu.dot_dimension_numbers<[1], [0], [0], [1], [0, 0, 1, 1], [], []>} : vector<16x16xbf16>, vector<16x128xbf16>, vector<16x128xf32> -> vector<16x128xf32>
    %69 = arith.addf %66, %68 : vector<16x128xf32>
    %70 = vector.extract_strided_slice %64 {offsets = [0, 0], sizes = [16, 16], strides = [1, 1]} : vector<17x16xbf16> to vector<16x16xbf16>
    %cst_55 = arith.constant dense<0.000000e+00> : vector<16x128xf32>
    %71 = tpu.matmul %70, %5, %cst_55 {dimension_numbers = #tpu.dot_dimension_numbers<[1], [0], [0], [1], [0, 0, 1, 1], [], []>} : vector<16x16xbf16>, vector<16x128xbf16>, vector<16x128xf32> -> vector<16x128xf32>
    %72 = arith.addf %69, %71 : vector<16x128xf32>
    %73 = vector.extract_strided_slice %64 {offsets = [1, 0], sizes = [16, 16], strides = [1, 1]} : vector<17x16xbf16> to vector<16x16xbf16>
    %cst_56 = arith.constant dense<0.000000e+00> : vector<16x128xf32>
    %74 = tpu.matmul %73, %7, %cst_56 {dimension_numbers = #tpu.dot_dimension_numbers<[1], [0], [0], [1], [0, 0, 1, 1], [], []>} : vector<16x16xbf16>, vector<16x128xbf16>, vector<16x128xf32> -> vector<16x128xf32>
    %75 = arith.addf %72, %74 : vector<16x128xf32>
    %76 = vector.broadcast %8 : vector<1x128xf32> to vector<16x128xf32>
    %77 = arith.addf %75, %76 : vector<16x128xf32>
    %cst_57 = arith.constant 0.000000e+00 : f32
    %78 = vector.broadcast %cst_57 : f32 to vector<16x128xf32>
    %79 = arith.cmpf oge, %77, %78 : vector<16x128xf32>
    %cst_58 = arith.constant 2.000000e-01 : f32
    %80 = vector.broadcast %cst_58 : f32 to vector<16x128xf32>
    %81 = arith.mulf %80, %77 : vector<16x128xf32>
    %82 = arith.select %79, %77, %81 : vector<16x128xi1>, vector<16x128xf32>
    %83 = arith.truncf %82 : vector<16x128xf32> to vector<16x128xbf16>
    %c0_59 = arith.constant 0 : index
    %c2_60 = arith.constant 2 : index
    %c0_61 = arith.constant 0 : index
    %c0_62 = arith.constant 0 : index
    %84 = vector.load %arg6[%c0_59, %c2_60, %c0_61, %c0_62] : memref<1x8x16x128xbf16, #tpu.memory_space<vmem>>, vector<1x1x16x128xbf16>
    %85 = vector.shape_cast %84 : vector<1x1x16x128xbf16> to vector<16x128xbf16>
    %86 = vector.shape_cast %83 : vector<16x128xbf16> to vector<1x1x16x128xbf16>
    tpu.vector_store %arg6[%c0_59, %c2_60, %c0_61, %c0_62], %86 {strides = array<i32>} : memref<1x8x16x128xbf16, #tpu.memory_space<vmem>>, vector<1x1x16x128xbf16>,
    %c0_63 = arith.constant 0 : index
    %c3_64 = arith.constant 3 : index
    %c0_65 = arith.constant 0 : index
    %c0_66 = arith.constant 0 : index
    %87 = vector.load %arg2[%c0_63, %c3_64, %c0_65, %c0_66] : memref<1x8x17x16xbf16, #tpu.memory_space<vmem>>, vector<1x1x17x16xbf16>
    %88 = vector.shape_cast %87 : vector<1x1x17x16xbf16> to vector<17x16xbf16>
    %c0_67 = arith.constant 0 : index
    %c4 = arith.constant 4 : index
    %c0_68 = arith.constant 0 : index
    %c0_69 = arith.constant 0 : index
    %89 = vector.load %arg2[%c0_67, %c4, %c0_68, %c0_69] : memref<1x8x17x16xbf16, #tpu.memory_space<vmem>>, vector<1x1x17x16xbf16>
    %90 = vector.shape_cast %89 : vector<1x1x17x16xbf16> to vector<17x16xbf16>
    %91 = vector.extract_strided_slice %88 {offsets = [0, 0], sizes = [16, 16], strides = [1, 1]} : vector<17x16xbf16> to vector<16x16xbf16>
    %cst_70 = arith.constant dense<0.000000e+00> : vector<16x128xf32>
    %92 = tpu.matmul %91, %1, %cst_70 {dimension_numbers = #tpu.dot_dimension_numbers<[1], [0], [0], [1], [0, 0, 1, 1], [], []>} : vector<16x16xbf16>, vector<16x128xbf16>, vector<16x128xf32> -> vector<16x128xf32>
    %93 = vector.extract_strided_slice %88 {offsets = [1, 0], sizes = [16, 16], strides = [1, 1]} : vector<17x16xbf16> to vector<16x16xbf16>
    %cst_71 = arith.constant dense<0.000000e+00> : vector<16x128xf32>
    %94 = tpu.matmul %93, %3, %cst_71 {dimension_numbers = #tpu.dot_dimension_numbers<[1], [0], [0], [1], [0, 0, 1, 1], [], []>} : vector<16x16xbf16>, vector<16x128xbf16>, vector<16x128xf32> -> vector<16x128xf32>
    %95 = arith.addf %92, %94 : vector<16x128xf32>
    %96 = vector.extract_strided_slice %90 {offsets = [0, 0], sizes = [16, 16], strides = [1, 1]} : vector<17x16xbf16> to vector<16x16xbf16>
    %cst_72 = arith.constant dense<0.000000e+00> : vector<16x128xf32>
    %97 = tpu.matmul %96, %5, %cst_72 {dimension_numbers = #tpu.dot_dimension_numbers<[1], [0], [0], [1], [0, 0, 1, 1], [], []>} : vector<16x16xbf16>, vector<16x128xbf16>, vector<16x128xf32> -> vector<16x128xf32>
    %98 = arith.addf %95, %97 : vector<16x128xf32>
    %99 = vector.extract_strided_slice %90 {offsets = [1, 0], sizes = [16, 16], strides = [1, 1]} : vector<17x16xbf16> to vector<16x16xbf16>
    %cst_73 = arith.constant dense<0.000000e+00> : vector<16x128xf32>
    %100 = tpu.matmul %99, %7, %cst_73 {dimension_numbers = #tpu.dot_dimension_numbers<[1], [0], [0], [1], [0, 0, 1, 1], [], []>} : vector<16x16xbf16>, vector<16x128xbf16>, vector<16x128xf32> -> vector<16x128xf32>
    %101 = arith.addf %98, %100 : vector<16x128xf32>
    %102 = vector.broadcast %8 : vector<1x128xf32> to vector<16x128xf32>
    %103 = arith.addf %101, %102 : vector<16x128xf32>
    %cst_74 = arith.constant 0.000000e+00 : f32
    %104 = vector.broadcast %cst_74 : f32 to vector<16x128xf32>
    %105 = arith.cmpf oge, %103, %104 : vector<16x128xf32>
    %cst_75 = arith.constant 2.000000e-01 : f32
    %106 = vector.broadcast %cst_75 : f32 to vector<16x128xf32>
    %107 = arith.mulf %106, %103 : vector<16x128xf32>
    %108 = arith.select %105, %103, %107 : vector<16x128xi1>, vector<16x128xf32>
    %109 = arith.truncf %108 : vector<16x128xf32> to vector<16x128xbf16>
    %c0_76 = arith.constant 0 : index
    %c3_77 = arith.constant 3 : index
    %c0_78 = arith.constant 0 : index
    %c0_79 = arith.constant 0 : index
    %110 = vector.load %arg6[%c0_76, %c3_77, %c0_78, %c0_79] : memref<1x8x16x128xbf16, #tpu.memory_space<vmem>>, vector<1x1x16x128xbf16>
    %111 = vector.shape_cast %110 : vector<1x1x16x128xbf16> to vector<16x128xbf16>
    %112 = vector.shape_cast %109 : vector<16x128xbf16> to vector<1x1x16x128xbf16>
    tpu.vector_store %arg6[%c0_76, %c3_77, %c0_78, %c0_79], %112 {strides = array<i32>} : memref<1x8x16x128xbf16, #tpu.memory_space<vmem>>, vector<1x1x16x128xbf16>,
    %c0_80 = arith.constant 0 : index
    %c4_81 = arith.constant 4 : index
    %c0_82 = arith.constant 0 : index
    %c0_83 = arith.constant 0 : index
    %113 = vector.load %arg2[%c0_80, %c4_81, %c0_82, %c0_83] : memref<1x8x17x16xbf16, #tpu.memory_space<vmem>>, vector<1x1x17x16xbf16>
    %114 = vector.shape_cast %113 : vector<1x1x17x16xbf16> to vector<17x16xbf16>
    %c0_84 = arith.constant 0 : index
    %c5 = arith.constant 5 : index
    %c0_85 = arith.constant 0 : index
    %c0_86 = arith.constant 0 : index
    %115 = vector.load %arg2[%c0_84, %c5, %c0_85, %c0_86] : memref<1x8x17x16xbf16, #tpu.memory_space<vmem>>, vector<1x1x17x16xbf16>
    %116 = vector.shape_cast %115 : vector<1x1x17x16xbf16> to vector<17x16xbf16>
    %117 = vector.extract_strided_slice %114 {offsets = [0, 0], sizes = [16, 16], strides = [1, 1]} : vector<17x16xbf16> to vector<16x16xbf16>
    %cst_87 = arith.constant dense<0.000000e+00> : vector<16x128xf32>
    %118 = tpu.matmul %117, %1, %cst_87 {dimension_numbers = #tpu.dot_dimension_numbers<[1], [0], [0], [1], [0, 0, 1, 1], [], []>} : vector<16x16xbf16>, vector<16x128xbf16>, vector<16x128xf32> -> vector<16x128xf32>
    %119 = vector.extract_strided_slice %114 {offsets = [1, 0], sizes = [16, 16], strides = [1, 1]} : vector<17x16xbf16> to vector<16x16xbf16>
    %cst_88 = arith.constant dense<0.000000e+00> : vector<16x128xf32>
    %120 = tpu.matmul %119, %3, %cst_88 {dimension_numbers = #tpu.dot_dimension_numbers<[1], [0], [0], [1], [0, 0, 1, 1], [], []>} : vector<16x16xbf16>, vector<16x128xbf16>, vector<16x128xf32> -> vector<16x128xf32>
    %121 = arith.addf %118, %120 : vector<16x128xf32>
    %122 = vector.extract_strided_slice %116 {offsets = [0, 0], sizes = [16, 16], strides = [1, 1]} : vector<17x16xbf16> to vector<16x16xbf16>
    %cst_89 = arith.constant dense<0.000000e+00> : vector<16x128xf32>
    %123 = tpu.matmul %122, %5, %cst_89 {dimension_numbers = #tpu.dot_dimension_numbers<[1], [0], [0], [1], [0, 0, 1, 1], [], []>} : vector<16x16xbf16>, vector<16x128xbf16>, vector<16x128xf32> -> vector<16x128xf32>
    %124 = arith.addf %121, %123 : vector<16x128xf32>
    %125 = vector.extract_strided_slice %116 {offsets = [1, 0], sizes = [16, 16], strides = [1, 1]} : vector<17x16xbf16> to vector<16x16xbf16>
    %cst_90 = arith.constant dense<0.000000e+00> : vector<16x128xf32>
    %126 = tpu.matmul %125, %7, %cst_90 {dimension_numbers = #tpu.dot_dimension_numbers<[1], [0], [0], [1], [0, 0, 1, 1], [], []>} : vector<16x16xbf16>, vector<16x128xbf16>, vector<16x128xf32> -> vector<16x128xf32>
    %127 = arith.addf %124, %126 : vector<16x128xf32>
    %128 = vector.broadcast %8 : vector<1x128xf32> to vector<16x128xf32>
    %129 = arith.addf %127, %128 : vector<16x128xf32>
    %cst_91 = arith.constant 0.000000e+00 : f32
    %130 = vector.broadcast %cst_91 : f32 to vector<16x128xf32>
    %131 = arith.cmpf oge, %129, %130 : vector<16x128xf32>
    %cst_92 = arith.constant 2.000000e-01 : f32
    %132 = vector.broadcast %cst_92 : f32 to vector<16x128xf32>
    %133 = arith.mulf %132, %129 : vector<16x128xf32>
    %134 = arith.select %131, %129, %133 : vector<16x128xi1>, vector<16x128xf32>
    %135 = arith.truncf %134 : vector<16x128xf32> to vector<16x128xbf16>
    %c0_93 = arith.constant 0 : index
    %c4_94 = arith.constant 4 : index
    %c0_95 = arith.constant 0 : index
    %c0_96 = arith.constant 0 : index
    %136 = vector.load %arg6[%c0_93, %c4_94, %c0_95, %c0_96] : memref<1x8x16x128xbf16, #tpu.memory_space<vmem>>, vector<1x1x16x128xbf16>
    %137 = vector.shape_cast %136 : vector<1x1x16x128xbf16> to vector<16x128xbf16>
    %138 = vector.shape_cast %135 : vector<16x128xbf16> to vector<1x1x16x128xbf16>
    tpu.vector_store %arg6[%c0_93, %c4_94, %c0_95, %c0_96], %138 {strides = array<i32>} : memref<1x8x16x128xbf16, #tpu.memory_space<vmem>>, vector<1x1x16x128xbf16>,
    %c0_97 = arith.constant 0 : index
    %c5_98 = arith.constant 5 : index
    %c0_99 = arith.constant 0 : index
    %c0_100 = arith.constant 0 : index
    %139 = vector.load %arg2[%c0_97, %c5_98, %c0_99, %c0_100] : memref<1x8x17x16xbf16, #tpu.memory_space<vmem>>, vector<1x1x17x16xbf16>
    %140 = vector.shape_cast %139 : vector<1x1x17x16xbf16> to vector<17x16xbf16>
    %c0_101 = arith.constant 0 : index
    %c6 = arith.constant 6 : index
    %c0_102 = arith.constant 0 : index
    %c0_103 = arith.constant 0 : index
    %141 = vector.load %arg2[%c0_101, %c6, %c0_102, %c0_103] : memref<1x8x17x16xbf16, #tpu.memory_space<vmem>>, vector<1x1x17x16xbf16>
    %142 = vector.shape_cast %141 : vector<1x1x17x16xbf16> to vector<17x16xbf16>
    %143 = vector.extract_strided_slice %140 {offsets = [0, 0], sizes = [16, 16], strides = [1, 1]} : vector<17x16xbf16> to vector<16x16xbf16>
    %cst_104 = arith.constant dense<0.000000e+00> : vector<16x128xf32>
    %144 = tpu.matmul %143, %1, %cst_104 {dimension_numbers = #tpu.dot_dimension_numbers<[1], [0], [0], [1], [0, 0, 1, 1], [], []>} : vector<16x16xbf16>, vector<16x128xbf16>, vector<16x128xf32> -> vector<16x128xf32>
    %145 = vector.extract_strided_slice %140 {offsets = [1, 0], sizes = [16, 16], strides = [1, 1]} : vector<17x16xbf16> to vector<16x16xbf16>
    %cst_105 = arith.constant dense<0.000000e+00> : vector<16x128xf32>
    %146 = tpu.matmul %145, %3, %cst_105 {dimension_numbers = #tpu.dot_dimension_numbers<[1], [0], [0], [1], [0, 0, 1, 1], [], []>} : vector<16x16xbf16>, vector<16x128xbf16>, vector<16x128xf32> -> vector<16x128xf32>
    %147 = arith.addf %144, %146 : vector<16x128xf32>
    %148 = vector.extract_strided_slice %142 {offsets = [0, 0], sizes = [16, 16], strides = [1, 1]} : vector<17x16xbf16> to vector<16x16xbf16>
    %cst_106 = arith.constant dense<0.000000e+00> : vector<16x128xf32>
    %149 = tpu.matmul %148, %5, %cst_106 {dimension_numbers = #tpu.dot_dimension_numbers<[1], [0], [0], [1], [0, 0, 1, 1], [], []>} : vector<16x16xbf16>, vector<16x128xbf16>, vector<16x128xf32> -> vector<16x128xf32>
    %150 = arith.addf %147, %149 : vector<16x128xf32>
    %151 = vector.extract_strided_slice %142 {offsets = [1, 0], sizes = [16, 16], strides = [1, 1]} : vector<17x16xbf16> to vector<16x16xbf16>
    %cst_107 = arith.constant dense<0.000000e+00> : vector<16x128xf32>
    %152 = tpu.matmul %151, %7, %cst_107 {dimension_numbers = #tpu.dot_dimension_numbers<[1], [0], [0], [1], [0, 0, 1, 1], [], []>} : vector<16x16xbf16>, vector<16x128xbf16>, vector<16x128xf32> -> vector<16x128xf32>
    %153 = arith.addf %150, %152 : vector<16x128xf32>
    %154 = vector.broadcast %8 : vector<1x128xf32> to vector<16x128xf32>
    %155 = arith.addf %153, %154 : vector<16x128xf32>
    %cst_108 = arith.constant 0.000000e+00 : f32
    %156 = vector.broadcast %cst_108 : f32 to vector<16x128xf32>
    %157 = arith.cmpf oge, %155, %156 : vector<16x128xf32>
    %cst_109 = arith.constant 2.000000e-01 : f32
    %158 = vector.broadcast %cst_109 : f32 to vector<16x128xf32>
    %159 = arith.mulf %158, %155 : vector<16x128xf32>
    %160 = arith.select %157, %155, %159 : vector<16x128xi1>, vector<16x128xf32>
    %161 = arith.truncf %160 : vector<16x128xf32> to vector<16x128xbf16>
    %c0_110 = arith.constant 0 : index
    %c5_111 = arith.constant 5 : index
    %c0_112 = arith.constant 0 : index
    %c0_113 = arith.constant 0 : index
    %162 = vector.load %arg6[%c0_110, %c5_111, %c0_112, %c0_113] : memref<1x8x16x128xbf16, #tpu.memory_space<vmem>>, vector<1x1x16x128xbf16>
    %163 = vector.shape_cast %162 : vector<1x1x16x128xbf16> to vector<16x128xbf16>
    %164 = vector.shape_cast %161 : vector<16x128xbf16> to vector<1x1x16x128xbf16>
    tpu.vector_store %arg6[%c0_110, %c5_111, %c0_112, %c0_113], %164 {strides = array<i32>} : memref<1x8x16x128xbf16, #tpu.memory_space<vmem>>, vector<1x1x16x128xbf16>,
    %c0_114 = arith.constant 0 : index
    %c6_115 = arith.constant 6 : index
    %c0_116 = arith.constant 0 : index
    %c0_117 = arith.constant 0 : index
    %165 = vector.load %arg2[%c0_114, %c6_115, %c0_116, %c0_117] : memref<1x8x17x16xbf16, #tpu.memory_space<vmem>>, vector<1x1x17x16xbf16>
    %166 = vector.shape_cast %165 : vector<1x1x17x16xbf16> to vector<17x16xbf16>
    %c0_118 = arith.constant 0 : index
    %c7 = arith.constant 7 : index
    %c0_119 = arith.constant 0 : index
    %c0_120 = arith.constant 0 : index
    %167 = vector.load %arg2[%c0_118, %c7, %c0_119, %c0_120] : memref<1x8x17x16xbf16, #tpu.memory_space<vmem>>, vector<1x1x17x16xbf16>
    %168 = vector.shape_cast %167 : vector<1x1x17x16xbf16> to vector<17x16xbf16>
    %169 = vector.extract_strided_slice %166 {offsets = [0, 0], sizes = [16, 16], strides = [1, 1]} : vector<17x16xbf16> to vector<16x16xbf16>
    %cst_121 = arith.constant dense<0.000000e+00> : vector<16x128xf32>
    %170 = tpu.matmul %169, %1, %cst_121 {dimension_numbers = #tpu.dot_dimension_numbers<[1], [0], [0], [1], [0, 0, 1, 1], [], []>} : vector<16x16xbf16>, vector<16x128xbf16>, vector<16x128xf32> -> vector<16x128xf32>
    %171 = vector.extract_strided_slice %166 {offsets = [1, 0], sizes = [16, 16], strides = [1, 1]} : vector<17x16xbf16> to vector<16x16xbf16>
    %cst_122 = arith.constant dense<0.000000e+00> : vector<16x128xf32>
    %172 = tpu.matmul %171, %3, %cst_122 {dimension_numbers = #tpu.dot_dimension_numbers<[1], [0], [0], [1], [0, 0, 1, 1], [], []>} : vector<16x16xbf16>, vector<16x128xbf16>, vector<16x128xf32> -> vector<16x128xf32>
    %173 = arith.addf %170, %172 : vector<16x128xf32>
    %174 = vector.extract_strided_slice %168 {offsets = [0, 0], sizes = [16, 16], strides = [1, 1]} : vector<17x16xbf16> to vector<16x16xbf16>
    %cst_123 = arith.constant dense<0.000000e+00> : vector<16x128xf32>
    %175 = tpu.matmul %174, %5, %cst_123 {dimension_numbers = #tpu.dot_dimension_numbers<[1], [0], [0], [1], [0, 0, 1, 1], [], []>} : vector<16x16xbf16>, vector<16x128xbf16>, vector<16x128xf32> -> vector<16x128xf32>
    %176 = arith.addf %173, %175 : vector<16x128xf32>
    %177 = vector.extract_strided_slice %168 {offsets = [1, 0], sizes = [16, 16], strides = [1, 1]} : vector<17x16xbf16> to vector<16x16xbf16>
    %cst_124 = arith.constant dense<0.000000e+00> : vector<16x128xf32>
    %178 = tpu.matmul %177, %7, %cst_124 {dimension_numbers = #tpu.dot_dimension_numbers<[1], [0], [0], [1], [0, 0, 1, 1], [], []>} : vector<16x16xbf16>, vector<16x128xbf16>, vector<16x128xf32> -> vector<16x128xf32>
    %179 = arith.addf %176, %178 : vector<16x128xf32>
    %180 = vector.broadcast %8 : vector<1x128xf32> to vector<16x128xf32>
    %181 = arith.addf %179, %180 : vector<16x128xf32>
    %cst_125 = arith.constant 0.000000e+00 : f32
    %182 = vector.broadcast %cst_125 : f32 to vector<16x128xf32>
    %183 = arith.cmpf oge, %181, %182 : vector<16x128xf32>
    %cst_126 = arith.constant 2.000000e-01 : f32
    %184 = vector.broadcast %cst_126 : f32 to vector<16x128xf32>
    %185 = arith.mulf %184, %181 : vector<16x128xf32>
    %186 = arith.select %183, %181, %185 : vector<16x128xi1>, vector<16x128xf32>
    %187 = arith.truncf %186 : vector<16x128xf32> to vector<16x128xbf16>
    %c0_127 = arith.constant 0 : index
    %c6_128 = arith.constant 6 : index
    %c0_129 = arith.constant 0 : index
    %c0_130 = arith.constant 0 : index
    %188 = vector.load %arg6[%c0_127, %c6_128, %c0_129, %c0_130] : memref<1x8x16x128xbf16, #tpu.memory_space<vmem>>, vector<1x1x16x128xbf16>
    %189 = vector.shape_cast %188 : vector<1x1x16x128xbf16> to vector<16x128xbf16>
    %190 = vector.shape_cast %187 : vector<16x128xbf16> to vector<1x1x16x128xbf16>
    tpu.vector_store %arg6[%c0_127, %c6_128, %c0_129, %c0_130], %190 {strides = array<i32>} : memref<1x8x16x128xbf16, #tpu.memory_space<vmem>>, vector<1x1x16x128xbf16>,
    %c0_131 = arith.constant 0 : index
    %c7_132 = arith.constant 7 : index
    %c0_133 = arith.constant 0 : index
    %c0_134 = arith.constant 0 : index
    %191 = vector.load %arg2[%c0_131, %c7_132, %c0_133, %c0_134] : memref<1x8x17x16xbf16, #tpu.memory_space<vmem>>, vector<1x1x17x16xbf16>
    %192 = vector.shape_cast %191 : vector<1x1x17x16xbf16> to vector<17x16xbf16>
    %c0_135 = arith.constant 0 : index
    %c0_136 = arith.constant 0 : index
    %c0_137 = arith.constant 0 : index
    %c0_138 = arith.constant 0 : index
    %193 = vector.load %arg3[%c0_135, %c0_136, %c0_137, %c0_138] : memref<1x1x17x16xbf16, #tpu.memory_space<vmem>>, vector<1x1x17x16xbf16>
    %194 = vector.shape_cast %193 : vector<1x1x17x16xbf16> to vector<17x16xbf16>
    %195 = vector.extract_strided_slice %192 {offsets = [0, 0], sizes = [16, 16], strides = [1, 1]} : vector<17x16xbf16> to vector<16x16xbf16>
    %cst_139 = arith.constant dense<0.000000e+00> : vector<16x128xf32>
    %196 = tpu.matmul %195, %1, %cst_139 {dimension_numbers = #tpu.dot_dimension_numbers<[1], [0], [0], [1], [0, 0, 1, 1], [], []>} : vector<16x16xbf16>, vector<16x128xbf16>, vector<16x128xf32> -> vector<16x128xf32>
    %197 = vector.extract_strided_slice %192 {offsets = [1, 0], sizes = [16, 16], strides = [1, 1]} : vector<17x16xbf16> to vector<16x16xbf16>
    %cst_140 = arith.constant dense<0.000000e+00> : vector<16x128xf32>
    %198 = tpu.matmul %197, %3, %cst_140 {dimension_numbers = #tpu.dot_dimension_numbers<[1], [0], [0], [1], [0, 0, 1, 1], [], []>} : vector<16x16xbf16>, vector<16x128xbf16>, vector<16x128xf32> -> vector<16x128xf32>
    %199 = arith.addf %196, %198 : vector<16x128xf32>
    %200 = vector.extract_strided_slice %194 {offsets = [0, 0], sizes = [16, 16], strides = [1, 1]} : vector<17x16xbf16> to vector<16x16xbf16>
    %cst_141 = arith.constant dense<0.000000e+00> : vector<16x128xf32>
    %201 = tpu.matmul %200, %5, %cst_141 {dimension_numbers = #tpu.dot_dimension_numbers<[1], [0], [0], [1], [0, 0, 1, 1], [], []>} : vector<16x16xbf16>, vector<16x128xbf16>, vector<16x128xf32> -> vector<16x128xf32>
    %202 = arith.addf %199, %201 : vector<16x128xf32>
    %203 = vector.extract_strided_slice %194 {offsets = [1, 0], sizes = [16, 16], strides = [1, 1]} : vector<17x16xbf16> to vector<16x16xbf16>
    %cst_142 = arith.constant dense<0.000000e+00> : vector<16x128xf32>
    %204 = tpu.matmul %203, %7, %cst_142 {dimension_numbers = #tpu.dot_dimension_numbers<[1], [0], [0], [1], [0, 0, 1, 1], [], []>} : vector<16x16xbf16>, vector<16x128xbf16>, vector<16x128xf32> -> vector<16x128xf32>
    %205 = arith.addf %202, %204 : vector<16x128xf32>
    %206 = vector.broadcast %8 : vector<1x128xf32> to vector<16x128xf32>
    %207 = arith.addf %205, %206 : vector<16x128xf32>
    %cst_143 = arith.constant 0.000000e+00 : f32
    %208 = vector.broadcast %cst_143 : f32 to vector<16x128xf32>
    %209 = arith.cmpf oge, %207, %208 : vector<16x128xf32>
    %cst_144 = arith.constant 2.000000e-01 : f32
    %210 = vector.broadcast %cst_144 : f32 to vector<16x128xf32>
    %211 = arith.mulf %210, %207 : vector<16x128xf32>
    %212 = arith.select %209, %207, %211 : vector<16x128xi1>, vector<16x128xf32>
    %213 = arith.truncf %212 : vector<16x128xf32> to vector<16x128xbf16>
    %c0_145 = arith.constant 0 : index
    %c7_146 = arith.constant 7 : index
    %c0_147 = arith.constant 0 : index
    %c0_148 = arith.constant 0 : index
    %214 = vector.load %arg6[%c0_145, %c7_146, %c0_147, %c0_148] : memref<1x8x16x128xbf16, #tpu.memory_space<vmem>>, vector<1x1x16x128xbf16>
    %215 = vector.shape_cast %214 : vector<1x1x16x128xbf16> to vector<16x128xbf16>
    %216 = vector.shape_cast %213 : vector<16x128xbf16> to vector<1x1x16x128xbf16>
    tpu.vector_store %arg6[%c0_145, %c7_146, %c0_147, %c0_148], %216 {strides = array<i32>} : memref<1x8x16x128xbf16, #tpu.memory_space<vmem>>, vector<1x1x16x128xbf16>,
    return
  }
  func.func @transform_0(%arg0: i32, %arg1: i32) -> (i32, i32, i32, i32) {
    %c0_i32 = arith.constant 0 : i32
    %c0_i32_0 = arith.constant 0 : i32
    %c0_i32_1 = arith.constant 0 : i32
    return %arg0, %arg1, %c0_i32, %c0_i32_0 : i32, i32, i32, i32
  }
  func.func @transform_1(%arg0: i32, %arg1: i32) -> (i32, i32, i32, i32) {
    %c1_i32 = arith.constant 1 : i32
    %0 = arith.addi %arg1, %c1_i32 : i32
    %c8_i32 = arith.constant 8 : i32
    %1 = arith.muli %0, %c8_i32 : i32
    %c0_i32 = arith.constant 0 : i32
    %c0_i32_0 = arith.constant 0 : i32
    %c0_i32_1 = arith.constant 0 : i32
    return %arg0, %1, %c0_i32, %c0_i32_0 : i32, i32, i32, i32
  }
  func.func @transform_2(%arg0: i32, %arg1: i32) -> (i32, i32, i32) {
    %c0_i32 = arith.constant 0 : i32
    %c0_i32_0 = arith.constant 0 : i32
    %c0_i32_1 = arith.constant 0 : i32
    %c0_i32_2 = arith.constant 0 : i32
    return %c0_i32, %c0_i32_0, %c0_i32_1 : i32, i32, i32
  }
  func.func @transform_3(%arg0: i32, %arg1: i32) -> (i32, i32) {
    %c0_i32 = arith.constant 0 : i32
    %c0_i32_0 = arith.constant 0 : i32
    %c0_i32_1 = arith.constant 0 : i32
    return %c0_i32, %c0_i32_0 : i32, i32
  }
  func.func @transform_4(%arg0: i32, %arg1: i32) -> (i32, i32, i32, i32) {
    %c0_i32 = arith.constant 0 : i32
    %c0_i32_0 = arith.constant 0 : i32
    %c0_i32_1 = arith.constant 0 : i32
    return %arg0, %arg1, %c0_i32, %c0_i32_0 : i32, i32, i32, i32
  }
}

module attributes {stable_mosaic.version = 11 : i64} {
  func.func @_s2d_conv_kernel(%arg0: i32, %arg1: i32, %arg2: memref<1x8x9x32xbf16, #tpu.memory_space<vmem>>, %arg3: memref<1x1x9x32xbf16, #tpu.memory_space<vmem>>, %arg4: memref<4x32x128xbf16, #tpu.memory_space<vmem>>, %arg5: memref<1x128xf32, #tpu.memory_space<vmem>>, %arg6: memref<1x8x8x128xbf16, #tpu.memory_space<vmem>>) attributes {dimension_semantics = [#tpu.dimension_semantics<parallel>, #tpu.dimension_semantics<parallel>], iteration_bounds = array<i64: 2, 1>, scalar_prefetch = 0 : i64, scratch_operands = 0 : i64, tpu.core_type = #tpu.core_type<tc>, window_params = [{transform_indices = @transform_0, window_bounds = array<i64: 1, 8, 9, 32>}, {transform_indices = @transform_1, window_bounds = array<i64: 1, 1, 9, 32>}, {pipeline_mode = #tpu.pipeline_mode<synchronous>, transform_indices = @transform_2, window_bounds = array<i64: 4, 32, 128>}, {pipeline_mode = #tpu.pipeline_mode<synchronous>, transform_indices = @transform_3, window_bounds = array<i64: 1, 128>}, {transform_indices = @transform_4, window_bounds = array<i64: 1, 8, 8, 128>}]} {
    %c0 = arith.constant 0 : index
    %c0_0 = arith.constant 0 : index
    %c0_1 = arith.constant 0 : index
    %0 = vector.load %arg4[%c0, %c0_0, %c0_1] : memref<4x32x128xbf16, #tpu.memory_space<vmem>>, vector<1x32x128xbf16>
    %1 = vector.shape_cast %0 : vector<1x32x128xbf16> to vector<32x128xbf16>
    %c1 = arith.constant 1 : index
    %c0_2 = arith.constant 0 : index
    %c0_3 = arith.constant 0 : index
    %2 = vector.load %arg4[%c1, %c0_2, %c0_3] : memref<4x32x128xbf16, #tpu.memory_space<vmem>>, vector<1x32x128xbf16>
    %3 = vector.shape_cast %2 : vector<1x32x128xbf16> to vector<32x128xbf16>
    %c2 = arith.constant 2 : index
    %c0_4 = arith.constant 0 : index
    %c0_5 = arith.constant 0 : index
    %4 = vector.load %arg4[%c2, %c0_4, %c0_5] : memref<4x32x128xbf16, #tpu.memory_space<vmem>>, vector<1x32x128xbf16>
    %5 = vector.shape_cast %4 : vector<1x32x128xbf16> to vector<32x128xbf16>
    %c3 = arith.constant 3 : index
    %c0_6 = arith.constant 0 : index
    %c0_7 = arith.constant 0 : index
    %6 = vector.load %arg4[%c3, %c0_6, %c0_7] : memref<4x32x128xbf16, #tpu.memory_space<vmem>>, vector<1x32x128xbf16>
    %7 = vector.shape_cast %6 : vector<1x32x128xbf16> to vector<32x128xbf16>
    %c0_8 = arith.constant 0 : index
    %c0_9 = arith.constant 0 : index
    %8 = vector.load %arg5[%c0_8, %c0_9] : memref<1x128xf32, #tpu.memory_space<vmem>>, vector<1x128xf32>
    %c0_10 = arith.constant 0 : index
    %c0_11 = arith.constant 0 : index
    %c0_12 = arith.constant 0 : index
    %c0_13 = arith.constant 0 : index
    %9 = vector.load %arg2[%c0_10, %c0_11, %c0_12, %c0_13] : memref<1x8x9x32xbf16, #tpu.memory_space<vmem>>, vector<1x1x9x32xbf16>
    %10 = vector.shape_cast %9 : vector<1x1x9x32xbf16> to vector<9x32xbf16>
    %c0_14 = arith.constant 0 : index
    %c1_15 = arith.constant 1 : index
    %c0_16 = arith.constant 0 : index
    %c0_17 = arith.constant 0 : index
    %11 = vector.load %arg2[%c0_14, %c1_15, %c0_16, %c0_17] : memref<1x8x9x32xbf16, #tpu.memory_space<vmem>>, vector<1x1x9x32xbf16>
    %12 = vector.shape_cast %11 : vector<1x1x9x32xbf16> to vector<9x32xbf16>
    %13 = vector.extract_strided_slice %10 {offsets = [0, 0], sizes = [8, 32], strides = [1, 1]} : vector<9x32xbf16> to vector<8x32xbf16>
    %cst = arith.constant dense<0.000000e+00> : vector<8x128xf32>
    %14 = tpu.matmul %13, %1, %cst {dimension_numbers = #tpu.dot_dimension_numbers<[1], [0], [0], [1], [0, 0, 1, 1], [], []>} : vector<8x32xbf16>, vector<32x128xbf16>, vector<8x128xf32> -> vector<8x128xf32>
    %15 = vector.extract_strided_slice %10 {offsets = [1, 0], sizes = [8, 32], strides = [1, 1]} : vector<9x32xbf16> to vector<8x32xbf16>
    %cst_18 = arith.constant dense<0.000000e+00> : vector<8x128xf32>
    %16 = tpu.matmul %15, %3, %cst_18 {dimension_numbers = #tpu.dot_dimension_numbers<[1], [0], [0], [1], [0, 0, 1, 1], [], []>} : vector<8x32xbf16>, vector<32x128xbf16>, vector<8x128xf32> -> vector<8x128xf32>
    %17 = arith.addf %14, %16 : vector<8x128xf32>
    %18 = vector.extract_strided_slice %12 {offsets = [0, 0], sizes = [8, 32], strides = [1, 1]} : vector<9x32xbf16> to vector<8x32xbf16>
    %cst_19 = arith.constant dense<0.000000e+00> : vector<8x128xf32>
    %19 = tpu.matmul %18, %5, %cst_19 {dimension_numbers = #tpu.dot_dimension_numbers<[1], [0], [0], [1], [0, 0, 1, 1], [], []>} : vector<8x32xbf16>, vector<32x128xbf16>, vector<8x128xf32> -> vector<8x128xf32>
    %20 = arith.addf %17, %19 : vector<8x128xf32>
    %21 = vector.extract_strided_slice %12 {offsets = [1, 0], sizes = [8, 32], strides = [1, 1]} : vector<9x32xbf16> to vector<8x32xbf16>
    %cst_20 = arith.constant dense<0.000000e+00> : vector<8x128xf32>
    %22 = tpu.matmul %21, %7, %cst_20 {dimension_numbers = #tpu.dot_dimension_numbers<[1], [0], [0], [1], [0, 0, 1, 1], [], []>} : vector<8x32xbf16>, vector<32x128xbf16>, vector<8x128xf32> -> vector<8x128xf32>
    %23 = arith.addf %20, %22 : vector<8x128xf32>
    %24 = vector.broadcast %8 : vector<1x128xf32> to vector<8x128xf32>
    %25 = arith.addf %23, %24 : vector<8x128xf32>
    %cst_21 = arith.constant 0.000000e+00 : f32
    %26 = vector.broadcast %cst_21 : f32 to vector<8x128xf32>
    %27 = arith.cmpf oge, %25, %26 : vector<8x128xf32>
    %cst_22 = arith.constant 2.000000e-01 : f32
    %28 = vector.broadcast %cst_22 : f32 to vector<8x128xf32>
    %29 = arith.mulf %28, %25 : vector<8x128xf32>
    %30 = arith.select %27, %25, %29 : vector<8x128xi1>, vector<8x128xf32>
    %31 = arith.truncf %30 : vector<8x128xf32> to vector<8x128xbf16>
    %c0_23 = arith.constant 0 : index
    %c0_24 = arith.constant 0 : index
    %c0_25 = arith.constant 0 : index
    %c0_26 = arith.constant 0 : index
    %32 = vector.load %arg6[%c0_23, %c0_24, %c0_25, %c0_26] : memref<1x8x8x128xbf16, #tpu.memory_space<vmem>>, vector<1x1x8x128xbf16>
    %33 = vector.shape_cast %32 : vector<1x1x8x128xbf16> to vector<8x128xbf16>
    %34 = vector.shape_cast %31 : vector<8x128xbf16> to vector<1x1x8x128xbf16>
    tpu.vector_store %arg6[%c0_23, %c0_24, %c0_25, %c0_26], %34 {strides = array<i32>} : memref<1x8x8x128xbf16, #tpu.memory_space<vmem>>, vector<1x1x8x128xbf16>,
    %c0_27 = arith.constant 0 : index
    %c1_28 = arith.constant 1 : index
    %c0_29 = arith.constant 0 : index
    %c0_30 = arith.constant 0 : index
    %35 = vector.load %arg2[%c0_27, %c1_28, %c0_29, %c0_30] : memref<1x8x9x32xbf16, #tpu.memory_space<vmem>>, vector<1x1x9x32xbf16>
    %36 = vector.shape_cast %35 : vector<1x1x9x32xbf16> to vector<9x32xbf16>
    %c0_31 = arith.constant 0 : index
    %c2_32 = arith.constant 2 : index
    %c0_33 = arith.constant 0 : index
    %c0_34 = arith.constant 0 : index
    %37 = vector.load %arg2[%c0_31, %c2_32, %c0_33, %c0_34] : memref<1x8x9x32xbf16, #tpu.memory_space<vmem>>, vector<1x1x9x32xbf16>
    %38 = vector.shape_cast %37 : vector<1x1x9x32xbf16> to vector<9x32xbf16>
    %39 = vector.extract_strided_slice %36 {offsets = [0, 0], sizes = [8, 32], strides = [1, 1]} : vector<9x32xbf16> to vector<8x32xbf16>
    %cst_35 = arith.constant dense<0.000000e+00> : vector<8x128xf32>
    %40 = tpu.matmul %39, %1, %cst_35 {dimension_numbers = #tpu.dot_dimension_numbers<[1], [0], [0], [1], [0, 0, 1, 1], [], []>} : vector<8x32xbf16>, vector<32x128xbf16>, vector<8x128xf32> -> vector<8x128xf32>
    %41 = vector.extract_strided_slice %36 {offsets = [1, 0], sizes = [8, 32], strides = [1, 1]} : vector<9x32xbf16> to vector<8x32xbf16>
    %cst_36 = arith.constant dense<0.000000e+00> : vector<8x128xf32>
    %42 = tpu.matmul %41, %3, %cst_36 {dimension_numbers = #tpu.dot_dimension_numbers<[1], [0], [0], [1], [0, 0, 1, 1], [], []>} : vector<8x32xbf16>, vector<32x128xbf16>, vector<8x128xf32> -> vector<8x128xf32>
    %43 = arith.addf %40, %42 : vector<8x128xf32>
    %44 = vector.extract_strided_slice %38 {offsets = [0, 0], sizes = [8, 32], strides = [1, 1]} : vector<9x32xbf16> to vector<8x32xbf16>
    %cst_37 = arith.constant dense<0.000000e+00> : vector<8x128xf32>
    %45 = tpu.matmul %44, %5, %cst_37 {dimension_numbers = #tpu.dot_dimension_numbers<[1], [0], [0], [1], [0, 0, 1, 1], [], []>} : vector<8x32xbf16>, vector<32x128xbf16>, vector<8x128xf32> -> vector<8x128xf32>
    %46 = arith.addf %43, %45 : vector<8x128xf32>
    %47 = vector.extract_strided_slice %38 {offsets = [1, 0], sizes = [8, 32], strides = [1, 1]} : vector<9x32xbf16> to vector<8x32xbf16>
    %cst_38 = arith.constant dense<0.000000e+00> : vector<8x128xf32>
    %48 = tpu.matmul %47, %7, %cst_38 {dimension_numbers = #tpu.dot_dimension_numbers<[1], [0], [0], [1], [0, 0, 1, 1], [], []>} : vector<8x32xbf16>, vector<32x128xbf16>, vector<8x128xf32> -> vector<8x128xf32>
    %49 = arith.addf %46, %48 : vector<8x128xf32>
    %50 = vector.broadcast %8 : vector<1x128xf32> to vector<8x128xf32>
    %51 = arith.addf %49, %50 : vector<8x128xf32>
    %cst_39 = arith.constant 0.000000e+00 : f32
    %52 = vector.broadcast %cst_39 : f32 to vector<8x128xf32>
    %53 = arith.cmpf oge, %51, %52 : vector<8x128xf32>
    %cst_40 = arith.constant 2.000000e-01 : f32
    %54 = vector.broadcast %cst_40 : f32 to vector<8x128xf32>
    %55 = arith.mulf %54, %51 : vector<8x128xf32>
    %56 = arith.select %53, %51, %55 : vector<8x128xi1>, vector<8x128xf32>
    %57 = arith.truncf %56 : vector<8x128xf32> to vector<8x128xbf16>
    %c0_41 = arith.constant 0 : index
    %c1_42 = arith.constant 1 : index
    %c0_43 = arith.constant 0 : index
    %c0_44 = arith.constant 0 : index
    %58 = vector.load %arg6[%c0_41, %c1_42, %c0_43, %c0_44] : memref<1x8x8x128xbf16, #tpu.memory_space<vmem>>, vector<1x1x8x128xbf16>
    %59 = vector.shape_cast %58 : vector<1x1x8x128xbf16> to vector<8x128xbf16>
    %60 = vector.shape_cast %57 : vector<8x128xbf16> to vector<1x1x8x128xbf16>
    tpu.vector_store %arg6[%c0_41, %c1_42, %c0_43, %c0_44], %60 {strides = array<i32>} : memref<1x8x8x128xbf16, #tpu.memory_space<vmem>>, vector<1x1x8x128xbf16>,
    %c0_45 = arith.constant 0 : index
    %c2_46 = arith.constant 2 : index
    %c0_47 = arith.constant 0 : index
    %c0_48 = arith.constant 0 : index
    %61 = vector.load %arg2[%c0_45, %c2_46, %c0_47, %c0_48] : memref<1x8x9x32xbf16, #tpu.memory_space<vmem>>, vector<1x1x9x32xbf16>
    %62 = vector.shape_cast %61 : vector<1x1x9x32xbf16> to vector<9x32xbf16>
    %c0_49 = arith.constant 0 : index
    %c3_50 = arith.constant 3 : index
    %c0_51 = arith.constant 0 : index
    %c0_52 = arith.constant 0 : index
    %63 = vector.load %arg2[%c0_49, %c3_50, %c0_51, %c0_52] : memref<1x8x9x32xbf16, #tpu.memory_space<vmem>>, vector<1x1x9x32xbf16>
    %64 = vector.shape_cast %63 : vector<1x1x9x32xbf16> to vector<9x32xbf16>
    %65 = vector.extract_strided_slice %62 {offsets = [0, 0], sizes = [8, 32], strides = [1, 1]} : vector<9x32xbf16> to vector<8x32xbf16>
    %cst_53 = arith.constant dense<0.000000e+00> : vector<8x128xf32>
    %66 = tpu.matmul %65, %1, %cst_53 {dimension_numbers = #tpu.dot_dimension_numbers<[1], [0], [0], [1], [0, 0, 1, 1], [], []>} : vector<8x32xbf16>, vector<32x128xbf16>, vector<8x128xf32> -> vector<8x128xf32>
    %67 = vector.extract_strided_slice %62 {offsets = [1, 0], sizes = [8, 32], strides = [1, 1]} : vector<9x32xbf16> to vector<8x32xbf16>
    %cst_54 = arith.constant dense<0.000000e+00> : vector<8x128xf32>
    %68 = tpu.matmul %67, %3, %cst_54 {dimension_numbers = #tpu.dot_dimension_numbers<[1], [0], [0], [1], [0, 0, 1, 1], [], []>} : vector<8x32xbf16>, vector<32x128xbf16>, vector<8x128xf32> -> vector<8x128xf32>
    %69 = arith.addf %66, %68 : vector<8x128xf32>
    %70 = vector.extract_strided_slice %64 {offsets = [0, 0], sizes = [8, 32], strides = [1, 1]} : vector<9x32xbf16> to vector<8x32xbf16>
    %cst_55 = arith.constant dense<0.000000e+00> : vector<8x128xf32>
    %71 = tpu.matmul %70, %5, %cst_55 {dimension_numbers = #tpu.dot_dimension_numbers<[1], [0], [0], [1], [0, 0, 1, 1], [], []>} : vector<8x32xbf16>, vector<32x128xbf16>, vector<8x128xf32> -> vector<8x128xf32>
    %72 = arith.addf %69, %71 : vector<8x128xf32>
    %73 = vector.extract_strided_slice %64 {offsets = [1, 0], sizes = [8, 32], strides = [1, 1]} : vector<9x32xbf16> to vector<8x32xbf16>
    %cst_56 = arith.constant dense<0.000000e+00> : vector<8x128xf32>
    %74 = tpu.matmul %73, %7, %cst_56 {dimension_numbers = #tpu.dot_dimension_numbers<[1], [0], [0], [1], [0, 0, 1, 1], [], []>} : vector<8x32xbf16>, vector<32x128xbf16>, vector<8x128xf32> -> vector<8x128xf32>
    %75 = arith.addf %72, %74 : vector<8x128xf32>
    %76 = vector.broadcast %8 : vector<1x128xf32> to vector<8x128xf32>
    %77 = arith.addf %75, %76 : vector<8x128xf32>
    %cst_57 = arith.constant 0.000000e+00 : f32
    %78 = vector.broadcast %cst_57 : f32 to vector<8x128xf32>
    %79 = arith.cmpf oge, %77, %78 : vector<8x128xf32>
    %cst_58 = arith.constant 2.000000e-01 : f32
    %80 = vector.broadcast %cst_58 : f32 to vector<8x128xf32>
    %81 = arith.mulf %80, %77 : vector<8x128xf32>
    %82 = arith.select %79, %77, %81 : vector<8x128xi1>, vector<8x128xf32>
    %83 = arith.truncf %82 : vector<8x128xf32> to vector<8x128xbf16>
    %c0_59 = arith.constant 0 : index
    %c2_60 = arith.constant 2 : index
    %c0_61 = arith.constant 0 : index
    %c0_62 = arith.constant 0 : index
    %84 = vector.load %arg6[%c0_59, %c2_60, %c0_61, %c0_62] : memref<1x8x8x128xbf16, #tpu.memory_space<vmem>>, vector<1x1x8x128xbf16>
    %85 = vector.shape_cast %84 : vector<1x1x8x128xbf16> to vector<8x128xbf16>
    %86 = vector.shape_cast %83 : vector<8x128xbf16> to vector<1x1x8x128xbf16>
    tpu.vector_store %arg6[%c0_59, %c2_60, %c0_61, %c0_62], %86 {strides = array<i32>} : memref<1x8x8x128xbf16, #tpu.memory_space<vmem>>, vector<1x1x8x128xbf16>,
    %c0_63 = arith.constant 0 : index
    %c3_64 = arith.constant 3 : index
    %c0_65 = arith.constant 0 : index
    %c0_66 = arith.constant 0 : index
    %87 = vector.load %arg2[%c0_63, %c3_64, %c0_65, %c0_66] : memref<1x8x9x32xbf16, #tpu.memory_space<vmem>>, vector<1x1x9x32xbf16>
    %88 = vector.shape_cast %87 : vector<1x1x9x32xbf16> to vector<9x32xbf16>
    %c0_67 = arith.constant 0 : index
    %c4 = arith.constant 4 : index
    %c0_68 = arith.constant 0 : index
    %c0_69 = arith.constant 0 : index
    %89 = vector.load %arg2[%c0_67, %c4, %c0_68, %c0_69] : memref<1x8x9x32xbf16, #tpu.memory_space<vmem>>, vector<1x1x9x32xbf16>
    %90 = vector.shape_cast %89 : vector<1x1x9x32xbf16> to vector<9x32xbf16>
    %91 = vector.extract_strided_slice %88 {offsets = [0, 0], sizes = [8, 32], strides = [1, 1]} : vector<9x32xbf16> to vector<8x32xbf16>
    %cst_70 = arith.constant dense<0.000000e+00> : vector<8x128xf32>
    %92 = tpu.matmul %91, %1, %cst_70 {dimension_numbers = #tpu.dot_dimension_numbers<[1], [0], [0], [1], [0, 0, 1, 1], [], []>} : vector<8x32xbf16>, vector<32x128xbf16>, vector<8x128xf32> -> vector<8x128xf32>
    %93 = vector.extract_strided_slice %88 {offsets = [1, 0], sizes = [8, 32], strides = [1, 1]} : vector<9x32xbf16> to vector<8x32xbf16>
    %cst_71 = arith.constant dense<0.000000e+00> : vector<8x128xf32>
    %94 = tpu.matmul %93, %3, %cst_71 {dimension_numbers = #tpu.dot_dimension_numbers<[1], [0], [0], [1], [0, 0, 1, 1], [], []>} : vector<8x32xbf16>, vector<32x128xbf16>, vector<8x128xf32> -> vector<8x128xf32>
    %95 = arith.addf %92, %94 : vector<8x128xf32>
    %96 = vector.extract_strided_slice %90 {offsets = [0, 0], sizes = [8, 32], strides = [1, 1]} : vector<9x32xbf16> to vector<8x32xbf16>
    %cst_72 = arith.constant dense<0.000000e+00> : vector<8x128xf32>
    %97 = tpu.matmul %96, %5, %cst_72 {dimension_numbers = #tpu.dot_dimension_numbers<[1], [0], [0], [1], [0, 0, 1, 1], [], []>} : vector<8x32xbf16>, vector<32x128xbf16>, vector<8x128xf32> -> vector<8x128xf32>
    %98 = arith.addf %95, %97 : vector<8x128xf32>
    %99 = vector.extract_strided_slice %90 {offsets = [1, 0], sizes = [8, 32], strides = [1, 1]} : vector<9x32xbf16> to vector<8x32xbf16>
    %cst_73 = arith.constant dense<0.000000e+00> : vector<8x128xf32>
    %100 = tpu.matmul %99, %7, %cst_73 {dimension_numbers = #tpu.dot_dimension_numbers<[1], [0], [0], [1], [0, 0, 1, 1], [], []>} : vector<8x32xbf16>, vector<32x128xbf16>, vector<8x128xf32> -> vector<8x128xf32>
    %101 = arith.addf %98, %100 : vector<8x128xf32>
    %102 = vector.broadcast %8 : vector<1x128xf32> to vector<8x128xf32>
    %103 = arith.addf %101, %102 : vector<8x128xf32>
    %cst_74 = arith.constant 0.000000e+00 : f32
    %104 = vector.broadcast %cst_74 : f32 to vector<8x128xf32>
    %105 = arith.cmpf oge, %103, %104 : vector<8x128xf32>
    %cst_75 = arith.constant 2.000000e-01 : f32
    %106 = vector.broadcast %cst_75 : f32 to vector<8x128xf32>
    %107 = arith.mulf %106, %103 : vector<8x128xf32>
    %108 = arith.select %105, %103, %107 : vector<8x128xi1>, vector<8x128xf32>
    %109 = arith.truncf %108 : vector<8x128xf32> to vector<8x128xbf16>
    %c0_76 = arith.constant 0 : index
    %c3_77 = arith.constant 3 : index
    %c0_78 = arith.constant 0 : index
    %c0_79 = arith.constant 0 : index
    %110 = vector.load %arg6[%c0_76, %c3_77, %c0_78, %c0_79] : memref<1x8x8x128xbf16, #tpu.memory_space<vmem>>, vector<1x1x8x128xbf16>
    %111 = vector.shape_cast %110 : vector<1x1x8x128xbf16> to vector<8x128xbf16>
    %112 = vector.shape_cast %109 : vector<8x128xbf16> to vector<1x1x8x128xbf16>
    tpu.vector_store %arg6[%c0_76, %c3_77, %c0_78, %c0_79], %112 {strides = array<i32>} : memref<1x8x8x128xbf16, #tpu.memory_space<vmem>>, vector<1x1x8x128xbf16>,
    %c0_80 = arith.constant 0 : index
    %c4_81 = arith.constant 4 : index
    %c0_82 = arith.constant 0 : index
    %c0_83 = arith.constant 0 : index
    %113 = vector.load %arg2[%c0_80, %c4_81, %c0_82, %c0_83] : memref<1x8x9x32xbf16, #tpu.memory_space<vmem>>, vector<1x1x9x32xbf16>
    %114 = vector.shape_cast %113 : vector<1x1x9x32xbf16> to vector<9x32xbf16>
    %c0_84 = arith.constant 0 : index
    %c5 = arith.constant 5 : index
    %c0_85 = arith.constant 0 : index
    %c0_86 = arith.constant 0 : index
    %115 = vector.load %arg2[%c0_84, %c5, %c0_85, %c0_86] : memref<1x8x9x32xbf16, #tpu.memory_space<vmem>>, vector<1x1x9x32xbf16>
    %116 = vector.shape_cast %115 : vector<1x1x9x32xbf16> to vector<9x32xbf16>
    %117 = vector.extract_strided_slice %114 {offsets = [0, 0], sizes = [8, 32], strides = [1, 1]} : vector<9x32xbf16> to vector<8x32xbf16>
    %cst_87 = arith.constant dense<0.000000e+00> : vector<8x128xf32>
    %118 = tpu.matmul %117, %1, %cst_87 {dimension_numbers = #tpu.dot_dimension_numbers<[1], [0], [0], [1], [0, 0, 1, 1], [], []>} : vector<8x32xbf16>, vector<32x128xbf16>, vector<8x128xf32> -> vector<8x128xf32>
    %119 = vector.extract_strided_slice %114 {offsets = [1, 0], sizes = [8, 32], strides = [1, 1]} : vector<9x32xbf16> to vector<8x32xbf16>
    %cst_88 = arith.constant dense<0.000000e+00> : vector<8x128xf32>
    %120 = tpu.matmul %119, %3, %cst_88 {dimension_numbers = #tpu.dot_dimension_numbers<[1], [0], [0], [1], [0, 0, 1, 1], [], []>} : vector<8x32xbf16>, vector<32x128xbf16>, vector<8x128xf32> -> vector<8x128xf32>
    %121 = arith.addf %118, %120 : vector<8x128xf32>
    %122 = vector.extract_strided_slice %116 {offsets = [0, 0], sizes = [8, 32], strides = [1, 1]} : vector<9x32xbf16> to vector<8x32xbf16>
    %cst_89 = arith.constant dense<0.000000e+00> : vector<8x128xf32>
    %123 = tpu.matmul %122, %5, %cst_89 {dimension_numbers = #tpu.dot_dimension_numbers<[1], [0], [0], [1], [0, 0, 1, 1], [], []>} : vector<8x32xbf16>, vector<32x128xbf16>, vector<8x128xf32> -> vector<8x128xf32>
    %124 = arith.addf %121, %123 : vector<8x128xf32>
    %125 = vector.extract_strided_slice %116 {offsets = [1, 0], sizes = [8, 32], strides = [1, 1]} : vector<9x32xbf16> to vector<8x32xbf16>
    %cst_90 = arith.constant dense<0.000000e+00> : vector<8x128xf32>
    %126 = tpu.matmul %125, %7, %cst_90 {dimension_numbers = #tpu.dot_dimension_numbers<[1], [0], [0], [1], [0, 0, 1, 1], [], []>} : vector<8x32xbf16>, vector<32x128xbf16>, vector<8x128xf32> -> vector<8x128xf32>
    %127 = arith.addf %124, %126 : vector<8x128xf32>
    %128 = vector.broadcast %8 : vector<1x128xf32> to vector<8x128xf32>
    %129 = arith.addf %127, %128 : vector<8x128xf32>
    %cst_91 = arith.constant 0.000000e+00 : f32
    %130 = vector.broadcast %cst_91 : f32 to vector<8x128xf32>
    %131 = arith.cmpf oge, %129, %130 : vector<8x128xf32>
    %cst_92 = arith.constant 2.000000e-01 : f32
    %132 = vector.broadcast %cst_92 : f32 to vector<8x128xf32>
    %133 = arith.mulf %132, %129 : vector<8x128xf32>
    %134 = arith.select %131, %129, %133 : vector<8x128xi1>, vector<8x128xf32>
    %135 = arith.truncf %134 : vector<8x128xf32> to vector<8x128xbf16>
    %c0_93 = arith.constant 0 : index
    %c4_94 = arith.constant 4 : index
    %c0_95 = arith.constant 0 : index
    %c0_96 = arith.constant 0 : index
    %136 = vector.load %arg6[%c0_93, %c4_94, %c0_95, %c0_96] : memref<1x8x8x128xbf16, #tpu.memory_space<vmem>>, vector<1x1x8x128xbf16>
    %137 = vector.shape_cast %136 : vector<1x1x8x128xbf16> to vector<8x128xbf16>
    %138 = vector.shape_cast %135 : vector<8x128xbf16> to vector<1x1x8x128xbf16>
    tpu.vector_store %arg6[%c0_93, %c4_94, %c0_95, %c0_96], %138 {strides = array<i32>} : memref<1x8x8x128xbf16, #tpu.memory_space<vmem>>, vector<1x1x8x128xbf16>,
    %c0_97 = arith.constant 0 : index
    %c5_98 = arith.constant 5 : index
    %c0_99 = arith.constant 0 : index
    %c0_100 = arith.constant 0 : index
    %139 = vector.load %arg2[%c0_97, %c5_98, %c0_99, %c0_100] : memref<1x8x9x32xbf16, #tpu.memory_space<vmem>>, vector<1x1x9x32xbf16>
    %140 = vector.shape_cast %139 : vector<1x1x9x32xbf16> to vector<9x32xbf16>
    %c0_101 = arith.constant 0 : index
    %c6 = arith.constant 6 : index
    %c0_102 = arith.constant 0 : index
    %c0_103 = arith.constant 0 : index
    %141 = vector.load %arg2[%c0_101, %c6, %c0_102, %c0_103] : memref<1x8x9x32xbf16, #tpu.memory_space<vmem>>, vector<1x1x9x32xbf16>
    %142 = vector.shape_cast %141 : vector<1x1x9x32xbf16> to vector<9x32xbf16>
    %143 = vector.extract_strided_slice %140 {offsets = [0, 0], sizes = [8, 32], strides = [1, 1]} : vector<9x32xbf16> to vector<8x32xbf16>
    %cst_104 = arith.constant dense<0.000000e+00> : vector<8x128xf32>
    %144 = tpu.matmul %143, %1, %cst_104 {dimension_numbers = #tpu.dot_dimension_numbers<[1], [0], [0], [1], [0, 0, 1, 1], [], []>} : vector<8x32xbf16>, vector<32x128xbf16>, vector<8x128xf32> -> vector<8x128xf32>
    %145 = vector.extract_strided_slice %140 {offsets = [1, 0], sizes = [8, 32], strides = [1, 1]} : vector<9x32xbf16> to vector<8x32xbf16>
    %cst_105 = arith.constant dense<0.000000e+00> : vector<8x128xf32>
    %146 = tpu.matmul %145, %3, %cst_105 {dimension_numbers = #tpu.dot_dimension_numbers<[1], [0], [0], [1], [0, 0, 1, 1], [], []>} : vector<8x32xbf16>, vector<32x128xbf16>, vector<8x128xf32> -> vector<8x128xf32>
    %147 = arith.addf %144, %146 : vector<8x128xf32>
    %148 = vector.extract_strided_slice %142 {offsets = [0, 0], sizes = [8, 32], strides = [1, 1]} : vector<9x32xbf16> to vector<8x32xbf16>
    %cst_106 = arith.constant dense<0.000000e+00> : vector<8x128xf32>
    %149 = tpu.matmul %148, %5, %cst_106 {dimension_numbers = #tpu.dot_dimension_numbers<[1], [0], [0], [1], [0, 0, 1, 1], [], []>} : vector<8x32xbf16>, vector<32x128xbf16>, vector<8x128xf32> -> vector<8x128xf32>
    %150 = arith.addf %147, %149 : vector<8x128xf32>
    %151 = vector.extract_strided_slice %142 {offsets = [1, 0], sizes = [8, 32], strides = [1, 1]} : vector<9x32xbf16> to vector<8x32xbf16>
    %cst_107 = arith.constant dense<0.000000e+00> : vector<8x128xf32>
    %152 = tpu.matmul %151, %7, %cst_107 {dimension_numbers = #tpu.dot_dimension_numbers<[1], [0], [0], [1], [0, 0, 1, 1], [], []>} : vector<8x32xbf16>, vector<32x128xbf16>, vector<8x128xf32> -> vector<8x128xf32>
    %153 = arith.addf %150, %152 : vector<8x128xf32>
    %154 = vector.broadcast %8 : vector<1x128xf32> to vector<8x128xf32>
    %155 = arith.addf %153, %154 : vector<8x128xf32>
    %cst_108 = arith.constant 0.000000e+00 : f32
    %156 = vector.broadcast %cst_108 : f32 to vector<8x128xf32>
    %157 = arith.cmpf oge, %155, %156 : vector<8x128xf32>
    %cst_109 = arith.constant 2.000000e-01 : f32
    %158 = vector.broadcast %cst_109 : f32 to vector<8x128xf32>
    %159 = arith.mulf %158, %155 : vector<8x128xf32>
    %160 = arith.select %157, %155, %159 : vector<8x128xi1>, vector<8x128xf32>
    %161 = arith.truncf %160 : vector<8x128xf32> to vector<8x128xbf16>
    %c0_110 = arith.constant 0 : index
    %c5_111 = arith.constant 5 : index
    %c0_112 = arith.constant 0 : index
    %c0_113 = arith.constant 0 : index
    %162 = vector.load %arg6[%c0_110, %c5_111, %c0_112, %c0_113] : memref<1x8x8x128xbf16, #tpu.memory_space<vmem>>, vector<1x1x8x128xbf16>
    %163 = vector.shape_cast %162 : vector<1x1x8x128xbf16> to vector<8x128xbf16>
    %164 = vector.shape_cast %161 : vector<8x128xbf16> to vector<1x1x8x128xbf16>
    tpu.vector_store %arg6[%c0_110, %c5_111, %c0_112, %c0_113], %164 {strides = array<i32>} : memref<1x8x8x128xbf16, #tpu.memory_space<vmem>>, vector<1x1x8x128xbf16>,
    %c0_114 = arith.constant 0 : index
    %c6_115 = arith.constant 6 : index
    %c0_116 = arith.constant 0 : index
    %c0_117 = arith.constant 0 : index
    %165 = vector.load %arg2[%c0_114, %c6_115, %c0_116, %c0_117] : memref<1x8x9x32xbf16, #tpu.memory_space<vmem>>, vector<1x1x9x32xbf16>
    %166 = vector.shape_cast %165 : vector<1x1x9x32xbf16> to vector<9x32xbf16>
    %c0_118 = arith.constant 0 : index
    %c7 = arith.constant 7 : index
    %c0_119 = arith.constant 0 : index
    %c0_120 = arith.constant 0 : index
    %167 = vector.load %arg2[%c0_118, %c7, %c0_119, %c0_120] : memref<1x8x9x32xbf16, #tpu.memory_space<vmem>>, vector<1x1x9x32xbf16>
    %168 = vector.shape_cast %167 : vector<1x1x9x32xbf16> to vector<9x32xbf16>
    %169 = vector.extract_strided_slice %166 {offsets = [0, 0], sizes = [8, 32], strides = [1, 1]} : vector<9x32xbf16> to vector<8x32xbf16>
    %cst_121 = arith.constant dense<0.000000e+00> : vector<8x128xf32>
    %170 = tpu.matmul %169, %1, %cst_121 {dimension_numbers = #tpu.dot_dimension_numbers<[1], [0], [0], [1], [0, 0, 1, 1], [], []>} : vector<8x32xbf16>, vector<32x128xbf16>, vector<8x128xf32> -> vector<8x128xf32>
    %171 = vector.extract_strided_slice %166 {offsets = [1, 0], sizes = [8, 32], strides = [1, 1]} : vector<9x32xbf16> to vector<8x32xbf16>
    %cst_122 = arith.constant dense<0.000000e+00> : vector<8x128xf32>
    %172 = tpu.matmul %171, %3, %cst_122 {dimension_numbers = #tpu.dot_dimension_numbers<[1], [0], [0], [1], [0, 0, 1, 1], [], []>} : vector<8x32xbf16>, vector<32x128xbf16>, vector<8x128xf32> -> vector<8x128xf32>
    %173 = arith.addf %170, %172 : vector<8x128xf32>
    %174 = vector.extract_strided_slice %168 {offsets = [0, 0], sizes = [8, 32], strides = [1, 1]} : vector<9x32xbf16> to vector<8x32xbf16>
    %cst_123 = arith.constant dense<0.000000e+00> : vector<8x128xf32>
    %175 = tpu.matmul %174, %5, %cst_123 {dimension_numbers = #tpu.dot_dimension_numbers<[1], [0], [0], [1], [0, 0, 1, 1], [], []>} : vector<8x32xbf16>, vector<32x128xbf16>, vector<8x128xf32> -> vector<8x128xf32>
    %176 = arith.addf %173, %175 : vector<8x128xf32>
    %177 = vector.extract_strided_slice %168 {offsets = [1, 0], sizes = [8, 32], strides = [1, 1]} : vector<9x32xbf16> to vector<8x32xbf16>
    %cst_124 = arith.constant dense<0.000000e+00> : vector<8x128xf32>
    %178 = tpu.matmul %177, %7, %cst_124 {dimension_numbers = #tpu.dot_dimension_numbers<[1], [0], [0], [1], [0, 0, 1, 1], [], []>} : vector<8x32xbf16>, vector<32x128xbf16>, vector<8x128xf32> -> vector<8x128xf32>
    %179 = arith.addf %176, %178 : vector<8x128xf32>
    %180 = vector.broadcast %8 : vector<1x128xf32> to vector<8x128xf32>
    %181 = arith.addf %179, %180 : vector<8x128xf32>
    %cst_125 = arith.constant 0.000000e+00 : f32
    %182 = vector.broadcast %cst_125 : f32 to vector<8x128xf32>
    %183 = arith.cmpf oge, %181, %182 : vector<8x128xf32>
    %cst_126 = arith.constant 2.000000e-01 : f32
    %184 = vector.broadcast %cst_126 : f32 to vector<8x128xf32>
    %185 = arith.mulf %184, %181 : vector<8x128xf32>
    %186 = arith.select %183, %181, %185 : vector<8x128xi1>, vector<8x128xf32>
    %187 = arith.truncf %186 : vector<8x128xf32> to vector<8x128xbf16>
    %c0_127 = arith.constant 0 : index
    %c6_128 = arith.constant 6 : index
    %c0_129 = arith.constant 0 : index
    %c0_130 = arith.constant 0 : index
    %188 = vector.load %arg6[%c0_127, %c6_128, %c0_129, %c0_130] : memref<1x8x8x128xbf16, #tpu.memory_space<vmem>>, vector<1x1x8x128xbf16>
    %189 = vector.shape_cast %188 : vector<1x1x8x128xbf16> to vector<8x128xbf16>
    %190 = vector.shape_cast %187 : vector<8x128xbf16> to vector<1x1x8x128xbf16>
    tpu.vector_store %arg6[%c0_127, %c6_128, %c0_129, %c0_130], %190 {strides = array<i32>} : memref<1x8x8x128xbf16, #tpu.memory_space<vmem>>, vector<1x1x8x128xbf16>,
    %c0_131 = arith.constant 0 : index
    %c7_132 = arith.constant 7 : index
    %c0_133 = arith.constant 0 : index
    %c0_134 = arith.constant 0 : index
    %191 = vector.load %arg2[%c0_131, %c7_132, %c0_133, %c0_134] : memref<1x8x9x32xbf16, #tpu.memory_space<vmem>>, vector<1x1x9x32xbf16>
    %192 = vector.shape_cast %191 : vector<1x1x9x32xbf16> to vector<9x32xbf16>
    %c0_135 = arith.constant 0 : index
    %c0_136 = arith.constant 0 : index
    %c0_137 = arith.constant 0 : index
    %c0_138 = arith.constant 0 : index
    %193 = vector.load %arg3[%c0_135, %c0_136, %c0_137, %c0_138] : memref<1x1x9x32xbf16, #tpu.memory_space<vmem>>, vector<1x1x9x32xbf16>
    %194 = vector.shape_cast %193 : vector<1x1x9x32xbf16> to vector<9x32xbf16>
    %195 = vector.extract_strided_slice %192 {offsets = [0, 0], sizes = [8, 32], strides = [1, 1]} : vector<9x32xbf16> to vector<8x32xbf16>
    %cst_139 = arith.constant dense<0.000000e+00> : vector<8x128xf32>
    %196 = tpu.matmul %195, %1, %cst_139 {dimension_numbers = #tpu.dot_dimension_numbers<[1], [0], [0], [1], [0, 0, 1, 1], [], []>} : vector<8x32xbf16>, vector<32x128xbf16>, vector<8x128xf32> -> vector<8x128xf32>
    %197 = vector.extract_strided_slice %192 {offsets = [1, 0], sizes = [8, 32], strides = [1, 1]} : vector<9x32xbf16> to vector<8x32xbf16>
    %cst_140 = arith.constant dense<0.000000e+00> : vector<8x128xf32>
    %198 = tpu.matmul %197, %3, %cst_140 {dimension_numbers = #tpu.dot_dimension_numbers<[1], [0], [0], [1], [0, 0, 1, 1], [], []>} : vector<8x32xbf16>, vector<32x128xbf16>, vector<8x128xf32> -> vector<8x128xf32>
    %199 = arith.addf %196, %198 : vector<8x128xf32>
    %200 = vector.extract_strided_slice %194 {offsets = [0, 0], sizes = [8, 32], strides = [1, 1]} : vector<9x32xbf16> to vector<8x32xbf16>
    %cst_141 = arith.constant dense<0.000000e+00> : vector<8x128xf32>
    %201 = tpu.matmul %200, %5, %cst_141 {dimension_numbers = #tpu.dot_dimension_numbers<[1], [0], [0], [1], [0, 0, 1, 1], [], []>} : vector<8x32xbf16>, vector<32x128xbf16>, vector<8x128xf32> -> vector<8x128xf32>
    %202 = arith.addf %199, %201 : vector<8x128xf32>
    %203 = vector.extract_strided_slice %194 {offsets = [1, 0], sizes = [8, 32], strides = [1, 1]} : vector<9x32xbf16> to vector<8x32xbf16>
    %cst_142 = arith.constant dense<0.000000e+00> : vector<8x128xf32>
    %204 = tpu.matmul %203, %7, %cst_142 {dimension_numbers = #tpu.dot_dimension_numbers<[1], [0], [0], [1], [0, 0, 1, 1], [], []>} : vector<8x32xbf16>, vector<32x128xbf16>, vector<8x128xf32> -> vector<8x128xf32>
    %205 = arith.addf %202, %204 : vector<8x128xf32>
    %206 = vector.broadcast %8 : vector<1x128xf32> to vector<8x128xf32>
    %207 = arith.addf %205, %206 : vector<8x128xf32>
    %cst_143 = arith.constant 0.000000e+00 : f32
    %208 = vector.broadcast %cst_143 : f32 to vector<8x128xf32>
    %209 = arith.cmpf oge, %207, %208 : vector<8x128xf32>
    %cst_144 = arith.constant 2.000000e-01 : f32
    %210 = vector.broadcast %cst_144 : f32 to vector<8x128xf32>
    %211 = arith.mulf %210, %207 : vector<8x128xf32>
    %212 = arith.select %209, %207, %211 : vector<8x128xi1>, vector<8x128xf32>
    %213 = arith.truncf %212 : vector<8x128xf32> to vector<8x128xbf16>
    %c0_145 = arith.constant 0 : index
    %c7_146 = arith.constant 7 : index
    %c0_147 = arith.constant 0 : index
    %c0_148 = arith.constant 0 : index
    %214 = vector.load %arg6[%c0_145, %c7_146, %c0_147, %c0_148] : memref<1x8x8x128xbf16, #tpu.memory_space<vmem>>, vector<1x1x8x128xbf16>
    %215 = vector.shape_cast %214 : vector<1x1x8x128xbf16> to vector<8x128xbf16>
    %216 = vector.shape_cast %213 : vector<8x128xbf16> to vector<1x1x8x128xbf16>
    tpu.vector_store %arg6[%c0_145, %c7_146, %c0_147, %c0_148], %216 {strides = array<i32>} : memref<1x8x8x128xbf16, #tpu.memory_space<vmem>>, vector<1x1x8x128xbf16>,
    return
  }
  func.func @transform_0(%arg0: i32, %arg1: i32) -> (i32, i32, i32, i32) {
    %c0_i32 = arith.constant 0 : i32
    %c0_i32_0 = arith.constant 0 : i32
    %c0_i32_1 = arith.constant 0 : i32
    return %arg0, %arg1, %c0_i32, %c0_i32_0 : i32, i32, i32, i32
  }
  func.func @transform_1(%arg0: i32, %arg1: i32) -> (i32, i32, i32, i32) {
    %c1_i32 = arith.constant 1 : i32
    %0 = arith.addi %arg1, %c1_i32 : i32
    %c8_i32 = arith.constant 8 : i32
    %1 = arith.muli %0, %c8_i32 : i32
    %c0_i32 = arith.constant 0 : i32
    %c0_i32_0 = arith.constant 0 : i32
    %c0_i32_1 = arith.constant 0 : i32
    return %arg0, %1, %c0_i32, %c0_i32_0 : i32, i32, i32, i32
  }
  func.func @transform_2(%arg0: i32, %arg1: i32) -> (i32, i32, i32) {
    %c0_i32 = arith.constant 0 : i32
    %c0_i32_0 = arith.constant 0 : i32
    %c0_i32_1 = arith.constant 0 : i32
    %c0_i32_2 = arith.constant 0 : i32
    return %c0_i32, %c0_i32_0, %c0_i32_1 : i32, i32, i32
  }
  func.func @transform_3(%arg0: i32, %arg1: i32) -> (i32, i32) {
    %c0_i32 = arith.constant 0 : i32
    %c0_i32_0 = arith.constant 0 : i32
    %c0_i32_1 = arith.constant 0 : i32
    return %c0_i32, %c0_i32_0 : i32, i32
  }
  func.func @transform_4(%arg0: i32, %arg1: i32) -> (i32, i32, i32, i32) {
    %c0_i32 = arith.constant 0 : i32
    %c0_i32_0 = arith.constant 0 : i32
    %c0_i32_1 = arith.constant 0 : i32
    return %arg0, %arg1, %c0_i32, %c0_i32_0 : i32, i32, i32, i32
  }
}

module attributes {stable_mosaic.version = 11 : i64} {
  func.func @_s2d_conv_kernel(%arg0: i32, %arg1: i32, %arg2: memref<1x4x5x64xbf16, #tpu.memory_space<vmem>>, %arg3: memref<1x1x5x64xbf16, #tpu.memory_space<vmem>>, %arg4: memref<4x64x128xbf16, #tpu.memory_space<vmem>>, %arg5: memref<1x128xf32, #tpu.memory_space<vmem>>, %arg6: memref<1x4x4x128xbf16, #tpu.memory_space<vmem>>) attributes {dimension_semantics = [#tpu.dimension_semantics<parallel>, #tpu.dimension_semantics<parallel>], iteration_bounds = array<i64: 2, 1>, scalar_prefetch = 0 : i64, scratch_operands = 0 : i64, tpu.core_type = #tpu.core_type<tc>, window_params = [{transform_indices = @transform_0, window_bounds = array<i64: 1, 4, 5, 64>}, {transform_indices = @transform_1, window_bounds = array<i64: 1, 1, 5, 64>}, {pipeline_mode = #tpu.pipeline_mode<synchronous>, transform_indices = @transform_2, window_bounds = array<i64: 4, 64, 128>}, {pipeline_mode = #tpu.pipeline_mode<synchronous>, transform_indices = @transform_3, window_bounds = array<i64: 1, 128>}, {transform_indices = @transform_4, window_bounds = array<i64: 1, 4, 4, 128>}]} {
    %c0 = arith.constant 0 : index
    %c0_0 = arith.constant 0 : index
    %c0_1 = arith.constant 0 : index
    %0 = vector.load %arg4[%c0, %c0_0, %c0_1] : memref<4x64x128xbf16, #tpu.memory_space<vmem>>, vector<1x64x128xbf16>
    %1 = vector.shape_cast %0 : vector<1x64x128xbf16> to vector<64x128xbf16>
    %c1 = arith.constant 1 : index
    %c0_2 = arith.constant 0 : index
    %c0_3 = arith.constant 0 : index
    %2 = vector.load %arg4[%c1, %c0_2, %c0_3] : memref<4x64x128xbf16, #tpu.memory_space<vmem>>, vector<1x64x128xbf16>
    %3 = vector.shape_cast %2 : vector<1x64x128xbf16> to vector<64x128xbf16>
    %c2 = arith.constant 2 : index
    %c0_4 = arith.constant 0 : index
    %c0_5 = arith.constant 0 : index
    %4 = vector.load %arg4[%c2, %c0_4, %c0_5] : memref<4x64x128xbf16, #tpu.memory_space<vmem>>, vector<1x64x128xbf16>
    %5 = vector.shape_cast %4 : vector<1x64x128xbf16> to vector<64x128xbf16>
    %c3 = arith.constant 3 : index
    %c0_6 = arith.constant 0 : index
    %c0_7 = arith.constant 0 : index
    %6 = vector.load %arg4[%c3, %c0_6, %c0_7] : memref<4x64x128xbf16, #tpu.memory_space<vmem>>, vector<1x64x128xbf16>
    %7 = vector.shape_cast %6 : vector<1x64x128xbf16> to vector<64x128xbf16>
    %c0_8 = arith.constant 0 : index
    %c0_9 = arith.constant 0 : index
    %8 = vector.load %arg5[%c0_8, %c0_9] : memref<1x128xf32, #tpu.memory_space<vmem>>, vector<1x128xf32>
    %c0_10 = arith.constant 0 : index
    %c0_11 = arith.constant 0 : index
    %c0_12 = arith.constant 0 : index
    %c0_13 = arith.constant 0 : index
    %9 = vector.load %arg2[%c0_10, %c0_11, %c0_12, %c0_13] : memref<1x4x5x64xbf16, #tpu.memory_space<vmem>>, vector<1x1x5x64xbf16>
    %10 = vector.shape_cast %9 : vector<1x1x5x64xbf16> to vector<5x64xbf16>
    %c0_14 = arith.constant 0 : index
    %c1_15 = arith.constant 1 : index
    %c0_16 = arith.constant 0 : index
    %c0_17 = arith.constant 0 : index
    %11 = vector.load %arg2[%c0_14, %c1_15, %c0_16, %c0_17] : memref<1x4x5x64xbf16, #tpu.memory_space<vmem>>, vector<1x1x5x64xbf16>
    %12 = vector.shape_cast %11 : vector<1x1x5x64xbf16> to vector<5x64xbf16>
    %13 = vector.extract_strided_slice %10 {offsets = [0, 0], sizes = [4, 64], strides = [1, 1]} : vector<5x64xbf16> to vector<4x64xbf16>
    %cst = arith.constant dense<0.000000e+00> : vector<4x128xf32>
    %14 = tpu.matmul %13, %1, %cst {dimension_numbers = #tpu.dot_dimension_numbers<[1], [0], [0], [1], [0, 0, 1, 1], [], []>} : vector<4x64xbf16>, vector<64x128xbf16>, vector<4x128xf32> -> vector<4x128xf32>
    %15 = vector.extract_strided_slice %10 {offsets = [1, 0], sizes = [4, 64], strides = [1, 1]} : vector<5x64xbf16> to vector<4x64xbf16>
    %cst_18 = arith.constant dense<0.000000e+00> : vector<4x128xf32>
    %16 = tpu.matmul %15, %3, %cst_18 {dimension_numbers = #tpu.dot_dimension_numbers<[1], [0], [0], [1], [0, 0, 1, 1], [], []>} : vector<4x64xbf16>, vector<64x128xbf16>, vector<4x128xf32> -> vector<4x128xf32>
    %17 = arith.addf %14, %16 : vector<4x128xf32>
    %18 = vector.extract_strided_slice %12 {offsets = [0, 0], sizes = [4, 64], strides = [1, 1]} : vector<5x64xbf16> to vector<4x64xbf16>
    %cst_19 = arith.constant dense<0.000000e+00> : vector<4x128xf32>
    %19 = tpu.matmul %18, %5, %cst_19 {dimension_numbers = #tpu.dot_dimension_numbers<[1], [0], [0], [1], [0, 0, 1, 1], [], []>} : vector<4x64xbf16>, vector<64x128xbf16>, vector<4x128xf32> -> vector<4x128xf32>
    %20 = arith.addf %17, %19 : vector<4x128xf32>
    %21 = vector.extract_strided_slice %12 {offsets = [1, 0], sizes = [4, 64], strides = [1, 1]} : vector<5x64xbf16> to vector<4x64xbf16>
    %cst_20 = arith.constant dense<0.000000e+00> : vector<4x128xf32>
    %22 = tpu.matmul %21, %7, %cst_20 {dimension_numbers = #tpu.dot_dimension_numbers<[1], [0], [0], [1], [0, 0, 1, 1], [], []>} : vector<4x64xbf16>, vector<64x128xbf16>, vector<4x128xf32> -> vector<4x128xf32>
    %23 = arith.addf %20, %22 : vector<4x128xf32>
    %24 = vector.broadcast %8 : vector<1x128xf32> to vector<4x128xf32>
    %25 = arith.addf %23, %24 : vector<4x128xf32>
    %cst_21 = arith.constant 0.000000e+00 : f32
    %26 = vector.broadcast %cst_21 : f32 to vector<4x128xf32>
    %27 = arith.cmpf oge, %25, %26 : vector<4x128xf32>
    %cst_22 = arith.constant 2.000000e-01 : f32
    %28 = vector.broadcast %cst_22 : f32 to vector<4x128xf32>
    %29 = arith.mulf %28, %25 : vector<4x128xf32>
    %30 = arith.select %27, %25, %29 : vector<4x128xi1>, vector<4x128xf32>
    %31 = arith.truncf %30 : vector<4x128xf32> to vector<4x128xbf16>
    %c0_23 = arith.constant 0 : index
    %c0_24 = arith.constant 0 : index
    %c0_25 = arith.constant 0 : index
    %c0_26 = arith.constant 0 : index
    %32 = vector.load %arg6[%c0_23, %c0_24, %c0_25, %c0_26] : memref<1x4x4x128xbf16, #tpu.memory_space<vmem>>, vector<1x1x4x128xbf16>
    %33 = vector.shape_cast %32 : vector<1x1x4x128xbf16> to vector<4x128xbf16>
    %34 = vector.shape_cast %31 : vector<4x128xbf16> to vector<1x1x4x128xbf16>
    tpu.vector_store %arg6[%c0_23, %c0_24, %c0_25, %c0_26], %34 {strides = array<i32>} : memref<1x4x4x128xbf16, #tpu.memory_space<vmem>>, vector<1x1x4x128xbf16>,
    %c0_27 = arith.constant 0 : index
    %c1_28 = arith.constant 1 : index
    %c0_29 = arith.constant 0 : index
    %c0_30 = arith.constant 0 : index
    %35 = vector.load %arg2[%c0_27, %c1_28, %c0_29, %c0_30] : memref<1x4x5x64xbf16, #tpu.memory_space<vmem>>, vector<1x1x5x64xbf16>
    %36 = vector.shape_cast %35 : vector<1x1x5x64xbf16> to vector<5x64xbf16>
    %c0_31 = arith.constant 0 : index
    %c2_32 = arith.constant 2 : index
    %c0_33 = arith.constant 0 : index
    %c0_34 = arith.constant 0 : index
    %37 = vector.load %arg2[%c0_31, %c2_32, %c0_33, %c0_34] : memref<1x4x5x64xbf16, #tpu.memory_space<vmem>>, vector<1x1x5x64xbf16>
    %38 = vector.shape_cast %37 : vector<1x1x5x64xbf16> to vector<5x64xbf16>
    %39 = vector.extract_strided_slice %36 {offsets = [0, 0], sizes = [4, 64], strides = [1, 1]} : vector<5x64xbf16> to vector<4x64xbf16>
    %cst_35 = arith.constant dense<0.000000e+00> : vector<4x128xf32>
    %40 = tpu.matmul %39, %1, %cst_35 {dimension_numbers = #tpu.dot_dimension_numbers<[1], [0], [0], [1], [0, 0, 1, 1], [], []>} : vector<4x64xbf16>, vector<64x128xbf16>, vector<4x128xf32> -> vector<4x128xf32>
    %41 = vector.extract_strided_slice %36 {offsets = [1, 0], sizes = [4, 64], strides = [1, 1]} : vector<5x64xbf16> to vector<4x64xbf16>
    %cst_36 = arith.constant dense<0.000000e+00> : vector<4x128xf32>
    %42 = tpu.matmul %41, %3, %cst_36 {dimension_numbers = #tpu.dot_dimension_numbers<[1], [0], [0], [1], [0, 0, 1, 1], [], []>} : vector<4x64xbf16>, vector<64x128xbf16>, vector<4x128xf32> -> vector<4x128xf32>
    %43 = arith.addf %40, %42 : vector<4x128xf32>
    %44 = vector.extract_strided_slice %38 {offsets = [0, 0], sizes = [4, 64], strides = [1, 1]} : vector<5x64xbf16> to vector<4x64xbf16>
    %cst_37 = arith.constant dense<0.000000e+00> : vector<4x128xf32>
    %45 = tpu.matmul %44, %5, %cst_37 {dimension_numbers = #tpu.dot_dimension_numbers<[1], [0], [0], [1], [0, 0, 1, 1], [], []>} : vector<4x64xbf16>, vector<64x128xbf16>, vector<4x128xf32> -> vector<4x128xf32>
    %46 = arith.addf %43, %45 : vector<4x128xf32>
    %47 = vector.extract_strided_slice %38 {offsets = [1, 0], sizes = [4, 64], strides = [1, 1]} : vector<5x64xbf16> to vector<4x64xbf16>
    %cst_38 = arith.constant dense<0.000000e+00> : vector<4x128xf32>
    %48 = tpu.matmul %47, %7, %cst_38 {dimension_numbers = #tpu.dot_dimension_numbers<[1], [0], [0], [1], [0, 0, 1, 1], [], []>} : vector<4x64xbf16>, vector<64x128xbf16>, vector<4x128xf32> -> vector<4x128xf32>
    %49 = arith.addf %46, %48 : vector<4x128xf32>
    %50 = vector.broadcast %8 : vector<1x128xf32> to vector<4x128xf32>
    %51 = arith.addf %49, %50 : vector<4x128xf32>
    %cst_39 = arith.constant 0.000000e+00 : f32
    %52 = vector.broadcast %cst_39 : f32 to vector<4x128xf32>
    %53 = arith.cmpf oge, %51, %52 : vector<4x128xf32>
    %cst_40 = arith.constant 2.000000e-01 : f32
    %54 = vector.broadcast %cst_40 : f32 to vector<4x128xf32>
    %55 = arith.mulf %54, %51 : vector<4x128xf32>
    %56 = arith.select %53, %51, %55 : vector<4x128xi1>, vector<4x128xf32>
    %57 = arith.truncf %56 : vector<4x128xf32> to vector<4x128xbf16>
    %c0_41 = arith.constant 0 : index
    %c1_42 = arith.constant 1 : index
    %c0_43 = arith.constant 0 : index
    %c0_44 = arith.constant 0 : index
    %58 = vector.load %arg6[%c0_41, %c1_42, %c0_43, %c0_44] : memref<1x4x4x128xbf16, #tpu.memory_space<vmem>>, vector<1x1x4x128xbf16>
    %59 = vector.shape_cast %58 : vector<1x1x4x128xbf16> to vector<4x128xbf16>
    %60 = vector.shape_cast %57 : vector<4x128xbf16> to vector<1x1x4x128xbf16>
    tpu.vector_store %arg6[%c0_41, %c1_42, %c0_43, %c0_44], %60 {strides = array<i32>} : memref<1x4x4x128xbf16, #tpu.memory_space<vmem>>, vector<1x1x4x128xbf16>,
    %c0_45 = arith.constant 0 : index
    %c2_46 = arith.constant 2 : index
    %c0_47 = arith.constant 0 : index
    %c0_48 = arith.constant 0 : index
    %61 = vector.load %arg2[%c0_45, %c2_46, %c0_47, %c0_48] : memref<1x4x5x64xbf16, #tpu.memory_space<vmem>>, vector<1x1x5x64xbf16>
    %62 = vector.shape_cast %61 : vector<1x1x5x64xbf16> to vector<5x64xbf16>
    %c0_49 = arith.constant 0 : index
    %c3_50 = arith.constant 3 : index
    %c0_51 = arith.constant 0 : index
    %c0_52 = arith.constant 0 : index
    %63 = vector.load %arg2[%c0_49, %c3_50, %c0_51, %c0_52] : memref<1x4x5x64xbf16, #tpu.memory_space<vmem>>, vector<1x1x5x64xbf16>
    %64 = vector.shape_cast %63 : vector<1x1x5x64xbf16> to vector<5x64xbf16>
    %65 = vector.extract_strided_slice %62 {offsets = [0, 0], sizes = [4, 64], strides = [1, 1]} : vector<5x64xbf16> to vector<4x64xbf16>
    %cst_53 = arith.constant dense<0.000000e+00> : vector<4x128xf32>
    %66 = tpu.matmul %65, %1, %cst_53 {dimension_numbers = #tpu.dot_dimension_numbers<[1], [0], [0], [1], [0, 0, 1, 1], [], []>} : vector<4x64xbf16>, vector<64x128xbf16>, vector<4x128xf32> -> vector<4x128xf32>
    %67 = vector.extract_strided_slice %62 {offsets = [1, 0], sizes = [4, 64], strides = [1, 1]} : vector<5x64xbf16> to vector<4x64xbf16>
    %cst_54 = arith.constant dense<0.000000e+00> : vector<4x128xf32>
    %68 = tpu.matmul %67, %3, %cst_54 {dimension_numbers = #tpu.dot_dimension_numbers<[1], [0], [0], [1], [0, 0, 1, 1], [], []>} : vector<4x64xbf16>, vector<64x128xbf16>, vector<4x128xf32> -> vector<4x128xf32>
    %69 = arith.addf %66, %68 : vector<4x128xf32>
    %70 = vector.extract_strided_slice %64 {offsets = [0, 0], sizes = [4, 64], strides = [1, 1]} : vector<5x64xbf16> to vector<4x64xbf16>
    %cst_55 = arith.constant dense<0.000000e+00> : vector<4x128xf32>
    %71 = tpu.matmul %70, %5, %cst_55 {dimension_numbers = #tpu.dot_dimension_numbers<[1], [0], [0], [1], [0, 0, 1, 1], [], []>} : vector<4x64xbf16>, vector<64x128xbf16>, vector<4x128xf32> -> vector<4x128xf32>
    %72 = arith.addf %69, %71 : vector<4x128xf32>
    %73 = vector.extract_strided_slice %64 {offsets = [1, 0], sizes = [4, 64], strides = [1, 1]} : vector<5x64xbf16> to vector<4x64xbf16>
    %cst_56 = arith.constant dense<0.000000e+00> : vector<4x128xf32>
    %74 = tpu.matmul %73, %7, %cst_56 {dimension_numbers = #tpu.dot_dimension_numbers<[1], [0], [0], [1], [0, 0, 1, 1], [], []>} : vector<4x64xbf16>, vector<64x128xbf16>, vector<4x128xf32> -> vector<4x128xf32>
    %75 = arith.addf %72, %74 : vector<4x128xf32>
    %76 = vector.broadcast %8 : vector<1x128xf32> to vector<4x128xf32>
    %77 = arith.addf %75, %76 : vector<4x128xf32>
    %cst_57 = arith.constant 0.000000e+00 : f32
    %78 = vector.broadcast %cst_57 : f32 to vector<4x128xf32>
    %79 = arith.cmpf oge, %77, %78 : vector<4x128xf32>
    %cst_58 = arith.constant 2.000000e-01 : f32
    %80 = vector.broadcast %cst_58 : f32 to vector<4x128xf32>
    %81 = arith.mulf %80, %77 : vector<4x128xf32>
    %82 = arith.select %79, %77, %81 : vector<4x128xi1>, vector<4x128xf32>
    %83 = arith.truncf %82 : vector<4x128xf32> to vector<4x128xbf16>
    %c0_59 = arith.constant 0 : index
    %c2_60 = arith.constant 2 : index
    %c0_61 = arith.constant 0 : index
    %c0_62 = arith.constant 0 : index
    %84 = vector.load %arg6[%c0_59, %c2_60, %c0_61, %c0_62] : memref<1x4x4x128xbf16, #tpu.memory_space<vmem>>, vector<1x1x4x128xbf16>
    %85 = vector.shape_cast %84 : vector<1x1x4x128xbf16> to vector<4x128xbf16>
    %86 = vector.shape_cast %83 : vector<4x128xbf16> to vector<1x1x4x128xbf16>
    tpu.vector_store %arg6[%c0_59, %c2_60, %c0_61, %c0_62], %86 {strides = array<i32>} : memref<1x4x4x128xbf16, #tpu.memory_space<vmem>>, vector<1x1x4x128xbf16>,
    %c0_63 = arith.constant 0 : index
    %c3_64 = arith.constant 3 : index
    %c0_65 = arith.constant 0 : index
    %c0_66 = arith.constant 0 : index
    %87 = vector.load %arg2[%c0_63, %c3_64, %c0_65, %c0_66] : memref<1x4x5x64xbf16, #tpu.memory_space<vmem>>, vector<1x1x5x64xbf16>
    %88 = vector.shape_cast %87 : vector<1x1x5x64xbf16> to vector<5x64xbf16>
    %c0_67 = arith.constant 0 : index
    %c0_68 = arith.constant 0 : index
    %c0_69 = arith.constant 0 : index
    %c0_70 = arith.constant 0 : index
    %89 = vector.load %arg3[%c0_67, %c0_68, %c0_69, %c0_70] : memref<1x1x5x64xbf16, #tpu.memory_space<vmem>>, vector<1x1x5x64xbf16>
    %90 = vector.shape_cast %89 : vector<1x1x5x64xbf16> to vector<5x64xbf16>
    %91 = vector.extract_strided_slice %88 {offsets = [0, 0], sizes = [4, 64], strides = [1, 1]} : vector<5x64xbf16> to vector<4x64xbf16>
    %cst_71 = arith.constant dense<0.000000e+00> : vector<4x128xf32>
    %92 = tpu.matmul %91, %1, %cst_71 {dimension_numbers = #tpu.dot_dimension_numbers<[1], [0], [0], [1], [0, 0, 1, 1], [], []>} : vector<4x64xbf16>, vector<64x128xbf16>, vector<4x128xf32> -> vector<4x128xf32>
    %93 = vector.extract_strided_slice %88 {offsets = [1, 0], sizes = [4, 64], strides = [1, 1]} : vector<5x64xbf16> to vector<4x64xbf16>
    %cst_72 = arith.constant dense<0.000000e+00> : vector<4x128xf32>
    %94 = tpu.matmul %93, %3, %cst_72 {dimension_numbers = #tpu.dot_dimension_numbers<[1], [0], [0], [1], [0, 0, 1, 1], [], []>} : vector<4x64xbf16>, vector<64x128xbf16>, vector<4x128xf32> -> vector<4x128xf32>
    %95 = arith.addf %92, %94 : vector<4x128xf32>
    %96 = vector.extract_strided_slice %90 {offsets = [0, 0], sizes = [4, 64], strides = [1, 1]} : vector<5x64xbf16> to vector<4x64xbf16>
    %cst_73 = arith.constant dense<0.000000e+00> : vector<4x128xf32>
    %97 = tpu.matmul %96, %5, %cst_73 {dimension_numbers = #tpu.dot_dimension_numbers<[1], [0], [0], [1], [0, 0, 1, 1], [], []>} : vector<4x64xbf16>, vector<64x128xbf16>, vector<4x128xf32> -> vector<4x128xf32>
    %98 = arith.addf %95, %97 : vector<4x128xf32>
    %99 = vector.extract_strided_slice %90 {offsets = [1, 0], sizes = [4, 64], strides = [1, 1]} : vector<5x64xbf16> to vector<4x64xbf16>
    %cst_74 = arith.constant dense<0.000000e+00> : vector<4x128xf32>
    %100 = tpu.matmul %99, %7, %cst_74 {dimension_numbers = #tpu.dot_dimension_numbers<[1], [0], [0], [1], [0, 0, 1, 1], [], []>} : vector<4x64xbf16>, vector<64x128xbf16>, vector<4x128xf32> -> vector<4x128xf32>
    %101 = arith.addf %98, %100 : vector<4x128xf32>
    %102 = vector.broadcast %8 : vector<1x128xf32> to vector<4x128xf32>
    %103 = arith.addf %101, %102 : vector<4x128xf32>
    %cst_75 = arith.constant 0.000000e+00 : f32
    %104 = vector.broadcast %cst_75 : f32 to vector<4x128xf32>
    %105 = arith.cmpf oge, %103, %104 : vector<4x128xf32>
    %cst_76 = arith.constant 2.000000e-01 : f32
    %106 = vector.broadcast %cst_76 : f32 to vector<4x128xf32>
    %107 = arith.mulf %106, %103 : vector<4x128xf32>
    %108 = arith.select %105, %103, %107 : vector<4x128xi1>, vector<4x128xf32>
    %109 = arith.truncf %108 : vector<4x128xf32> to vector<4x128xbf16>
    %c0_77 = arith.constant 0 : index
    %c3_78 = arith.constant 3 : index
    %c0_79 = arith.constant 0 : index
    %c0_80 = arith.constant 0 : index
    %110 = vector.load %arg6[%c0_77, %c3_78, %c0_79, %c0_80] : memref<1x4x4x128xbf16, #tpu.memory_space<vmem>>, vector<1x1x4x128xbf16>
    %111 = vector.shape_cast %110 : vector<1x1x4x128xbf16> to vector<4x128xbf16>
    %112 = vector.shape_cast %109 : vector<4x128xbf16> to vector<1x1x4x128xbf16>
    tpu.vector_store %arg6[%c0_77, %c3_78, %c0_79, %c0_80], %112 {strides = array<i32>} : memref<1x4x4x128xbf16, #tpu.memory_space<vmem>>, vector<1x1x4x128xbf16>,
    return
  }
  func.func @transform_0(%arg0: i32, %arg1: i32) -> (i32, i32, i32, i32) {
    %c0_i32 = arith.constant 0 : i32
    %c0_i32_0 = arith.constant 0 : i32
    %c0_i32_1 = arith.constant 0 : i32
    return %arg0, %arg1, %c0_i32, %c0_i32_0 : i32, i32, i32, i32
  }
  func.func @transform_1(%arg0: i32, %arg1: i32) -> (i32, i32, i32, i32) {
    %c1_i32 = arith.constant 1 : i32
    %0 = arith.addi %arg1, %c1_i32 : i32
    %c4_i32 = arith.constant 4 : i32
    %1 = arith.muli %0, %c4_i32 : i32
    %c0_i32 = arith.constant 0 : i32
    %c0_i32_0 = arith.constant 0 : i32
    %c0_i32_1 = arith.constant 0 : i32
    return %arg0, %1, %c0_i32, %c0_i32_0 : i32, i32, i32, i32
  }
  func.func @transform_2(%arg0: i32, %arg1: i32) -> (i32, i32, i32) {
    %c0_i32 = arith.constant 0 : i32
    %c0_i32_0 = arith.constant 0 : i32
    %c0_i32_1 = arith.constant 0 : i32
    %c0_i32_2 = arith.constant 0 : i32
    return %c0_i32, %c0_i32_0, %c0_i32_1 : i32, i32, i32
  }
  func.func @transform_3(%arg0: i32, %arg1: i32) -> (i32, i32) {
    %c0_i32 = arith.constant 0 : i32
    %c0_i32_0 = arith.constant 0 : i32
    %c0_i32_1 = arith.constant 0 : i32
    return %c0_i32, %c0_i32_0 : i32, i32
  }
  func.func @transform_4(%arg0: i32, %arg1: i32) -> (i32, i32, i32, i32) {
    %c0_i32 = arith.constant 0 : i32
    %c0_i32_0 = arith.constant 0 : i32
    %c0_i32_1 = arith.constant 0 : i32
    return %arg0, %arg1, %c0_i32, %c0_i32_0 : i32, i32, i32, i32
  }
}

module attributes {stable_mosaic.version = 11 : i64} {
  func.func @_s2d_conv_kernel(%arg0: i32, %arg1: i32, %arg2: memref<1x2x3x128xbf16, #tpu.memory_space<vmem>>, %arg3: memref<1x1x3x128xbf16, #tpu.memory_space<vmem>>, %arg4: memref<4x128x128xbf16, #tpu.memory_space<vmem>>, %arg5: memref<1x128xf32, #tpu.memory_space<vmem>>, %arg6: memref<1x2x2x128xbf16, #tpu.memory_space<vmem>>) attributes {dimension_semantics = [#tpu.dimension_semantics<parallel>, #tpu.dimension_semantics<parallel>], iteration_bounds = array<i64: 2, 1>, scalar_prefetch = 0 : i64, scratch_operands = 0 : i64, tpu.core_type = #tpu.core_type<tc>, window_params = [{transform_indices = @transform_0, window_bounds = array<i64: 1, 2, 3, 128>}, {transform_indices = @transform_1, window_bounds = array<i64: 1, 1, 3, 128>}, {pipeline_mode = #tpu.pipeline_mode<synchronous>, transform_indices = @transform_2, window_bounds = array<i64: 4, 128, 128>}, {pipeline_mode = #tpu.pipeline_mode<synchronous>, transform_indices = @transform_3, window_bounds = array<i64: 1, 128>}, {transform_indices = @transform_4, window_bounds = array<i64: 1, 2, 2, 128>}]} {
    %c0 = arith.constant 0 : index
    %c0_0 = arith.constant 0 : index
    %c0_1 = arith.constant 0 : index
    %0 = vector.load %arg4[%c0, %c0_0, %c0_1] : memref<4x128x128xbf16, #tpu.memory_space<vmem>>, vector<1x128x128xbf16>
    %1 = vector.shape_cast %0 : vector<1x128x128xbf16> to vector<128x128xbf16>
    %c1 = arith.constant 1 : index
    %c0_2 = arith.constant 0 : index
    %c0_3 = arith.constant 0 : index
    %2 = vector.load %arg4[%c1, %c0_2, %c0_3] : memref<4x128x128xbf16, #tpu.memory_space<vmem>>, vector<1x128x128xbf16>
    %3 = vector.shape_cast %2 : vector<1x128x128xbf16> to vector<128x128xbf16>
    %c2 = arith.constant 2 : index
    %c0_4 = arith.constant 0 : index
    %c0_5 = arith.constant 0 : index
    %4 = vector.load %arg4[%c2, %c0_4, %c0_5] : memref<4x128x128xbf16, #tpu.memory_space<vmem>>, vector<1x128x128xbf16>
    %5 = vector.shape_cast %4 : vector<1x128x128xbf16> to vector<128x128xbf16>
    %c3 = arith.constant 3 : index
    %c0_6 = arith.constant 0 : index
    %c0_7 = arith.constant 0 : index
    %6 = vector.load %arg4[%c3, %c0_6, %c0_7] : memref<4x128x128xbf16, #tpu.memory_space<vmem>>, vector<1x128x128xbf16>
    %7 = vector.shape_cast %6 : vector<1x128x128xbf16> to vector<128x128xbf16>
    %c0_8 = arith.constant 0 : index
    %c0_9 = arith.constant 0 : index
    %8 = vector.load %arg5[%c0_8, %c0_9] : memref<1x128xf32, #tpu.memory_space<vmem>>, vector<1x128xf32>
    %c0_10 = arith.constant 0 : index
    %c0_11 = arith.constant 0 : index
    %c0_12 = arith.constant 0 : index
    %c0_13 = arith.constant 0 : index
    %9 = vector.load %arg2[%c0_10, %c0_11, %c0_12, %c0_13] : memref<1x2x3x128xbf16, #tpu.memory_space<vmem>>, vector<1x1x3x128xbf16>
    %10 = vector.shape_cast %9 : vector<1x1x3x128xbf16> to vector<3x128xbf16>
    %c0_14 = arith.constant 0 : index
    %c1_15 = arith.constant 1 : index
    %c0_16 = arith.constant 0 : index
    %c0_17 = arith.constant 0 : index
    %11 = vector.load %arg2[%c0_14, %c1_15, %c0_16, %c0_17] : memref<1x2x3x128xbf16, #tpu.memory_space<vmem>>, vector<1x1x3x128xbf16>
    %12 = vector.shape_cast %11 : vector<1x1x3x128xbf16> to vector<3x128xbf16>
    %13 = vector.extract_strided_slice %10 {offsets = [0, 0], sizes = [2, 128], strides = [1, 1]} : vector<3x128xbf16> to vector<2x128xbf16>
    %cst = arith.constant dense<0.000000e+00> : vector<2x128xf32>
    %14 = tpu.matmul %13, %1, %cst {dimension_numbers = #tpu.dot_dimension_numbers<[1], [0], [0], [1], [0, 0, 1, 1], [], []>} : vector<2x128xbf16>, vector<128x128xbf16>, vector<2x128xf32> -> vector<2x128xf32>
    %15 = vector.extract_strided_slice %10 {offsets = [1, 0], sizes = [2, 128], strides = [1, 1]} : vector<3x128xbf16> to vector<2x128xbf16>
    %cst_18 = arith.constant dense<0.000000e+00> : vector<2x128xf32>
    %16 = tpu.matmul %15, %3, %cst_18 {dimension_numbers = #tpu.dot_dimension_numbers<[1], [0], [0], [1], [0, 0, 1, 1], [], []>} : vector<2x128xbf16>, vector<128x128xbf16>, vector<2x128xf32> -> vector<2x128xf32>
    %17 = arith.addf %14, %16 : vector<2x128xf32>
    %18 = vector.extract_strided_slice %12 {offsets = [0, 0], sizes = [2, 128], strides = [1, 1]} : vector<3x128xbf16> to vector<2x128xbf16>
    %cst_19 = arith.constant dense<0.000000e+00> : vector<2x128xf32>
    %19 = tpu.matmul %18, %5, %cst_19 {dimension_numbers = #tpu.dot_dimension_numbers<[1], [0], [0], [1], [0, 0, 1, 1], [], []>} : vector<2x128xbf16>, vector<128x128xbf16>, vector<2x128xf32> -> vector<2x128xf32>
    %20 = arith.addf %17, %19 : vector<2x128xf32>
    %21 = vector.extract_strided_slice %12 {offsets = [1, 0], sizes = [2, 128], strides = [1, 1]} : vector<3x128xbf16> to vector<2x128xbf16>
    %cst_20 = arith.constant dense<0.000000e+00> : vector<2x128xf32>
    %22 = tpu.matmul %21, %7, %cst_20 {dimension_numbers = #tpu.dot_dimension_numbers<[1], [0], [0], [1], [0, 0, 1, 1], [], []>} : vector<2x128xbf16>, vector<128x128xbf16>, vector<2x128xf32> -> vector<2x128xf32>
    %23 = arith.addf %20, %22 : vector<2x128xf32>
    %24 = vector.broadcast %8 : vector<1x128xf32> to vector<2x128xf32>
    %25 = arith.addf %23, %24 : vector<2x128xf32>
    %cst_21 = arith.constant 0.000000e+00 : f32
    %26 = vector.broadcast %cst_21 : f32 to vector<2x128xf32>
    %27 = arith.cmpf oge, %25, %26 : vector<2x128xf32>
    %cst_22 = arith.constant 2.000000e-01 : f32
    %28 = vector.broadcast %cst_22 : f32 to vector<2x128xf32>
    %29 = arith.mulf %28, %25 : vector<2x128xf32>
    %30 = arith.select %27, %25, %29 : vector<2x128xi1>, vector<2x128xf32>
    %31 = arith.truncf %30 : vector<2x128xf32> to vector<2x128xbf16>
    %c0_23 = arith.constant 0 : index
    %c0_24 = arith.constant 0 : index
    %c0_25 = arith.constant 0 : index
    %c0_26 = arith.constant 0 : index
    %32 = vector.load %arg6[%c0_23, %c0_24, %c0_25, %c0_26] : memref<1x2x2x128xbf16, #tpu.memory_space<vmem>>, vector<1x1x2x128xbf16>
    %33 = vector.shape_cast %32 : vector<1x1x2x128xbf16> to vector<2x128xbf16>
    %34 = vector.shape_cast %31 : vector<2x128xbf16> to vector<1x1x2x128xbf16>
    tpu.vector_store %arg6[%c0_23, %c0_24, %c0_25, %c0_26], %34 {strides = array<i32>} : memref<1x2x2x128xbf16, #tpu.memory_space<vmem>>, vector<1x1x2x128xbf16>,
    %c0_27 = arith.constant 0 : index
    %c1_28 = arith.constant 1 : index
    %c0_29 = arith.constant 0 : index
    %c0_30 = arith.constant 0 : index
    %35 = vector.load %arg2[%c0_27, %c1_28, %c0_29, %c0_30] : memref<1x2x3x128xbf16, #tpu.memory_space<vmem>>, vector<1x1x3x128xbf16>
    %36 = vector.shape_cast %35 : vector<1x1x3x128xbf16> to vector<3x128xbf16>
    %c0_31 = arith.constant 0 : index
    %c0_32 = arith.constant 0 : index
    %c0_33 = arith.constant 0 : index
    %c0_34 = arith.constant 0 : index
    %37 = vector.load %arg3[%c0_31, %c0_32, %c0_33, %c0_34] : memref<1x1x3x128xbf16, #tpu.memory_space<vmem>>, vector<1x1x3x128xbf16>
    %38 = vector.shape_cast %37 : vector<1x1x3x128xbf16> to vector<3x128xbf16>
    %39 = vector.extract_strided_slice %36 {offsets = [0, 0], sizes = [2, 128], strides = [1, 1]} : vector<3x128xbf16> to vector<2x128xbf16>
    %cst_35 = arith.constant dense<0.000000e+00> : vector<2x128xf32>
    %40 = tpu.matmul %39, %1, %cst_35 {dimension_numbers = #tpu.dot_dimension_numbers<[1], [0], [0], [1], [0, 0, 1, 1], [], []>} : vector<2x128xbf16>, vector<128x128xbf16>, vector<2x128xf32> -> vector<2x128xf32>
    %41 = vector.extract_strided_slice %36 {offsets = [1, 0], sizes = [2, 128], strides = [1, 1]} : vector<3x128xbf16> to vector<2x128xbf16>
    %cst_36 = arith.constant dense<0.000000e+00> : vector<2x128xf32>
    %42 = tpu.matmul %41, %3, %cst_36 {dimension_numbers = #tpu.dot_dimension_numbers<[1], [0], [0], [1], [0, 0, 1, 1], [], []>} : vector<2x128xbf16>, vector<128x128xbf16>, vector<2x128xf32> -> vector<2x128xf32>
    %43 = arith.addf %40, %42 : vector<2x128xf32>
    %44 = vector.extract_strided_slice %38 {offsets = [0, 0], sizes = [2, 128], strides = [1, 1]} : vector<3x128xbf16> to vector<2x128xbf16>
    %cst_37 = arith.constant dense<0.000000e+00> : vector<2x128xf32>
    %45 = tpu.matmul %44, %5, %cst_37 {dimension_numbers = #tpu.dot_dimension_numbers<[1], [0], [0], [1], [0, 0, 1, 1], [], []>} : vector<2x128xbf16>, vector<128x128xbf16>, vector<2x128xf32> -> vector<2x128xf32>
    %46 = arith.addf %43, %45 : vector<2x128xf32>
    %47 = vector.extract_strided_slice %38 {offsets = [1, 0], sizes = [2, 128], strides = [1, 1]} : vector<3x128xbf16> to vector<2x128xbf16>
    %cst_38 = arith.constant dense<0.000000e+00> : vector<2x128xf32>
    %48 = tpu.matmul %47, %7, %cst_38 {dimension_numbers = #tpu.dot_dimension_numbers<[1], [0], [0], [1], [0, 0, 1, 1], [], []>} : vector<2x128xbf16>, vector<128x128xbf16>, vector<2x128xf32> -> vector<2x128xf32>
    %49 = arith.addf %46, %48 : vector<2x128xf32>
    %50 = vector.broadcast %8 : vector<1x128xf32> to vector<2x128xf32>
    %51 = arith.addf %49, %50 : vector<2x128xf32>
    %cst_39 = arith.constant 0.000000e+00 : f32
    %52 = vector.broadcast %cst_39 : f32 to vector<2x128xf32>
    %53 = arith.cmpf oge, %51, %52 : vector<2x128xf32>
    %cst_40 = arith.constant 2.000000e-01 : f32
    %54 = vector.broadcast %cst_40 : f32 to vector<2x128xf32>
    %55 = arith.mulf %54, %51 : vector<2x128xf32>
    %56 = arith.select %53, %51, %55 : vector<2x128xi1>, vector<2x128xf32>
    %57 = arith.truncf %56 : vector<2x128xf32> to vector<2x128xbf16>
    %c0_41 = arith.constant 0 : index
    %c1_42 = arith.constant 1 : index
    %c0_43 = arith.constant 0 : index
    %c0_44 = arith.constant 0 : index
    %58 = vector.load %arg6[%c0_41, %c1_42, %c0_43, %c0_44] : memref<1x2x2x128xbf16, #tpu.memory_space<vmem>>, vector<1x1x2x128xbf16>
    %59 = vector.shape_cast %58 : vector<1x1x2x128xbf16> to vector<2x128xbf16>
    %60 = vector.shape_cast %57 : vector<2x128xbf16> to vector<1x1x2x128xbf16>
    tpu.vector_store %arg6[%c0_41, %c1_42, %c0_43, %c0_44], %60 {strides = array<i32>} : memref<1x2x2x128xbf16, #tpu.memory_space<vmem>>, vector<1x1x2x128xbf16>,
    return
  }
  func.func @transform_0(%arg0: i32, %arg1: i32) -> (i32, i32, i32, i32) {
    %c0_i32 = arith.constant 0 : i32
    %c0_i32_0 = arith.constant 0 : i32
    %c0_i32_1 = arith.constant 0 : i32
    return %arg0, %arg1, %c0_i32, %c0_i32_0 : i32, i32, i32, i32
  }
  func.func @transform_1(%arg0: i32, %arg1: i32) -> (i32, i32, i32, i32) {
    %c1_i32 = arith.constant 1 : i32
    %0 = arith.addi %arg1, %c1_i32 : i32
    %c2_i32 = arith.constant 2 : i32
    %1 = arith.muli %0, %c2_i32 : i32
    %c0_i32 = arith.constant 0 : i32
    %c0_i32_0 = arith.constant 0 : i32
    %c0_i32_1 = arith.constant 0 : i32
    return %arg0, %1, %c0_i32, %c0_i32_0 : i32, i32, i32, i32
  }
  func.func @transform_2(%arg0: i32, %arg1: i32) -> (i32, i32, i32) {
    %c0_i32 = arith.constant 0 : i32
    %c0_i32_0 = arith.constant 0 : i32
    %c0_i32_1 = arith.constant 0 : i32
    %c0_i32_2 = arith.constant 0 : i32
    return %c0_i32, %c0_i32_0, %c0_i32_1 : i32, i32, i32
  }
  func.func @transform_3(%arg0: i32, %arg1: i32) -> (i32, i32) {
    %c0_i32 = arith.constant 0 : i32
    %c0_i32_0 = arith.constant 0 : i32
    %c0_i32_1 = arith.constant 0 : i32
    return %c0_i32, %c0_i32_0 : i32, i32
  }
  func.func @transform_4(%arg0: i32, %arg1: i32) -> (i32, i32, i32, i32) {
    %c0_i32 = arith.constant 0 : i32
    %c0_i32_0 = arith.constant 0 : i32
    %c0_i32_1 = arith.constant 0 : i32
    return %arg0, %arg1, %c0_i32, %c0_i32_0 : i32, i32, i32, i32
  }
}

module attributes {stable_mosaic.version = 11 : i64} {
  func.func @_s2d_conv_kernel(%arg0: i32, %arg1: i32, %arg2: memref<1x1x2x256xbf16, #tpu.memory_space<vmem>>, %arg3: memref<1x1x2x256xbf16, #tpu.memory_space<vmem>>, %arg4: memref<4x256x128xbf16, #tpu.memory_space<vmem>>, %arg5: memref<1x128xf32, #tpu.memory_space<vmem>>, %arg6: memref<1x1x1x128xf32, #tpu.memory_space<vmem>>) attributes {dimension_semantics = [#tpu.dimension_semantics<parallel>, #tpu.dimension_semantics<parallel>], iteration_bounds = array<i64: 2, 1>, scalar_prefetch = 0 : i64, scratch_operands = 0 : i64, tpu.core_type = #tpu.core_type<tc>, window_params = [{transform_indices = @transform_0, window_bounds = array<i64: 1, 1, 2, 256>}, {transform_indices = @transform_1, window_bounds = array<i64: 1, 1, 2, 256>}, {pipeline_mode = #tpu.pipeline_mode<synchronous>, transform_indices = @transform_2, window_bounds = array<i64: 4, 256, 128>}, {pipeline_mode = #tpu.pipeline_mode<synchronous>, transform_indices = @transform_3, window_bounds = array<i64: 1, 128>}, {transform_indices = @transform_4, window_bounds = array<i64: 1, 1, 1, 128>}]} {
    %c0 = arith.constant 0 : index
    %c0_0 = arith.constant 0 : index
    %c0_1 = arith.constant 0 : index
    %0 = vector.load %arg4[%c0, %c0_0, %c0_1] : memref<4x256x128xbf16, #tpu.memory_space<vmem>>, vector<1x256x128xbf16>
    %1 = vector.shape_cast %0 : vector<1x256x128xbf16> to vector<256x128xbf16>
    %c1 = arith.constant 1 : index
    %c0_2 = arith.constant 0 : index
    %c0_3 = arith.constant 0 : index
    %2 = vector.load %arg4[%c1, %c0_2, %c0_3] : memref<4x256x128xbf16, #tpu.memory_space<vmem>>, vector<1x256x128xbf16>
    %3 = vector.shape_cast %2 : vector<1x256x128xbf16> to vector<256x128xbf16>
    %c2 = arith.constant 2 : index
    %c0_4 = arith.constant 0 : index
    %c0_5 = arith.constant 0 : index
    %4 = vector.load %arg4[%c2, %c0_4, %c0_5] : memref<4x256x128xbf16, #tpu.memory_space<vmem>>, vector<1x256x128xbf16>
    %5 = vector.shape_cast %4 : vector<1x256x128xbf16> to vector<256x128xbf16>
    %c3 = arith.constant 3 : index
    %c0_6 = arith.constant 0 : index
    %c0_7 = arith.constant 0 : index
    %6 = vector.load %arg4[%c3, %c0_6, %c0_7] : memref<4x256x128xbf16, #tpu.memory_space<vmem>>, vector<1x256x128xbf16>
    %7 = vector.shape_cast %6 : vector<1x256x128xbf16> to vector<256x128xbf16>
    %c0_8 = arith.constant 0 : index
    %c0_9 = arith.constant 0 : index
    %8 = vector.load %arg5[%c0_8, %c0_9] : memref<1x128xf32, #tpu.memory_space<vmem>>, vector<1x128xf32>
    %c0_10 = arith.constant 0 : index
    %c0_11 = arith.constant 0 : index
    %c0_12 = arith.constant 0 : index
    %c0_13 = arith.constant 0 : index
    %9 = vector.load %arg2[%c0_10, %c0_11, %c0_12, %c0_13] : memref<1x1x2x256xbf16, #tpu.memory_space<vmem>>, vector<1x1x2x256xbf16>
    %10 = vector.shape_cast %9 : vector<1x1x2x256xbf16> to vector<2x256xbf16>
    %c0_14 = arith.constant 0 : index
    %c0_15 = arith.constant 0 : index
    %c0_16 = arith.constant 0 : index
    %c0_17 = arith.constant 0 : index
    %11 = vector.load %arg3[%c0_14, %c0_15, %c0_16, %c0_17] : memref<1x1x2x256xbf16, #tpu.memory_space<vmem>>, vector<1x1x2x256xbf16>
    %12 = vector.shape_cast %11 : vector<1x1x2x256xbf16> to vector<2x256xbf16>
    %13 = vector.extract_strided_slice %10 {offsets = [0, 0], sizes = [1, 256], strides = [1, 1]} : vector<2x256xbf16> to vector<1x256xbf16>
    %cst = arith.constant dense<0.000000e+00> : vector<1x128xf32>
    %14 = tpu.matmul %13, %1, %cst {dimension_numbers = #tpu.dot_dimension_numbers<[1], [0], [0], [1], [0, 0, 1, 1], [], []>} : vector<1x256xbf16>, vector<256x128xbf16>, vector<1x128xf32> -> vector<1x128xf32>
    %15 = vector.extract_strided_slice %10 {offsets = [1, 0], sizes = [1, 256], strides = [1, 1]} : vector<2x256xbf16> to vector<1x256xbf16>
    %cst_18 = arith.constant dense<0.000000e+00> : vector<1x128xf32>
    %16 = tpu.matmul %15, %3, %cst_18 {dimension_numbers = #tpu.dot_dimension_numbers<[1], [0], [0], [1], [0, 0, 1, 1], [], []>} : vector<1x256xbf16>, vector<256x128xbf16>, vector<1x128xf32> -> vector<1x128xf32>
    %17 = arith.addf %14, %16 : vector<1x128xf32>
    %18 = vector.extract_strided_slice %12 {offsets = [0, 0], sizes = [1, 256], strides = [1, 1]} : vector<2x256xbf16> to vector<1x256xbf16>
    %cst_19 = arith.constant dense<0.000000e+00> : vector<1x128xf32>
    %19 = tpu.matmul %18, %5, %cst_19 {dimension_numbers = #tpu.dot_dimension_numbers<[1], [0], [0], [1], [0, 0, 1, 1], [], []>} : vector<1x256xbf16>, vector<256x128xbf16>, vector<1x128xf32> -> vector<1x128xf32>
    %20 = arith.addf %17, %19 : vector<1x128xf32>
    %21 = vector.extract_strided_slice %12 {offsets = [1, 0], sizes = [1, 256], strides = [1, 1]} : vector<2x256xbf16> to vector<1x256xbf16>
    %cst_20 = arith.constant dense<0.000000e+00> : vector<1x128xf32>
    %22 = tpu.matmul %21, %7, %cst_20 {dimension_numbers = #tpu.dot_dimension_numbers<[1], [0], [0], [1], [0, 0, 1, 1], [], []>} : vector<1x256xbf16>, vector<256x128xbf16>, vector<1x128xf32> -> vector<1x128xf32>
    %23 = arith.addf %20, %22 : vector<1x128xf32>
    %24 = arith.addf %23, %8 : vector<1x128xf32>
    %c0_21 = arith.constant 0 : index
    %c0_22 = arith.constant 0 : index
    %c0_23 = arith.constant 0 : index
    %c0_24 = arith.constant 0 : index
    %25 = vector.load %arg6[%c0_21, %c0_22, %c0_23, %c0_24] : memref<1x1x1x128xf32, #tpu.memory_space<vmem>>, vector<1x1x1x128xf32>
    %26 = vector.shape_cast %25 : vector<1x1x1x128xf32> to vector<1x128xf32>
    %27 = vector.shape_cast %24 : vector<1x128xf32> to vector<1x1x1x128xf32>
    tpu.vector_store %arg6[%c0_21, %c0_22, %c0_23, %c0_24], %27 {strides = array<i32>} : memref<1x1x1x128xf32, #tpu.memory_space<vmem>>, vector<1x1x1x128xf32>,
    return
  }
  func.func @transform_0(%arg0: i32, %arg1: i32) -> (i32, i32, i32, i32) {
    %c0_i32 = arith.constant 0 : i32
    %c0_i32_0 = arith.constant 0 : i32
    %c0_i32_1 = arith.constant 0 : i32
    return %arg0, %arg1, %c0_i32, %c0_i32_0 : i32, i32, i32, i32
  }
  func.func @transform_1(%arg0: i32, %arg1: i32) -> (i32, i32, i32, i32) {
    %c1_i32 = arith.constant 1 : i32
    %0 = arith.addi %arg1, %c1_i32 : i32
    %c1_i32_0 = arith.constant 1 : i32
    %1 = arith.muli %0, %c1_i32_0 : i32
    %c0_i32 = arith.constant 0 : i32
    %c0_i32_1 = arith.constant 0 : i32
    %c0_i32_2 = arith.constant 0 : i32
    return %arg0, %1, %c0_i32, %c0_i32_1 : i32, i32, i32, i32
  }
  func.func @transform_2(%arg0: i32, %arg1: i32) -> (i32, i32, i32) {
    %c0_i32 = arith.constant 0 : i32
    %c0_i32_0 = arith.constant 0 : i32
    %c0_i32_1 = arith.constant 0 : i32
    %c0_i32_2 = arith.constant 0 : i32
    return %c0_i32, %c0_i32_0, %c0_i32_1 : i32, i32, i32
  }
  func.func @transform_3(%arg0: i32, %arg1: i32) -> (i32, i32) {
    %c0_i32 = arith.constant 0 : i32
    %c0_i32_0 = arith.constant 0 : i32
    %c0_i32_1 = arith.constant 0 : i32
    return %c0_i32, %c0_i32_0 : i32, i32
  }
  func.func @transform_4(%arg0: i32, %arg1: i32) -> (i32, i32, i32, i32) {
    %c0_i32 = arith.constant 0 : i32
    %c0_i32_0 = arith.constant 0 : i32
    %c0_i32_1 = arith.constant 0 : i32
    return %arg0, %arg1, %c0_i32, %c0_i32_0 : i32, i32, i32, i32
  }
}

</mosaic_0001>

<bundles_post_ra>
// kernel: fc_discriminator_forward.5
= control target key start
LH: loop header
LB: loop body
LE: loop exit
PB: predicated region body
PF: predicated region fallthrough
CT: control target
= control target key end

     0   :  { %s3067_s15 = smov 0   ;;  %s3069_s16 = smov 0   ;;  %s3491_s0 = inlined_call_operand.vmem [shape: bf16[2,17,17,16], index: 0, kind: input, shape index: {}, may-alias: {0,1}]   ;;  %s3492_s1 = inlined_call_operand.vmem [shape: bf16[2,17,17,16], index: 1, kind: input, shape index: {}, may-alias: {0,1}]   ;;  %s3493_s2 = inlined_call_operand.vmem [shape: bf16[4,16,128], index: 2, kind: input, shape index: {}]   ;;  %s3494_s3 = inlined_call_operand.vmem [shape: f32[1,128], index: 3, kind: input, shape index: {}]   ;;  %s3495_s4 = inlined_call_operand.vmem [shape: bf16[2,16,16,128], index: 4, kind: output, shape index: {}]  }
   0x1   :  { %s3071_s17 = smov 0   ;;  %s3073_s18 = smov 0  }
   0x2   :  { %s3075_s19 = smov 0  }
   0x3 LB: > { %s23_s20 = sadd.s32 1, %s3030_s17  ;;  %s26_s21 = sadd.s32 1, %s3034_s18  ;;  %s3038_s19 = sphi %s3075_s19, %s14_s19   ;;  %s3034_s18 = sphi %s3073_s18, %s3500_s18   ;;  %s3030_s17 = sphi %s3071_s17, %s3499_s17   ;;  %s3026_s16 = sphi %s3069_s16, %s3498_s16   ;;  %s3022_s15 = sphi %s3067_s15, %s3497_s15  }
   0x4   : > { %p24_p0 = scmp.ge.s32.totalorder %s23_s20, 2  ;;  %p2436_p1 = scmp.ge.s32.totalorder %s3038_s19, 1 }
   0x5   : > { %p218_p2 = scmp.lt.s32.totalorder %s3038_s19, 5 }
   0x6   : > { %s3502_s20 = smov (%p24_p0, %s23_s20), 0  ;;  %s3504_s21 = smov (!%p24_p0, %s26_s21), %s3034_s18 }
   0x7   : > { %p219_p3 = pnand %p2436_p1, %p218_p2  ;;  %p28_p4 = scmp.ge.s32.totalorder %s3504_s21, 2 }
   0x8   : > { %v3100_v0 = vld [vmem:[%s3493_s2 + $0x8] sm:$0xff] (!%p219_p3)   ;;  %v3040_v1 = vmov (!%p219_p3), 0.0   ;;  %v3107_v2 = vld [vmem:[%s3493_s2] sm:$0xff] (!%p219_p3)   ;;  %vm3041_vm0 = vmmov (!%p219_p3), 0   ;;  %s3112_s26 = sshll.u32 (!%p219_p3), %s3022_s15, 3  ;;  %p276_p5 = scmp.lt.s32.totalorder (!%p219_p3), %s3026_s16, 1 }
   0x9   : > { %s3506_s21 = smov (%p28_p4, %s3504_s21), 0  ;;  %222 = sbr.rel (%p219_p3) target bundleno = 378 (0x17a), region = 36 }
   0xa   : > { %2727 = vmatprep.subr.bf16.mxu0 (!%p219_p3), %v3040_v1  ;;  %2733 = vmatprep.subr.bf16.mxu1 (!%p219_p3), %v3040_v1  ;;  %p278_p6 = scmp.lt.s32.totalorder (!%p219_p3), %s3112_s26, 16  ;;  %vm362_vm1 = vcmask (!%p219_p3), 130048   ;;  %vm343_vm2 = vsmask.f32 (!%p219_p3), 7424  ;;  %v3134_v3 = vld [vmem:[%s3493_s2 + $0x18] sm:$0xff] (!%p219_p3)   ;;  %v3149_v18 = vld [vmem:[%s3493_s2 + $0x10] sm:$0xff] (!%p219_p3)  }
   0xb   : > { %2728 = vmatpush3.bf16.msra.mxu0 (!%p219_p3), %v3100_v0  ;;  %2735 = vmatprep.mubr.msk.bf16.mxu1 (!%p219_p3), %vm3041_vm0, %v3040_v1  ;;  %s2599_s13 = sadd.s32 (!%p219_p3), 8, %s3112_s26  ;;  %p307_p8 = scmp.lt.s32.totalorder (!%p219_p3), %s3112_s26, 15 }
   0xc   : > { %2734 = vmatpush3.bf16.msra.mxu1 (!%p219_p3), %v3107_v2  ;;  %2729 = vmatprep.mubr.msk.bf16.mxu0 (!%p219_p3), %vm3041_vm0, %v3040_v1  ;;  %p3174_p7 = scmp.lt.s32.totalorder (!%p219_p3), %s2599_s13, 16 }
   0xd   : > { %2739 = vmatprep.subr.bf16.mxu0 (!%p219_p3), %v3040_v1  ;;  %2745 = vmatprep.subr.bf16.mxu1 (!%p219_p3), %v3040_v1 }
  0x10   : > { %s3508_s16 = smov (!%p276_p5, %s3026_s16), 1  ;;  %s3510_s13 = smov (!%p3174_p7, %s2599_s13), 16 }
  0x11   : > { %s279_s27 = scalar_select %p278_p6, %s3112_s26, 16 }
  0x12   : > { %s2920_s28 = smul.u32 51, %s3508_s16  ;;  %s3512_s26 = smov (!%p307_p8, %s3112_s26), 15 }
  0x13   : > { %s2919_s29 = smul.u32 3, %s279_s27 }
  0x14   : > { %s2921_s15 = smul.u32 3, %s3510_s13 }
  0x15   : > { %s282_s30 = sadd.s32 %s2920_s28, %s2919_s29 }
  0x16   : > { %s2438_s5 = sshll.u32 %s282_s30, 2  ;;  %s299_s22 = sadd.s32 %s2921_s15, %s2920_s28 }
  0x17   : > { %s3129_s8 = scalar_lea.vmem %s3491_s0, %s2438_s5  ;;  %s2440_s23 = sshll.u32 %s299_s22, 2 }
  0x18   : > { %v2966_v4 = vld [vmem:[%s3129_s8] sm:$0xff]   ;;  %v2967_v5 = vld [vmem:[%s3129_s8 + $0x8] ss:$0 sps:$4 sm:$0x11]   ;;  %v2970_v6 = vld [vmem:[%s3129_s8 + $0xc] sm:$0xff]   ;;  %s301_s27 = scalar_lea.vmem %s3492_s1, %s2440_s23  ;;  %s2442_s30 = sshll.u32 %s3512_s26, 1 }
  0x19   : > { %2736 = vmatmul.mubr.msk.bf16.vlgmr.msra.gmra.mrb[0].mxu1 %vm362_vm1, %v2966_v4  ;;  %v345_v7 = vshrl.u32 %v2966_v4, 16  ;;  %v347_v8 = vshll.u32 %v2966_v4, 16  ;;  %v352_v9 = vshll.u32 %v2967_v5, 16  ;;  %v2971_v10 = vld [vmem:[%s3129_s8 + $0x14] ss:$0 sps:$4 sm:$0x11]  }
  0x1a   : > { %2746 = vmatpush3.bf16.msra.mxu1 %v3134_v3  ;;  %2747 = vmatprep.mubr.msk.bf16.mxu1 %vm3041_vm0, %v3040_v1  ;;  %v516_v12 = vshrl.u32 %v2970_v6, 16  ;;  %v518_v13 = vshll.u32 %v2970_v6, 16  ;;  %v2972_v14 = vld [vmem:[%s3129_s8 + $0xc] sm:$0xff]   ;;  %v523_v16 = vshll.u32 %v2971_v10, 16  ;;  %v3153_v23 = vld [vmem:[%s3129_s8 + $0x18] sm:$0xff]   ;;  %v3181_v36 = vld [vmem:[%s3129_s8 + $0x24] sm:$0xff]  }
  0x1b   : > { %v349_v11 = vrot.slane %v347_v8, 1  ;;  %2757 = vmatprep.subr.bf16.mxu1 %v3040_v1  ;;  %v354_v15 = vrot.slane %v352_v9, 1  ;;  %v2973_v24 = vld [vmem:[%s3129_s8 + $0x14] ss:$0 sps:$4 sm:$0x11]   ;;  %v621_v25 = vshll.u32 %v2972_v14, 16 }
  0x1c   : > { %v520_v19 = vrot.slane %v518_v13, 1  ;;  %v525_v20 = vrot.slane %v523_v16, 1  ;;  %v2975_v27 = vld [vmem:[%s3129_s8 + $0x20] ss:$0 sps:$4 sm:$0x11]   ;;  %v773_v29 = vshll.u32 %v3153_v23, 16 }
  0x1d   : > { %v350_v17 = vor.u32 %v349_v11, %v345_v7  ;;  %v2977_v28 = vld [vmem:[%s3129_s8 + $0x20] ss:$0 sps:$4 sm:$0x11]   ;;  %v3171_v30 = vld [vmem:[%s3129_s8 + $0x18] sm:$0xff]   ;;  %v619_v31 = vshrl.u32 %v2972_v14, 16  ;;  %v623_v32 = vrot.slane %v621_v25, 1 }
  0x1e   : > { %v521_v22 = vor.u32 %v520_v19, %v516_v12  ;;  %v626_v33 = vshll.u32 %v2973_v24, 16  ;;  %v2979_v34 = vld [vmem:[%s3129_s8 + $0x2c] ss:$0 sps:$4 sm:$0x11]   ;;  %v771_v35 = vshrl.u32 %v3153_v23, 16  ;;  %v775_v37 = vrot.slane %v773_v29, 1 }
  0x1f   : > { %v355_v21 = vsel %vm343_vm2, %v350_v17, %v354_v15  ;;  %v778_v38 = vshll.u32 %v2975_v27, 16  ;;  %v865_v39 = vshll.u32 %v3171_v30, 16  ;;  %v870_v40 = vshll.u32 %v2977_v28, 16  ;;  %v3197_v46 = vld [vmem:[%s3129_s8 + $0x30] sm:$0xff]   ;;  %v3211_v56 = vld [vmem:[%s3129_s8 + $0x3c] sm:$0xff]   ;;  %v3245_v24 = vld [vmem:[%s3129_s8 + $0x48] sm:$0xff]  }
  0x20   : > { %2730 = vmatmul.mubr.msk.bf16.vlgmr.msra.gmra.mrb[0].mxu0 %vm362_vm1, %v355_v21  ;;  %v526_v26 = vsel %vm343_vm2, %v521_v22, %v525_v20  ;;  %v624_v41 = vor.u32 %v623_v32, %v619_v31  ;;  %v628_v42 = vrot.slane %v626_v33, 1  ;;  %v863_v43 = vshrl.u32 %v3171_v30, 16  ;;  %v2985_v52 = vld [vmem:[%s3129_s8 + $0x38] ss:$0 sps:$4 sm:$0x11]   ;;  %v3220_v5 = vld [vmem:[%s3129_s8 + $0x3c] sm:$0xff]  }
  0x21   : > { %2740 = vmatpush3.bf16.msra.mxu0 %v3149_v18  ;;  %2741 = vmatprep.mubr.msk.bf16.mxu0 %vm3041_vm0, %v3040_v1  ;;  %v1017_v44 = vshll.u32 %v3181_v36, 16  ;;  %v1022_v45 = vshll.u32 %v2979_v34, 16  ;;  %v776_v47 = vor.u32 %v775_v37, %v771_v35  ;;  %v780_v48 = vrot.slane %v778_v38, 1  ;;  %v2987_v60 = vld [vmem:[%s3129_s8 + $0x44] ss:$0 sps:$4 sm:$0x11]  }
  0x22   : > { %2748 = vmatmul.mubr.msk.bf16.vlgmr.msra.gmra.mrb[4].mxu1 %vm362_vm1, %v526_v26  ;;  %2751 = vmatprep.subr.bf16.mxu0 %v3040_v1  ;;  %v1015_v49 = vshrl.u32 %v3181_v36, 16  ;;  %v867_v50 = vrot.slane %v865_v39, 1  ;;  %v3204_v51 = vrot.slane %v870_v40, 1  ;;  %v1351_v53 = vshrl.u32 %v3197_v46, 16  ;;  %v3251_v28 = vld [vmem:[%s3129_s8 + $0x54] sm:$0xff]   ;;  %s2443_s5 = sshll.u32 %s3508_s16, 5 }
  0x23   : > { %2758 = vmatpush3.bf16.msra.mxu1 %v3107_v2  ;;  %2759 = vmatprep.mubr.msk.bf16.mxu1 %vm3041_vm0, %v3040_v1  ;;  %v629_v54 = vsel %vm343_vm2, %v624_v41, %v628_v42  ;;  %v1353_v55 = vshll.u32 %v3197_v46, 16  ;;  %v1019_v57 = vrot.slane %v1017_v44, 1  ;;  %v3213_v58 = vrot.slane %v1022_v45, 1  ;;  %v2989_v10 = vld [vmem:[%s3129_s8 + $0x44] ss:$0 sps:$4 sm:$0x11]   ;;  %s311_s6 = sadd.s32 %s2443_s5, %s2442_s30 }
  0x24   : > { %2769 = vmatprep.subr.bf16.mxu1 %v3040_v1  ;;  %v1358_v59 = vshll.u32 %v2985_v52, 16  ;;  %v781_v61 = vsel %vm343_vm2, %v776_v47, %v780_v48  ;;  %v1503_v63 = vshrl.u32 %v3211_v56, 16  ;;  %v1505_v4 = vshll.u32 %v3211_v56, 16  ;;  %v2991_v20 = vld [vmem:[%s3129_s8 + $0x50] ss:$0 sps:$4 sm:$0x11]  }
  0x25   : > { %v1355_v62 = vrot.slane %v1353_v55, 1  ;;  %v1510_v7 = vshll.u32 %v2987_v60, 16  ;;  %v1595_v11 = vshrl.u32 %v3220_v5, 16  ;;  %v1597_v12 = vshll.u32 %v3220_v5, 16  ;;  %v3264_v44 = vld [vmem:[%s3129_s8 + $0x54] sm:$0xff]   ;;  %s2444_s7 = sshll.u32 %s311_s6, 2 }
  0x26   : > { %v1507_v9 = vrot.slane %v1505_v4, 1  ;;  %v1602_v19 = vshll.u32 %v2989_v10, 16  ;;  %v1754_v31 = vshll.u32 %v2991_v20, 16  ;;  %v2993_v32 = vld [vmem:[%s3129_s8 + $0x50] ss:$0 sps:$4 sm:$0x11]   ;;  %v868_v34 = vor.u32 %v867_v50, %v863_v43 }
  0x27   : > { %v1356_v8 = vor.u32 %v1355_v62, %v1351_v53  ;;  %v1512_v13 = vrot.slane %v1510_v7, 1  ;;  %v1599_v17 = vrot.slane %v1597_v12, 1  ;;  %v1839_v33 = vshrl.u32 %v3245_v24, 16  ;;  %v2995_v45 = vld [vmem:[%s3129_s8 + $0x5c] ss:$0 sps:$4 sm:$0x11]  }
  0x28   : > { %2742 = vmatmul.mubr.msk.bf16.vlgmr.msra.gmra.mrb[4].mxu0 %vm362_vm1, %v2970_v6  ;;  %v1360_v6 = vrot.slane %v1358_v59, 1  ;;  %v1508_v16 = vor.u32 %v1507_v9, %v1503_v63  ;;  %v1604_v27 = vrot.slane %v1602_v19, 1  ;;  %v1841_v37 = vshll.u32 %v3245_v24, 16  ;;  %v2997_v53 = vld [vmem:[%s3129_s8 + $0x5c] ss:$0 sps:$4 sm:$0x11]  }
  0x29   : > { %2752 = vmatpush3.bf16.msra.mxu0 %v3100_v0  ;;  %2753 = vmatprep.mubr.msk.bf16.mxu0 %vm3041_vm0, %v3040_v1  ;;  %v1600_v26 = vor.u32 %v1599_v17, %v1595_v11  ;;  %v1991_v38 = vshrl.u32 %v3251_v28, 16  ;;  %v1756_v40 = vrot.slane %v1754_v31, 1  ;;  %v1846_v41 = vshll.u32 %v2993_v32, 16  ;;  %v2981_v9 = vld [vmem:[%s3129_s8 + $0x2c] ss:$0 sps:$4 sm:$0x11]  }
  0x2a   : > { %2760 = vmatmul.mubr.msk.bf16.vlgmr.msra.gmra.mrb[8].mxu1 %vm362_vm1, %v2972_v14  ;;  %2763 = vmatprep.subr.bf16.mxu0 %v3040_v1  ;;  %v3232_v14 = vld [vmem:[%s3129_s8 + $0x48] sm:$0xff]   ;;  %v3238_v15 = vsel %vm343_vm2, %v1356_v8, %v1360_v6  ;;  %v3248_v25 = vsel %vm343_vm2, %v1508_v16, %v1512_v13  ;;  %v1993_v42 = vshll.u32 %v3251_v28, 16  ;;  %v1843_v43 = vrot.slane %v1841_v37, 1  ;;  %v2982_v6 = vld [vmem:[%s3129_s8 + $0x30] sm:$0xff]   ;;  %v3313_v11 = vld [vmem:[%s301_s27] sm:$0xff]  }
  0x2b   : > { %2770 = vmatpush3.bf16.msra.mxu1 %v3134_v3  ;;  %2771 = vmatprep.mubr.msk.bf16.mxu1 %vm3041_vm0, %v3040_v1  ;;  %v1747_v21 = vshrl.u32 %v3232_v14, 16  ;;  %v1749_v22 = vshll.u32 %v3232_v14, 16  ;;  %v3256_v35 = vsel %vm343_vm2, %v1600_v26, %v1604_v27  ;;  %v1848_v48 = vrot.slane %v1846_v41, 1  ;;  %v2999_v12 = vld [vmem:[%s301_s27 + $0x8] ss:$0 sps:$4 sm:$0x11]  }
  0x2c   : > { %2781 = vmatprep.subr.bf16.mxu1 %v3040_v1  ;;  %v1995_v50 = vrot.slane %v1993_v42, 1  ;;  %v1844_v52 = vor.u32 %v1843_v43, %v1839_v33  ;;  %v2084_v55 = vshll.u32 %v3264_v44, 16  ;;  %v2089_v63 = vshll.u32 %v2997_v53, 16  ;;  %v2983_v13 = vld [vmem:[%s3129_s8 + $0x38] ss:$0 sps:$4 sm:$0x11]  }
  0x2d   : > { %v1751_v29 = vrot.slane %v1749_v22, 1  ;;  %v1261_v16 = vshll.u32 %v2982_v6, 16  ;;  %v2234_v17 = vshrl.u32 %v3313_v11, 16  ;;  %v2236_v19 = vshll.u32 %v3313_v11, 16 }
  0x2e   : > { %v1996_v59 = vor.u32 %v1995_v50, %v1991_v38  ;;  %v3290_v60 = vsel %vm343_vm2, %v1844_v52, %v1848_v48  ;;  %v2086_v62 = vrot.slane %v2084_v55, 1  ;;  %v2091_v8 = vrot.slane %v2089_v63, 1 }
  0x2f   : > { %v1752_v39 = vor.u32 %v1751_v29, %v1747_v21  ;;  %v2241_v20 = vshll.u32 %v2999_v12, 16  ;;  %v1114_v26 = vshll.u32 %v2981_v9, 16  ;;  %v2238_v27 = vrot.slane %v2236_v19, 1 }
  0x30   : > { %2754 = vmatmul.mubr.msk.bf16.vlgmr.msra.gmra.mrb[8].mxu0 %vm362_vm1, %v629_v54  ;;  %v2082_v54 = vshrl.u32 %v3264_v44, 16  ;;  %v1259_v31 = vshrl.u32 %v2982_v6, 16  ;;  %v1263_v32 = vrot.slane %v1261_v16, 1  ;;  %v1266_v33 = vshll.u32 %v2983_v13, 16 }
  0x31   : > { %2764 = vmatpush3.bf16.msra.mxu0 %v3149_v18  ;;  %2765 = vmatprep.mubr.msk.bf16.mxu0 %vm3041_vm0, %v3040_v1  ;;  %v3276_v47 = vsel %vm343_vm2, %v1752_v39, %v1756_v40  ;;  %v2243_v29 = vrot.slane %v2241_v20, 1  ;;  %v1116_v38 = vrot.slane %v1114_v26, 1 }
  0x32   : > { %2772 = vmatmul.mubr.msk.bf16.vlgmr.msra.gmra.mrb[12].mxu1 %vm362_vm1, %v781_v61  ;;  %2775 = vmatprep.subr.bf16.mxu0 %v3040_v1  ;;  %v2087_v7 = vor.u32 %v2086_v62, %v2082_v54  ;;  %v1268_v40 = vrot.slane %v1266_v33, 1 }
  0x33   : > { %2782 = vmatpush3.bf16.msra.mxu1 %v3107_v2  ;;  %2783 = vmatprep.mubr.msk.bf16.mxu1 %vm3041_vm0, %v3040_v1 }
  0x34   : > { %2793 = vmatprep.subr.bf16.mxu1 %v3040_v1 }
  0x38   : > { %2766 = vmatmul.mubr.msk.bf16.vlgmr.msra.gmra.mrb[12].mxu0 %vm362_vm1, %v3153_v23  ;;  %v1020_v23 = vor.u32 %v1019_v57, %v1015_v49  ;;  %v873_v49 = vsel %vm343_vm2, %v868_v34, %v3204_v51  ;;  %v2980_v57 = vld [vmem:[%s3129_s8 + $0x24] sm:$0xff]   ;;  %v2239_v34 = vor.u32 %v2238_v27, %v2234_v17  ;;  %s3452_s8 = scalar_lea.vmem %s3495_s4, %s2444_s7 }
  0x39   : > { %2776 = vmatpush3.bf16.msra.mxu0 %v3100_v0  ;;  %2777 = vmatprep.mubr.msk.bf16.mxu0 %vm3041_vm0, %v3040_v1  ;;  %v1109_v10 = vshll.u32 %v2980_v57, 16  ;;  %v1107_v21 = vshrl.u32 %v2980_v57, 16 }
  0x3a   : > { %2784 = vmatmul.mubr.msk.bf16.vlgmr.msra.gmra.mrb[16].mxu1 %vm362_vm1, %v3171_v30  ;;  %2787 = vmatprep.subr.bf16.mxu0 %v3040_v1  ;;  %v1998_v30 = vshll.u32 %v2995_v45, 16  ;;  %v1025_v4 = vsel %vm343_vm2, %v1020_v23, %v3213_v58  ;;  %v3309_v58 = vsel %vm343_vm2, %v2087_v7, %v2091_v8  ;;  %v3330_v39 = vsel %vm343_vm2, %v2239_v34, %v2243_v29  ;;  %v3444_v23 = vld [vmem:[%s3494_s3] ss:$0 sm:$0xff] }
  0x3b   : > { %2794 = vmatpush3.bf16.msra.mxu1 %v3134_v3  ;;  %2795 = vmatprep.mubr.msk.bf16.mxu1 %vm3041_vm0, %v3040_v1  ;;  %v1111_v22 = vrot.slane %v1109_v10, 1 }
  0x3c   : > { %2805 = vmatprep.subr.bf16.mxu1 %v3040_v1  ;;  %v2000_v61 = vrot.slane %v1998_v30, 1 }
  0x3d   : > { %v1112_v37 = vor.u32 %v1111_v22, %v1107_v21 }
  0x3e   : > { %v3298_v51 = vsel %vm343_vm2, %v1996_v59, %v2000_v61 }
  0x3f   : > { %v1117_v41 = vsel %vm343_vm2, %v1112_v37, %v1116_v38 }
  0x40   : > { %2778 = vmatmul.mubr.msk.bf16.vlgmr.msra.gmra.mrb[16].mxu0 %vm362_vm1, %v873_v49 }
  0x41   : > { %2788 = vmatpush3.bf16.msra.mxu0 %v3149_v18  ;;  %2789 = vmatprep.mubr.msk.bf16.mxu0 %vm3041_vm0, %v3040_v1 }
  0x42   : > { %2796 = vmatmul.mubr.msk.bf16.vlgmr.msra.gmra.mrb[20].mxu1 %vm362_vm1, %v1025_v4  ;;  %2799 = vmatprep.subr.bf16.mxu0 %v3040_v1 }
  0x43   : > { %2806 = vmatpush3.bf16.msra.mxu1 %v3107_v2  ;;  %2807 = vmatprep.mubr.msk.bf16.mxu1 %vm3041_vm0, %v3040_v1 }
  0x44   : > { %2817 = vmatprep.subr.bf16.mxu1 %v3040_v1 }
  0x48   : > { %2790 = vmatmul.mubr.msk.bf16.vlgmr.msra.gmra.mrb[20].mxu0 %vm362_vm1, %v3181_v36  ;;  %v1264_v36 = vor.u32 %v1263_v32, %v1259_v31 }
  0x49   : > { %2800 = vmatpush3.bf16.msra.mxu0 %v3100_v0  ;;  %2801 = vmatprep.mubr.msk.bf16.mxu0 %vm3041_vm0, %v3040_v1 }
  0x4a   : > { %2808 = vmatmul.mubr.msk.bf16.vlgmr.msra.gmra.mrb[24].mxu1 %vm362_vm1, %v2980_v57  ;;  %2811 = vmatprep.subr.bf16.mxu0 %v3040_v1  ;;  %v1269_v42 = vsel %vm343_vm2, %v1264_v36, %v1268_v40 }
  0x4b   : > { %2818 = vmatpush3.bf16.msra.mxu1 %v3134_v3  ;;  %2819 = vmatprep.mubr.msk.bf16.mxu1 %vm3041_vm0, %v3040_v1 }
  0x4c   : > { %2829 = vmatprep.subr.bf16.mxu1 %v3040_v1 }
  0x50   : > { %2802 = vmatmul.mubr.msk.bf16.vlgmr.msra.gmra.mrb[24].mxu0 %vm362_vm1, %v1117_v41 }
  0x51   : > { %2812 = vmatpush3.bf16.msra.mxu0 %v3149_v18  ;;  %2813 = vmatprep.mubr.msk.bf16.mxu0 %vm3041_vm0, %v3040_v1 }
  0x52   : > { %2820 = vmatmul.mubr.msk.bf16.vlgmr.msra.gmra.mrb[28].mxu1 %vm362_vm1, %v1269_v42  ;;  %2823 = vmatprep.subr.bf16.mxu0 %v3040_v1 }
  0x53   : > { %2830 = vmatpush3.bf16.msra.mxu1 %v3107_v2  ;;  %2831 = vmatprep.mubr.msk.bf16.mxu1 %vm3041_vm0, %v3040_v1 }
  0x54   : > { %2841 = vmatprep.subr.bf16.mxu1 %v3040_v1 }
  0x58   : > { %2814 = vmatmul.mubr.msk.bf16.vlgmr.msra.gmra.mrb[28].mxu0 %vm362_vm1, %v2982_v6 }
  0x59   : > { %2824 = vmatpush3.bf16.msra.mxu0 %v3100_v0  ;;  %2825 = vmatprep.mubr.msk.bf16.mxu0 %vm3041_vm0, %v3040_v1 }
  0x5a   : > { %2832 = vmatmul.mubr.msk.bf16.vlgmr.msra.gmra.mrb[32].mxu1 %vm362_vm1, %v3197_v46  ;;  %2835 = vmatprep.subr.bf16.mxu0 %v3040_v1 }
  0x5b   : > { %2842 = vmatpush3.bf16.msra.mxu1 %v3134_v3  ;;  %2843 = vmatprep.mubr.msk.bf16.mxu1 %vm3041_vm0, %v3040_v1 }
  0x5c   : > { %2853 = vmatprep.subr.bf16.mxu1 %v3040_v1 }
  0x60   : > { %2826 = vmatmul.mubr.msk.bf16.vlgmr.msra.gmra.mrb[32].mxu0 %vm362_vm1, %v3238_v15 }
  0x61   : > { %2836 = vmatpush3.bf16.msra.mxu0 %v3149_v18  ;;  %2837 = vmatprep.mubr.msk.bf16.mxu0 %vm3041_vm0, %v3040_v1 }
  0x62   : > { %2844 = vmatmul.mubr.msk.bf16.vlgmr.msra.gmra.mrb[36].mxu1 %vm362_vm1, %v3248_v25  ;;  %2847 = vmatprep.subr.bf16.mxu0 %v3040_v1 }
  0x63   : > { %2854 = vmatpush3.bf16.msra.mxu1 %v3107_v2  ;;  %2855 = vmatprep.mubr.msk.bf16.mxu1 %vm3041_vm0, %v3040_v1 }
  0x64   : > { %2865 = vmatprep.subr.bf16.mxu1 %v3040_v1 }
  0x68   : > { %2838 = vmatmul.mubr.msk.bf16.vlgmr.msra.gmra.mrb[36].mxu0 %vm362_vm1, %v3211_v56 }
  0x69   : > { %2848 = vmatpush3.bf16.msra.mxu0 %v3100_v0  ;;  %2849 = vmatprep.mubr.msk.bf16.mxu0 %vm3041_vm0, %v3040_v1 }
  0x6a   : > { %2856 = vmatmul.mubr.msk.bf16.vlgmr.msra.gmra.mrb[40].mxu1 %vm362_vm1, %v3220_v5  ;;  %2859 = vmatprep.subr.bf16.mxu0 %v3040_v1 }
  0x6b   : > { %2866 = vmatpush3.bf16.msra.mxu1 %v3134_v3  ;;  %2867 = vmatprep.mubr.msk.bf16.mxu1 %vm3041_vm0, %v3040_v1 }
  0x6c   : > { %2877 = vmatprep.subr.bf16.mxu1 %v3040_v1 }
  0x70   : > { %2850 = vmatmul.mubr.msk.bf16.vlgmr.msra.gmra.mrb[40].mxu0 %vm362_vm1, %v3256_v35 }
  0x71   : > { %2860 = vmatpush3.bf16.msra.mxu0 %v3149_v18  ;;  %2861 = vmatprep.mubr.msk.bf16.mxu0 %vm3041_vm0, %v3040_v1 }
  0x72   : > { %2868 = vmatmul.mubr.msk.bf16.vlgmr.msra.gmra.mrb[44].mxu1 %vm362_vm1, %v3276_v47  ;;  %2871 = vmatprep.subr.bf16.mxu0 %v3040_v1 }
  0x73   : > { %2878 = vmatpush3.bf16.msra.mxu1 %v3107_v2  ;;  %2879 = vmatprep.mubr.msk.bf16.mxu1 %vm3041_vm0, %v3040_v1 }
  0x74   : > { %2889 = vmatprep.subr.bf16.mxu1 %v3040_v1 }
  0x78   : > { %2862 = vmatmul.mubr.msk.bf16.vlgmr.msra.gmra.mrb[44].mxu0 %vm362_vm1, %v3232_v14 }
  0x79   : > { %2872 = vmatpush3.bf16.msra.mxu0 %v3100_v0  ;;  %2873 = vmatprep.mubr.msk.bf16.mxu0 %vm3041_vm0, %v3040_v1 }
  0x7a   : > { %2880 = vmatmul.mubr.msk.bf16.vlgmr.msra.gmra.mrb[48].mxu1 %vm362_vm1, %v3245_v24  ;;  %2883 = vmatprep.subr.bf16.mxu0 %v3040_v1 }
  0x7b   : > { %2890 = vmatpush3.bf16.msra.mxu1 %v3134_v3  ;;  %2891 = vmatprep.mubr.msk.bf16.mxu1 %vm3041_vm0, %v3040_v1 }
  0x7c   : > { %2901 = vmatprep.subr.bf16.mxu1 %v3040_v1 }
  0x80   : > { %2874 = vmatmul.mubr.msk.bf16.vlgmr.msra.gmra.mrb[48].mxu0 %vm362_vm1, %v3290_v60 }
  0x81   : > { %2884 = vmatpush3.bf16.msra.mxu0 %v3149_v18  ;;  %2885 = vmatprep.mubr.msk.bf16.mxu0 %vm3041_vm0, %v3040_v1 }
  0x82   : > { %2892 = vmatmul.mubr.msk.bf16.vlgmr.msra.gmra.mrb[52].mxu1 %vm362_vm1, %v3298_v51  ;;  %2895 = vmatprep.subr.bf16.mxu0 %v3040_v1 }
  0x83   : > { %2902 = vmatpush3.bf16.msra.mxu1 %v3107_v2  ;;  %2903 = vmatprep.mubr.msk.bf16.mxu1 %vm3041_vm0, %v3040_v1 }
  0x84   : > { %2913 = vmatprep.subr.bf16.mxu1 %v3040_v1 }
  0x88   : > { %2886 = vmatmul.mubr.msk.bf16.vlgmr.msra.gmra.mrb[52].mxu0 %vm362_vm1, %v3251_v28 }
  0x89   : > { %2896 = vmatpush3.bf16.msra.mxu0 %v3100_v0  ;;  %2897 = vmatprep.mubr.msk.bf16.mxu0 %vm3041_vm0, %v3040_v1 }
  0x8a   : > { %2904 = vmatmul.mubr.msk.bf16.vlgmr.msra.gmra.mrb[56].mxu1 %vm362_vm1, %v3264_v44  ;;  %2907 = vmatprep.subr.bf16.mxu0 %v3040_v1 }
  0x8b   : > { %2914 = vmatpush3.bf16.msra.mxu1 %v3134_v3  ;;  %2915 = vmatprep.mubr.msk.bf16.mxu1 %vm3041_vm0, %v3040_v1 }
  0x90   : > { %2898 = vmatmul.mubr.msk.bf16.vlgmr.msra.gmra.mrb[56].mxu0 %vm362_vm1, %v3309_v58 }
  0x91   : > { %2908 = vmatpush3.bf16.msra.mxu0 %v3149_v18  ;;  %2909 = vmatprep.mubr.msk.bf16.mxu0 %vm3041_vm0, %v3040_v1 }
  0x92   : > { %2916 = vmatmul.mubr.msk.bf16.vlgmr.msra.gmra.mrb[60].mxu1 %vm362_vm1, %v3330_v39 }
  0x98   : > { %2910 = vmatmul.mubr.msk.bf16.vlgmr.msra.gmra.mrb[60].mxu0 %vm362_vm1, %v3313_v11 }
  0xec   : > { %v449_v0 = vpop.f32.mrb[0].mxu1 }
  0xed   : > { %v2737_v2 = vpop.f32.mrb[1].mxu1 }
  0xee   : > { %v452_v3 = vpop.f32.mrb[2].mxu1 }
  0xef   : > { %v2738_v46 = vpop.f32.mrb[3].mxu1 }
  0xf3   : > { %v400_v56 = vpop.f32.mrb[0].mxu0 }
  0xf4   : > { %v450_v5 = vadd.f32 %v449_v0, %v400_v56  ;;  %v2731_v14 = vpop.f32.mrb[1].mxu0 }
  0xf5   : > { %v403_v15 = vpop.f32.mrb[2].mxu0  ;;  %v570_v18 = vpop.f32.mrb[4].mxu1 }
  0xf6   : > { %v453_v24 = vadd.f32 %v452_v3, %v403_v15  ;;  %v2732_v1 = vpop.f32.mrb[3].mxu0  ;;  %v2749_v25 = vpop.f32.mrb[5].mxu1 }
  0xf7   : > { %v573_v28 = vpop.f32.mrb[6].mxu1 }
  0xf8   : > { %v2750_v35 = vpop.f32.mrb[7].mxu1 }
  0xfb   : > { %v504_v44 = vpop.f32.mrb[4].mxu0 }
  0xfc   : > { %v511_v43 = vadd.f32 %v504_v44, %v450_v5  ;;  %v2743_v45 = vpop.f32.mrb[5].mxu0 }
  0xfd   : > { %v507_v47 = vpop.f32.mrb[6].mxu0  ;;  %v710_v48 = vpop.f32.mrb[8].mxu1 }
  0xfe   : > { %v577_v50 = vadd.f32 %v570_v18, %v511_v43  ;;  %v512_v52 = vadd.f32 %v507_v47, %v453_v24  ;;  %v2744_v30 = vpop.f32.mrb[7].mxu0  ;;  %v2761_v53 = vpop.f32.mrb[9].mxu1 }
  0xff   : > { %v713_v54 = vpop.f32.mrb[10].mxu1 }
 0x100   : > { %v585_v55 = vadd.f32 %v3444_v23, %v577_v50  ;;  %v578_v49 = vadd.f32 %v573_v28, %v512_v52  ;;  %v2762_v57 = vpop.f32.mrb[11].mxu1 }
 0x102   : > { %v589_v59 = vmul.f32 0.2, %v585_v55  ;;  %v586_v60 = vadd.f32 %v3444_v23, %v578_v49  ;;  %vm587_vm3 = vcmp.ge.f32.partialorder %v585_v55, 0.0 }
 0x103   : > { %v667_v61 = vpop.f32.mrb[8].mxu0 }
 0x104   : > { %vm588_vm4 = vcmp.ge.f32.partialorder %v586_v60, 0.0  ;;  %v590_v62 = vmul.f32 0.2, %v586_v60  ;;  %v711_v63 = vadd.f32 %v710_v48, %v667_v61  ;;  %v2755_v4 = vpop.f32.mrb[9].mxu0  ;;  %v591_v7 = vsel %vm587_vm3, %v585_v55, %v589_v59 }
 0x105   : > { %v670_v6 = vpop.f32.mrb[10].mxu0  ;;  %v819_v51 = vpop.f32.mrb[12].mxu1 }
 0x106   : > { %v592_v8 = vsel %vm588_vm4, %v586_v60, %v590_v62  ;;  %v714_v9 = vadd.f32 %v713_v54, %v670_v6  ;;  %v2756_v10 = vpop.f32.mrb[11].mxu0  ;;  %v2773_v58 = vpop.f32.mrb[13].mxu1 }
 0x107   : > { %v2619_v11 = vpack.c.bf16 %v592_v8, %v591_v7  ;;  %v822_v12 = vpop.f32.mrb[14].mxu1 }
 0x108   : > { %v2774_v13 = vpop.f32.mrb[15].mxu1 }
 0x109   : > { %2620 = vst [vmem:[%s3452_s8] sm:$0xff] %v2619_v11  }
 0x10b   : > { %v759_v16 = vpop.f32.mrb[12].mxu0 }
 0x10c   : > { %v766_v17 = vadd.f32 %v759_v16, %v711_v63  ;;  %v2767_v19 = vpop.f32.mrb[13].mxu0 }
 0x10d   : > { %v762_v20 = vpop.f32.mrb[14].mxu0  ;;  %v954_v21 = vpop.f32.mrb[16].mxu1 }
 0x10e   : > { %v826_v22 = vadd.f32 %v819_v51, %v766_v17  ;;  %v767_v26 = vadd.f32 %v762_v20, %v714_v9  ;;  %v2768_v27 = vpop.f32.mrb[15].mxu0  ;;  %v2785_v29 = vpop.f32.mrb[17].mxu1 }
 0x10f   : > { %v957_v31 = vpop.f32.mrb[18].mxu1 }
 0x110   : > { %v828_v32 = vadd.f32 %v3444_v23, %v826_v22  ;;  %v827_v33 = vadd.f32 %v822_v12, %v767_v26  ;;  %v2786_v34 = vpop.f32.mrb[19].mxu1 }
 0x112   : > { %v832_v37 = vmul.f32 0.2, %v828_v32  ;;  %v829_v38 = vadd.f32 %v3444_v23, %v827_v33  ;;  %vm830_vm5 = vcmp.ge.f32.partialorder %v828_v32, 0.0 }
 0x113   : > { %v911_v39 = vpop.f32.mrb[16].mxu0 }
 0x114   : > { %vm831_vm6 = vcmp.ge.f32.partialorder %v829_v38, 0.0  ;;  %v833_v36 = vmul.f32 0.2, %v829_v38  ;;  %v955_v40 = vadd.f32 %v954_v21, %v911_v39  ;;  %v2779_v41 = vpop.f32.mrb[17].mxu0  ;;  %v834_v2 = vsel %vm830_vm5, %v828_v32, %v832_v37 }
 0x115   : > { %v914_v42 = vpop.f32.mrb[18].mxu0  ;;  %v1063_v0 = vpop.f32.mrb[20].mxu1 }
 0x116   : > { %v835_v3 = vsel %vm831_vm6, %v829_v38, %v833_v36  ;;  %v958_v46 = vadd.f32 %v957_v31, %v914_v42  ;;  %v2780_v56 = vpop.f32.mrb[19].mxu0  ;;  %v2797_v5 = vpop.f32.mrb[21].mxu1 }
 0x117   : > { %v2624_v14 = vpack.c.bf16 %v835_v3, %v834_v2  ;;  %v1066_v15 = vpop.f32.mrb[22].mxu1 }
 0x118   : > { %v2798_v18 = vpop.f32.mrb[23].mxu1 }
 0x119   : > { %2656 = vst [vmem:[%s3452_s8 + $0x8] sm:$0xff] %v2624_v14  }
 0x11b   : > { %v1003_v24 = vpop.f32.mrb[20].mxu0 }
 0x11c   : > { %v1010_v1 = vadd.f32 %v1003_v24, %v955_v40  ;;  %v2791_v25 = vpop.f32.mrb[21].mxu0 }
 0x11d   : > { %v1006_v28 = vpop.f32.mrb[22].mxu0  ;;  %v1198_v35 = vpop.f32.mrb[24].mxu1 }
 0x11e   : > { %v1070_v44 = vadd.f32 %v1063_v0, %v1010_v1  ;;  %v1011_v43 = vadd.f32 %v1006_v28, %v958_v46  ;;  %v2792_v45 = vpop.f32.mrb[23].mxu0  ;;  %v2809_v47 = vpop.f32.mrb[25].mxu1 }
 0x11f   : > { %v1201_v48 = vpop.f32.mrb[26].mxu1 }
 0x120   : > { %v1072_v50 = vadd.f32 %v3444_v23, %v1070_v44  ;;  %v1071_v52 = vadd.f32 %v1066_v15, %v1011_v43  ;;  %v2810_v30 = vpop.f32.mrb[27].mxu1 }
 0x122   : > { %v1076_v53 = vmul.f32 0.2, %v1072_v50  ;;  %v1073_v54 = vadd.f32 %v3444_v23, %v1071_v52  ;;  %vm1074_vm7 = vcmp.ge.f32.partialorder %v1072_v50, 0.0 }
 0x123   : > { %v1155_v55 = vpop.f32.mrb[24].mxu0 }
 0x124   : > { %vm1075_vm8 = vcmp.ge.f32.partialorder %v1073_v54, 0.0  ;;  %v1077_v49 = vmul.f32 0.2, %v1073_v54  ;;  %v1199_v57 = vadd.f32 %v1198_v35, %v1155_v55  ;;  %v2803_v59 = vpop.f32.mrb[25].mxu0  ;;  %v1078_v62 = vsel %vm1074_vm7, %v1072_v50, %v1076_v53 }
 0x125   : > { %v1158_v60 = vpop.f32.mrb[26].mxu0  ;;  %v1307_v61 = vpop.f32.mrb[28].mxu1 }
 0x126   : > { %v1079_v63 = vsel %vm1075_vm8, %v1073_v54, %v1077_v49  ;;  %v1202_v4 = vadd.f32 %v1201_v48, %v1158_v60  ;;  %v2804_v6 = vpop.f32.mrb[27].mxu0  ;;  %v2821_v51 = vpop.f32.mrb[29].mxu1 }
 0x127   : > { %v2629_v7 = vpack.c.bf16 %v1079_v63, %v1078_v62  ;;  %v1310_v8 = vpop.f32.mrb[30].mxu1 }
 0x128   : > { %v2822_v9 = vpop.f32.mrb[31].mxu1 }
 0x129   : > { %2657 = vst [vmem:[%s3452_s8 + $0x10] sm:$0xff] %v2629_v7  }
 0x12b   : > { %v1247_v10 = vpop.f32.mrb[28].mxu0 }
 0x12c   : > { %v1254_v58 = vadd.f32 %v1247_v10, %v1199_v57  ;;  %v2815_v11 = vpop.f32.mrb[29].mxu0 }
 0x12d   : > { %v1250_v12 = vpop.f32.mrb[30].mxu0  ;;  %v1442_v13 = vpop.f32.mrb[32].mxu1 }
 0x12e   : > { %v1314_v16 = vadd.f32 %v1307_v61, %v1254_v58  ;;  %v1255_v17 = vadd.f32 %v1250_v12, %v1202_v4  ;;  %v2816_v19 = vpop.f32.mrb[31].mxu0  ;;  %v2833_v20 = vpop.f32.mrb[33].mxu1 }
 0x12f   : > { %v1445_v21 = vpop.f32.mrb[34].mxu1 }
 0x130   : > { %v1316_v22 = vadd.f32 %v3444_v23, %v1314_v16  ;;  %v1315_v26 = vadd.f32 %v1310_v8, %v1255_v17  ;;  %v2834_v27 = vpop.f32.mrb[35].mxu1 }
 0x132   : > { %v1320_v29 = vmul.f32 0.2, %v1316_v22  ;;  %v1317_v31 = vadd.f32 %v3444_v23, %v1315_v26  ;;  %vm1318_vm9 = vcmp.ge.f32.partialorder %v1316_v22, 0.0 }
 0x133   : > { %v1399_v32 = vpop.f32.mrb[32].mxu0 }
 0x134   : > { %vm1319_vm10 = vcmp.ge.f32.partialorder %v1317_v31, 0.0  ;;  %v1321_v33 = vmul.f32 0.2, %v1317_v31  ;;  %v1443_v34 = vadd.f32 %v1442_v13, %v1399_v32  ;;  %v2827_v37 = vpop.f32.mrb[33].mxu0  ;;  %v1322_v36 = vsel %vm1318_vm9, %v1316_v22, %v1320_v29 }
 0x135   : > { %v1402_v38 = vpop.f32.mrb[34].mxu0  ;;  %v1551_v39 = vpop.f32.mrb[36].mxu1 }
 0x136   : > { %v1323_v40 = vsel %vm1319_vm10, %v1317_v31, %v1321_v33  ;;  %v1446_v41 = vadd.f32 %v1445_v21, %v1402_v38  ;;  %v2828_v42 = vpop.f32.mrb[35].mxu0  ;;  %v2845_v0 = vpop.f32.mrb[37].mxu1 }
 0x137   : > { %v2634_v2 = vpack.c.bf16 %v1323_v40, %v1322_v36  ;;  %v1554_v3 = vpop.f32.mrb[38].mxu1 }
 0x138   : > { %v2846_v46 = vpop.f32.mrb[39].mxu1 }
 0x139   : > { %2658 = vst [vmem:[%s3452_s8 + $0x18] sm:$0xff] %v2634_v2  }
 0x13b   : > { %v1491_v56 = vpop.f32.mrb[36].mxu0 }
 0x13c   : > { %v1498_v5 = vadd.f32 %v1491_v56, %v1443_v34  ;;  %v2839_v14 = vpop.f32.mrb[37].mxu0 }
 0x13d   : > { %v1494_v15 = vpop.f32.mrb[38].mxu0  ;;  %v1686_v18 = vpop.f32.mrb[40].mxu1 }
 0x13e   : > { %v1558_v24 = vadd.f32 %v1551_v39, %v1498_v5  ;;  %v1499_v1 = vadd.f32 %v1494_v15, %v1446_v41  ;;  %v2840_v25 = vpop.f32.mrb[39].mxu0  ;;  %v2857_v28 = vpop.f32.mrb[41].mxu1 }
 0x13f   : > { %v1689_v35 = vpop.f32.mrb[42].mxu1 }
 0x140   : > { %v1560_v44 = vadd.f32 %v3444_v23, %v1558_v24  ;;  %v1559_v43 = vadd.f32 %v1554_v3, %v1499_v1  ;;  %v2858_v45 = vpop.f32.mrb[43].mxu1 }
 0x142   : > { %v1564_v47 = vmul.f32 0.2, %v1560_v44  ;;  %v1561_v48 = vadd.f32 %v3444_v23, %v1559_v43  ;;  %vm1562_vm11 = vcmp.ge.f32.partialorder %v1560_v44, 0.0 }
 0x143   : > { %v1643_v50 = vpop.f32.mrb[40].mxu0 }
 0x144   : > { %vm1563_vm12 = vcmp.ge.f32.partialorder %v1561_v48, 0.0  ;;  %v1565_v52 = vmul.f32 0.2, %v1561_v48  ;;  %v1687_v30 = vadd.f32 %v1686_v18, %v1643_v50  ;;  %v2851_v53 = vpop.f32.mrb[41].mxu0  ;;  %v1566_v49 = vsel %vm1562_vm11, %v1560_v44, %v1564_v47 }
 0x145   : > { %v1646_v54 = vpop.f32.mrb[42].mxu0  ;;  %v1795_v55 = vpop.f32.mrb[44].mxu1 }
 0x146   : > { %v1567_v57 = vsel %vm1563_vm12, %v1561_v48, %v1565_v52  ;;  %v1690_v59 = vadd.f32 %v1689_v35, %v1646_v54  ;;  %v2852_v60 = vpop.f32.mrb[43].mxu0  ;;  %v2869_v61 = vpop.f32.mrb[45].mxu1 }
 0x147   : > { %v2639_v62 = vpack.c.bf16 %v1567_v57, %v1566_v49  ;;  %v1798_v63 = vpop.f32.mrb[46].mxu1 }
 0x148   : > { %v2870_v4 = vpop.f32.mrb[47].mxu1 }
 0x149   : > { %2659 = vst [vmem:[%s3452_s8 + $0x20] sm:$0xff] %v2639_v62  }
 0x14b   : > { %v1735_v6 = vpop.f32.mrb[44].mxu0 }
 0x14c   : > { %v1742_v51 = vadd.f32 %v1735_v6, %v1687_v30  ;;  %v2863_v7 = vpop.f32.mrb[45].mxu0 }
 0x14d   : > { %v1738_v8 = vpop.f32.mrb[46].mxu0  ;;  %v1930_v9 = vpop.f32.mrb[48].mxu1 }
 0x14e   : > { %v1802_v10 = vadd.f32 %v1795_v55, %v1742_v51  ;;  %v1743_v58 = vadd.f32 %v1738_v8, %v1690_v59  ;;  %v2864_v11 = vpop.f32.mrb[47].mxu0  ;;  %v2881_v12 = vpop.f32.mrb[49].mxu1 }
 0x14f   : > { %v1933_v13 = vpop.f32.mrb[50].mxu1 }
 0x150   : > { %v1804_v16 = vadd.f32 %v3444_v23, %v1802_v10  ;;  %v1803_v17 = vadd.f32 %v1798_v63, %v1743_v58  ;;  %v2882_v19 = vpop.f32.mrb[51].mxu1 }
 0x152   : > { %v1808_v20 = vmul.f32 0.2, %v1804_v16  ;;  %v1805_v21 = vadd.f32 %v3444_v23, %v1803_v17  ;;  %vm1806_vm13 = vcmp.ge.f32.partialorder %v1804_v16, 0.0 }
 0x153   : > { %v1887_v22 = vpop.f32.mrb[48].mxu0 }
 0x154   : > { %vm1807_vm14 = vcmp.ge.f32.partialorder %v1805_v21, 0.0  ;;  %v1809_v26 = vmul.f32 0.2, %v1805_v21  ;;  %v1931_v27 = vadd.f32 %v1930_v9, %v1887_v22  ;;  %v2875_v29 = vpop.f32.mrb[49].mxu0  ;;  %v1810_v33 = vsel %vm1806_vm13, %v1804_v16, %v1808_v20 }
 0x155   : > { %v1890_v31 = vpop.f32.mrb[50].mxu0  ;;  %v2039_v32 = vpop.f32.mrb[52].mxu1 }
 0x156   : > { %v1811_v34 = vsel %vm1807_vm14, %v1805_v21, %v1809_v26  ;;  %v1934_v37 = vadd.f32 %v1933_v13, %v1890_v31  ;;  %v2876_v38 = vpop.f32.mrb[51].mxu0  ;;  %v2893_v39 = vpop.f32.mrb[53].mxu1 }
 0x157   : > { %v2644_v36 = vpack.c.bf16 %v1811_v34, %v1810_v33  ;;  %v2042_v40 = vpop.f32.mrb[54].mxu1 }
 0x158   : > { %v2894_v41 = vpop.f32.mrb[55].mxu1 }
 0x159   : > { %2660 = vst [vmem:[%s3452_s8 + $0x28] sm:$0xff] %v2644_v36  }
 0x15b   : > { %v1979_v42 = vpop.f32.mrb[52].mxu0 }
 0x15c   : > { %v1986_v0 = vadd.f32 %v1979_v42, %v1931_v27  ;;  %v2887_v2 = vpop.f32.mrb[53].mxu0 }
 0x15d   : > { %v1982_v3 = vpop.f32.mrb[54].mxu0  ;;  %v2173_v46 = vpop.f32.mrb[56].mxu1 }
 0x15e   : > { %v2046_v56 = vadd.f32 %v2039_v32, %v1986_v0  ;;  %v1987_v5 = vadd.f32 %v1982_v3, %v1934_v37  ;;  %v2888_v14 = vpop.f32.mrb[55].mxu0  ;;  %v2905_v15 = vpop.f32.mrb[57].mxu1 }
 0x15f   : > { %v2176_v18 = vpop.f32.mrb[58].mxu1 }
 0x160   : > { %v2048_v24 = vadd.f32 %v3444_v23, %v2046_v56  ;;  %v2047_v1 = vadd.f32 %v2042_v40, %v1987_v5  ;;  %v2906_v25 = vpop.f32.mrb[59].mxu1 }
 0x162   : > { %v2052_v28 = vmul.f32 0.2, %v2048_v24  ;;  %v2049_v35 = vadd.f32 %v3444_v23, %v2047_v1  ;;  %vm2050_vm15 = vcmp.ge.f32.partialorder %v2048_v24, 0.0 }
 0x163   : > { %v2130_v44 = vpop.f32.mrb[56].mxu0 }
 0x164   : > { %vm2051_vm0 = vcmp.ge.f32.partialorder %v2049_v35, 0.0  ;;  %v2053_v43 = vmul.f32 0.2, %v2049_v35  ;;  %v2174_v45 = vadd.f32 %v2173_v46, %v2130_v44  ;;  %v2899_v47 = vpop.f32.mrb[57].mxu0  ;;  %v2054_v52 = vsel %vm2050_vm15, %v2048_v24, %v2052_v28 }
 0x165   : > { %v2133_v48 = vpop.f32.mrb[58].mxu0  ;;  %v2282_v50 = vpop.f32.mrb[60].mxu1 }
 0x166   : > { %v2055_v30 = vsel %vm2051_vm0, %v2049_v35, %v2053_v43  ;;  %v2177_v53 = vadd.f32 %v2176_v18, %v2133_v48  ;;  %v2900_v54 = vpop.f32.mrb[59].mxu0  ;;  %v2917_v55 = vpop.f32.mrb[61].mxu1 }
 0x167   : > { %v2649_v49 = vpack.c.bf16 %v2055_v30, %v2054_v52  ;;  %v2285_v57 = vpop.f32.mrb[62].mxu1 }
 0x168   : > { %v2918_v59 = vpop.f32.mrb[63].mxu1 }
 0x169   : > { %2661 = vst [vmem:[%s3452_s8 + $0x30] sm:$0xff] %v2649_v49  }
 0x16b   : > { %v2222_v60 = vpop.f32.mrb[60].mxu0 }
 0x16c   : > { %v2229_v61 = vadd.f32 %v2222_v60, %v2174_v45  ;;  %v2911_v62 = vpop.f32.mrb[61].mxu0 }
 0x16d   : > { %v2225_v63 = vpop.f32.mrb[62].mxu0 }
 0x16e   : > { %v2289_v4 = vadd.f32 %v2282_v50, %v2229_v61  ;;  %v2230_v6 = vadd.f32 %v2225_v63, %v2177_v53  ;;  %v2912_v51 = vpop.f32.mrb[63].mxu0 }
 0x170   : > { %v2291_v7 = vadd.f32 %v3444_v23, %v2289_v4  ;;  %v2290_v8 = vadd.f32 %v2285_v57, %v2230_v6 }
 0x172   : > { %v2295_v9 = vmul.f32 0.2, %v2291_v7  ;;  %v2292_v10 = vadd.f32 %v3444_v23, %v2290_v8  ;;  %vm2293_vm1 = vcmp.ge.f32.partialorder %v2291_v7, 0.0 }
 0x174   : > { %vm2294_vm2 = vcmp.ge.f32.partialorder %v2292_v10, 0.0  ;;  %v2296_v58 = vmul.f32 0.2, %v2292_v10  ;;  %v2297_v11 = vsel %vm2293_vm1, %v2291_v7, %v2295_v9 }
 0x176   : > { %v2298_v12 = vsel %vm2294_vm2, %v2292_v10, %v2296_v58 }
 0x177   : > { %v2654_v13 = vpack.c.bf16 %v2298_v12, %v2297_v11 }
 0x179   : > { %2662 = vst [vmem:[%s3452_s8 + $0x38] sm:$0xff] %v2654_v13  }
 0x17a PF: > { %s14_s19 = sadd.s32 1, %s3038_s19   ;;  %s3497_s15 = smov %s3030_s17 }
 0x17b   : > { %p11_p9 = scmp.ge.s32.totalorder %s14_s19, 6   ;;  %s3498_s16 = smov %s3034_s18 }
 0x17c   : > { %s3499_s17 = smov %s3502_s20  ;;  %s3500_s18 = smov %s3506_s21 }
 0x17d   :  { %13 = sbr.rel (!%p11_p9) target bundleno = 3 (0x3), region = 86 }

// kernel: fc_discriminator_forward.6
= control target key start
LH: loop header
LB: loop body
LE: loop exit
PB: predicated region body
PF: predicated region fallthrough
CT: control target
= control target key end

     0   :  { %s2752_s15 = smov 0   ;;  %s2754_s16 = smov 0   ;;  %s3115_s0 = inlined_call_operand.vmem [shape: bf16[2,9,9,32], index: 0, kind: input, shape index: {}, may-alias: {0,1}]   ;;  %s3116_s1 = inlined_call_operand.vmem [shape: bf16[2,9,9,32], index: 1, kind: input, shape index: {}, may-alias: {0,1}]   ;;  %s3117_s2 = inlined_call_operand.vmem [shape: bf16[4,32,128], index: 2, kind: input, shape index: {}]   ;;  %s3118_s3 = inlined_call_operand.vmem [shape: f32[1,128], index: 3, kind: input, shape index: {}]   ;;  %s3119_s4 = inlined_call_operand.vmem [shape: bf16[2,8,8,128], index: 4, kind: output, shape index: {}]  }
   0x1   :  { %s2756_s17 = smov 0  }
   0x2 LB: > { %s26_s18 = sadd.s32 1, %s2719_s16  ;;  %p2182_p0 = scmp.ge.s32.totalorder %s2723_s17, 1  ;;  %s2723_s17 = sphi %s2756_s17, %s14_s17   ;;  %s2719_s16 = sphi %s2754_s16, %s3121_s16   ;;  %s2715_s15 = sphi %s2752_s15, %s3120_s15  }
   0x3   : > { %p28_p1 = scmp.ge.s32.totalorder %s26_s18, 2  ;;  %p218_p2 = scmp.lt.s32.totalorder %s2723_s17, 3 }
   0x5   : > { %s3123_s18 = smov (%p28_p1, %s26_s18), 0  ;;  %p219_p3 = pnand %p2182_p0, %p218_p2 }
   0x6   : > { %v2773_v0 = vld [vmem:[%s3117_s2 + $0x10] sm:$0xff] (!%p219_p3)   ;;  %v2725_v1 = vmov (!%p219_p3), 0.0   ;;  %v2780_v2 = vld [vmem:[%s3117_s2] sm:$0xff] (!%p219_p3)   ;;  %v2786_v3 = vld [vmem:[%s3117_s2 + $0x18] sm:$0xff] (!%p219_p3)   ;;  %vm2726_vm0 = vmmov (!%p219_p3), 0   ;;  %p275_p4 = scmp.lt.s32.totalorder (!%p219_p3), %s2715_s15, 1 }
   0x7   : > { %222 = sbr.rel (%p219_p3) target bundleno = 371 (0x173), region = 36  ;;  %2392 = vmatprep.subr.bf16.mxu0 (!%p219_p3), %v2725_v1  ;;  %2400 = vmatprep.subr.bf16.mxu1 (!%p219_p3), %v2725_v1  ;;  %v2795_v4 = vld [vmem:[%s3117_s2 + $0x8] sm:$0xff] (!%p219_p3)   ;;  %vm363_vm1 = vcmask (!%p219_p3), 261120   ;;  %v2809_v5 = vld [vmem:[%s3117_s2 + $0x30] sm:$0xff] (!%p219_p3)   ;;  %v2828_v11 = vld [vmem:[%s3117_s2 + $0x38] sm:$0xff] (!%p219_p3)  }
   0x8   : > { %2393 = vmatpush3.bf16.msra.mxu0 (!%p219_p3), %v2773_v0  ;;  %2404 = vmatprep.mubr.msk.bf16.mxu1 (!%p219_p3), %vm2726_vm0, %v2725_v1  ;;  %v2836_v18 = vld [vmem:[%s3117_s2 + $0x20] sm:$0xff] (!%p219_p3)   ;;  %v2849_v27 = vld [vmem:[%s3117_s2 + $0x28] sm:$0xff] (!%p219_p3)  }
   0x9   : > { %2401 = vmatpush3.bf16.msra.mxu1 (!%p219_p3), %v2780_v2  ;;  %2394 = vmatprep.subr.bf16.mxu0 (!%p219_p3), %v2725_v1 }
   0xa   : > { %2402 = vmatprep.subr.bf16.mxu1 (!%p219_p3), %v2725_v1  ;;  %2396 = vmatprep.mubr.msk.bf16.mxu0 (!%p219_p3), %vm2726_vm0, %v2725_v1 }
   0xc   : > { %2395 = vmatpush3.bf16.msra.mxu0 (!%p219_p3), %v2786_v3 }
   0xd   : > { %2403 = vmatpush3.bf16.msra.mxu1 (!%p219_p3), %v2795_v4  ;;  %2408 = vmatprep.subr.bf16.mxu0 (!%p219_p3), %v2725_v1 }
   0xe   : > { %s3125_s15 = smov (!%p275_p4, %s2715_s15), 1  ;;  %2416 = vmatprep.subr.bf16.mxu1 %v2725_v1 }
   0xf   : > { %s2648_s27 = smul.u32 72, %s3125_s15  ;;  %s2295_s23 = sshll.u32 %s3125_s15, 5 }
  0x10   : > { %s3089_s26 = scalar_lea.vmem %s3119_s4, %s2295_s23 }
  0x11   : > { %s2816_s6 = scalar_lea.vmem %s3115_s0, %s2648_s27  ;;  %s2294_s13 = sadd.s32 64, %s2648_s27 }
  0x12   : > { %v334_v6 = vld [vmem:[%s2816_s6] sm:$0xf]  ;;  %v335_v7 = vld [vmem:[%s2816_s6 + $0x4] sm:$0x1]  ;;  %v2199_v8 = vld [vmem:[%s2816_s6 + $0x8] sm:$0xf]  ;;  %s300_s20 = scalar_lea.vmem %s3116_s1, %s2294_s13 }
  0x13   : > { %v2201_v9 = vcombine.low %v334_v6, %v335_v7  ;;  %2405 = vmatmul.mubr.msk.bf16.vlgmr.msra.gmra.mrb[0].mxu1 %vm363_vm1, %v334_v6  ;;  %v2200_v10 = vld [vmem:[%s2816_s6 + $0xc] sm:$0x1]  ;;  %v2216_v20 = vld [vmem:[%s2816_s6 + $0x8] sm:$0xf]  ;;  %v2218_v24 = vld [vmem:[%s2816_s6 + $0x10] sm:$0xf] }
  0x14   : > { %2417 = vmatpush3.bf16.msra.mxu1 %v2809_v5  ;;  %2420 = vmatprep.mubr.msk.bf16.mxu1 %vm2726_vm0, %v2725_v1  ;;  %v2211_v12 = vcombine.low %v2199_v8, %v2200_v10  ;;  %v2217_v21 = vld [vmem:[%s2816_s6 + $0xc] sm:$0x1]  ;;  %v2219_v25 = vld [vmem:[%s2816_s6 + $0x14] sm:$0x1]  ;;  %v2227_v36 = vld [vmem:[%s2816_s6 + $0x10] sm:$0xf] }
  0x15   : > { %v345_v13 = vshrl.u32 %v2201_v9, 16  ;;  %v347_v14 = vshll.u32 %v2201_v9, 16  ;;  %2418 = vmatprep.subr.bf16.mxu1 %v2725_v1  ;;  %v2220_v26 = vcombine.low %v2216_v20, %v2217_v21  ;;  %v2224_v28 = vcombine.low %v2218_v24, %v2219_v25  ;;  %v2228_v37 = vld [vmem:[%s2816_s6 + $0x14] sm:$0x1]  ;;  %v2229_v39 = vld [vmem:[%s2816_s6 + $0x18] sm:$0xf] }
  0x16   : > { %v524_v15 = vshrl.u32 %v2211_v12, 16  ;;  %v526_v16 = vshll.u32 %v2211_v12, 16  ;;  %v2230_v40 = vld [vmem:[%s2816_s6 + $0x1c] sm:$0x1]  ;;  %v2231_v41 = vcombine.low %v2227_v36, %v2228_v37  ;;  %v2238_v50 = vld [vmem:[%s2816_s6 + $0x18] sm:$0xf] }
  0x17   : > { %v349_v17 = vrot.slane %v347_v14, 1  ;;  %v611_v29 = vshll.u32 %v2220_v26, 16  ;;  %v753_v30 = vshll.u32 %v2224_v28, 16  ;;  %v609_v31 = vshrl.u32 %v2220_v26, 16  ;;  %v2239_v51 = vld [vmem:[%s2816_s6 + $0x1c] sm:$0x1] }
  0x18   : > { %2419 = vmatpush3.bf16.msra.mxu1 %v2828_v11  ;;  %v528_v19 = vrot.slane %v526_v16, 1  ;;  %v751_v33 = vshrl.u32 %v2224_v28, 16  ;;  %v2235_v42 = vcombine.low %v2229_v39, %v2230_v40  ;;  %v821_v43 = vshll.u32 %v2231_v41, 16  ;;  %v2240_v53 = vld [vmem:[%s2816_s6 + $0x20] sm:$0xf] }
  0x19   : > { %v350_v22 = vor.u32 %v349_v17, %v345_v13  ;;  %2432 = vmatprep.subr.bf16.mxu1 %v2725_v1  ;;  %v613_v32 = vrot.slane %v611_v29, 1  ;;  %v755_v34 = vrot.slane %v753_v30, 1  ;;  %v819_v45 = vshrl.u32 %v2231_v41, 16  ;;  %v2241_v54 = vld [vmem:[%s2816_s6 + $0x24] sm:$0x1] }
  0x1a   : > { %v529_v23 = vor.u32 %v528_v19, %v524_v15  ;;  %v963_v44 = vshll.u32 %v2235_v42, 16  ;;  %v823_v46 = vrot.slane %v821_v43, 1  ;;  %v961_v47 = vshrl.u32 %v2235_v42, 16  ;;  %v2249_v6 = vld [vmem:[%s2816_s6 + $0x20] sm:$0xf] }
  0x1b   : > { %2397 = vmatmul.mubr.msk.bf16.vlgmr.msra.gmra.mrb[0].mxu0 %vm363_vm1, %v350_v22  ;;  %v614_v35 = vor.u32 %v613_v32, %v609_v31  ;;  %v756_v38 = vor.u32 %v755_v34, %v751_v33  ;;  %v2242_v55 = vcombine.low %v2238_v50, %v2239_v51  ;;  %v2246_v56 = vcombine.low %v2240_v53, %v2241_v54  ;;  %v2250_v7 = vld [vmem:[%s2816_s6 + $0x24] sm:$0x1]  ;;  %v2251_v9 = vld [vmem:[%s2816_s6 + $0x28] sm:$0xf]  ;;  %v2252_v10 = vld [vmem:[%s2816_s6 + $0x2c] sm:$0x1] }
  0x1c   : > { %2409 = vmatpush3.bf16.msra.mxu0 %v2836_v18  ;;  %2412 = vmatprep.mubr.msk.bf16.mxu0 %vm2726_vm0, %v2725_v1  ;;  %v965_v48 = vrot.slane %v963_v44, 1  ;;  %v824_v49 = vor.u32 %v823_v46, %v819_v45  ;;  %v2253_v12 = vcombine.low %v2249_v6, %v2250_v7  ;;  %v2257_v13 = vcombine.low %v2251_v9, %v2252_v10  ;;  %v2260_v22 = vld [vmem:[%s2816_s6 + $0x28] sm:$0xf]  ;;  %v2262_v25 = vld [vmem:[%s2816_s6 + $0x30] sm:$0xf] }
  0x1d   : > { %2410 = vmatprep.subr.bf16.mxu0 %v2725_v1  ;;  %2421 = vmatmul.mubr.msk.bf16.vlgmr.msra.gmra.mrb[4].mxu1 %vm363_vm1, %v529_v23  ;;  %v1031_v57 = vshll.u32 %v2242_v55, 16  ;;  %v1173_v58 = vshll.u32 %v2246_v56, 16  ;;  %v1029_v59 = vshrl.u32 %v2242_v55, 16  ;;  %v1171_v61 = vshrl.u32 %v2246_v56, 16  ;;  %v2261_v23 = vld [vmem:[%s2816_s6 + $0x2c] sm:$0x1] }
  0x1e   : > { %2433 = vmatpush3.bf16.msra.mxu1 %v2780_v2  ;;  %2436 = vmatprep.mubr.msk.bf16.mxu1 %vm2726_vm0, %v2725_v1  ;;  %v966_v52 = vor.u32 %v965_v48, %v961_v47  ;;  %v1241_v14 = vshll.u32 %v2253_v12, 16  ;;  %v1383_v15 = vshll.u32 %v2257_v13, 16  ;;  %v1239_v16 = vshrl.u32 %v2253_v12, 16  ;;  %v2263_v26 = vld [vmem:[%s2816_s6 + $0x34] sm:$0x1] }
  0x1f   : > { %2434 = vmatprep.subr.bf16.mxu1 %v2725_v1  ;;  %v1033_v60 = vrot.slane %v1031_v57, 1  ;;  %v1175_v62 = vrot.slane %v1173_v58, 1  ;;  %v1381_v19 = vshrl.u32 %v2257_v13, 16  ;;  %v2264_v28 = vcombine.low %v2260_v22, %v2261_v23  ;;  %v2271_v37 = vld [vmem:[%s2816_s6 + $0x30] sm:$0xf] }
  0x20   : > { %2411 = vmatpush3.bf16.msra.mxu0 %v2849_v27  ;;  %v1243_v17 = vrot.slane %v1241_v14, 1  ;;  %v2268_v29 = vcombine.low %v2262_v25, %v2263_v26  ;;  %v2273_v40 = vld [vmem:[%s2816_s6 + $0x38] sm:$0xf]  ;;  %v2274_v41 = vld [vmem:[%s2816_s6 + $0x3c] sm:$0x1] }
  0x21   : > { %2424 = vmatprep.subr.bf16.mxu0 %v2725_v1  ;;  %v1034_v63 = vor.u32 %v1033_v60, %v1029_v59  ;;  %v1451_v30 = vshll.u32 %v2264_v28, 16  ;;  %v1449_v32 = vshrl.u32 %v2264_v28, 16  ;;  %v2279_v43 = vcombine.low %v2273_v40, %v2274_v41  ;;  %v2282_v51 = vld [vmem:[%s2816_s6 + $0x38] sm:$0xf]  ;;  %v1860_v54 = vld [vmem:[%s300_s20] sm:$0xf] }
  0x22   : > { %2435 = vmatpush3.bf16.msra.mxu1 %v2795_v4  ;;  %v1244_v21 = vor.u32 %v1243_v17, %v1239_v16  ;;  %v1593_v31 = vshll.u32 %v2268_v29, 16  ;;  %v1591_v34 = vshrl.u32 %v2268_v29, 16  ;;  %v1861_v55 = vld [vmem:[%s300_s20 + $0x4] sm:$0x1] }
  0x23   : > { %2413 = vmatmul.mubr.msk.bf16.vlgmr.msra.gmra.mrb[4].mxu0 %vm363_vm1, %v2199_v8  ;;  %2448 = vmatprep.subr.bf16.mxu1 %v2725_v1  ;;  %v1176_v8 = vor.u32 %v1175_v62, %v1171_v61  ;;  %v1453_v33 = vrot.slane %v1451_v30, 1  ;;  %v1803_v45 = vshll.u32 %v2279_v43, 16  ;;  %v1801_v48 = vshrl.u32 %v2279_v43, 16 }
  0x24   : > { %2425 = vmatpush3.bf16.msra.mxu0 %v2773_v0  ;;  %2428 = vmatprep.mubr.msk.bf16.mxu0 %vm2726_vm0, %v2725_v1  ;;  %v2288_v57 = vcombine.low %v1860_v54, %v1861_v55 }
  0x25   : > { %2426 = vmatprep.subr.bf16.mxu0 %v2725_v1  ;;  %2437 = vmatmul.mubr.msk.bf16.vlgmr.msra.gmra.mrb[8].mxu1 %vm363_vm1, %v2216_v20  ;;  %v1385_v20 = vrot.slane %v1383_v15, 1 }
  0x26   : > { %2449 = vmatpush3.bf16.msra.mxu1 %v2809_v5  ;;  %2452 = vmatprep.mubr.msk.bf16.mxu1 %vm2726_vm0, %v2725_v1  ;;  %v2012_v59 = vshll.u32 %v2288_v57, 16 }
  0x27   : > { %2450 = vmatprep.subr.bf16.mxu1 %v2725_v1 }
  0x28   : > { %2427 = vmatpush3.bf16.msra.mxu0 %v2786_v3  ;;  %v2014_v62 = vrot.slane %v2012_v59, 1 }
  0x29   : > { %2440 = vmatprep.subr.bf16.mxu0 %v2725_v1 }
  0x2a   : > { %2451 = vmatpush3.bf16.msra.mxu1 %v2828_v11 }
  0x2b   : > { %2429 = vmatmul.mubr.msk.bf16.vlgmr.msra.gmra.mrb[8].mxu0 %vm363_vm1, %v614_v35  ;;  %2464 = vmatprep.subr.bf16.mxu1 %v2725_v1  ;;  %v1595_v35 = vrot.slane %v1593_v31, 1 }
  0x2c   : > { %2441 = vmatpush3.bf16.msra.mxu0 %v2836_v18  ;;  %2444 = vmatprep.mubr.msk.bf16.mxu0 %vm2726_vm0, %v2725_v1 }
  0x2d   : > { %2442 = vmatprep.subr.bf16.mxu0 %v2725_v1  ;;  %2453 = vmatmul.mubr.msk.bf16.vlgmr.msra.gmra.mrb[12].mxu1 %vm363_vm1, %v756_v38  ;;  %v2272_v38 = vld [vmem:[%s2816_s6 + $0x34] sm:$0x1] }
  0x2e   : > { %2465 = vmatpush3.bf16.msra.mxu1 %v2780_v2  ;;  %2468 = vmatprep.mubr.msk.bf16.mxu1 %vm2726_vm0, %v2725_v1  ;;  %v2275_v42 = vcombine.low %v2271_v37, %v2272_v38 }
  0x2f   : > { %2466 = vmatprep.subr.bf16.mxu1 %v2725_v1 }
  0x30   : > { %2443 = vmatpush3.bf16.msra.mxu0 %v2849_v27  ;;  %v1661_v44 = vshll.u32 %v2275_v42, 16  ;;  %v1659_v46 = vshrl.u32 %v2275_v42, 16 }
  0x31   : > { %2456 = vmatprep.subr.bf16.mxu0 %v2725_v1 }
  0x32   : > { %2467 = vmatpush3.bf16.msra.mxu1 %v2795_v4  ;;  %v1663_v47 = vrot.slane %v1661_v44, 1 }
  0x33   : > { %2445 = vmatmul.mubr.msk.bf16.vlgmr.msra.gmra.mrb[12].mxu0 %vm363_vm1, %v2218_v24  ;;  %2480 = vmatprep.subr.bf16.mxu1 %v2725_v1  ;;  %v1386_v24 = vor.u32 %v1385_v20, %v1381_v19 }
  0x34   : > { %2457 = vmatpush3.bf16.msra.mxu0 %v2773_v0  ;;  %2460 = vmatprep.mubr.msk.bf16.mxu0 %vm2726_vm0, %v2725_v1 }
  0x35   : > { %2458 = vmatprep.subr.bf16.mxu0 %v2725_v1  ;;  %2469 = vmatmul.mubr.msk.bf16.vlgmr.msra.gmra.mrb[16].mxu1 %vm363_vm1, %v2227_v36  ;;  %v1454_v36 = vor.u32 %v1453_v33, %v1449_v32 }
  0x36   : > { %2481 = vmatpush3.bf16.msra.mxu1 %v2809_v5  ;;  %2484 = vmatprep.mubr.msk.bf16.mxu1 %vm2726_vm0, %v2725_v1 }
  0x37   : > { %2482 = vmatprep.subr.bf16.mxu1 %v2725_v1 }
  0x38   : > { %2459 = vmatpush3.bf16.msra.mxu0 %v2786_v3 }
  0x39   : > { %2472 = vmatprep.subr.bf16.mxu0 %v2725_v1 }
  0x3a   : > { %2483 = vmatpush3.bf16.msra.mxu1 %v2828_v11 }
  0x3b   : > { %2461 = vmatmul.mubr.msk.bf16.vlgmr.msra.gmra.mrb[16].mxu0 %vm363_vm1, %v824_v49  ;;  %2496 = vmatprep.subr.bf16.mxu1 %v2725_v1  ;;  %v1805_v49 = vrot.slane %v1803_v45, 1 }
  0x3c   : > { %2473 = vmatpush3.bf16.msra.mxu0 %v2836_v18  ;;  %2476 = vmatprep.mubr.msk.bf16.mxu0 %vm2726_vm0, %v2725_v1 }
  0x3d   : > { %2474 = vmatprep.subr.bf16.mxu0 %v2725_v1  ;;  %2485 = vmatmul.mubr.msk.bf16.vlgmr.msra.gmra.mrb[20].mxu1 %vm363_vm1, %v966_v52  ;;  %v2283_v52 = vld [vmem:[%s2816_s6 + $0x3c] sm:$0x1] }
  0x3e   : > { %2497 = vmatpush3.bf16.msra.mxu1 %v2780_v2  ;;  %2500 = vmatprep.mubr.msk.bf16.mxu1 %vm2726_vm0, %v2725_v1  ;;  %v2284_v56 = vcombine.low %v2282_v51, %v2283_v52 }
  0x3f   : > { %2498 = vmatprep.subr.bf16.mxu1 %v2725_v1 }
  0x40   : > { %2475 = vmatpush3.bf16.msra.mxu0 %v2849_v27  ;;  %v1870_v58 = vshll.u32 %v2284_v56, 16  ;;  %v1868_v60 = vshrl.u32 %v2284_v56, 16 }
  0x41   : > { %2488 = vmatprep.subr.bf16.mxu0 %v2725_v1 }
  0x42   : > { %2499 = vmatpush3.bf16.msra.mxu1 %v2795_v4  ;;  %v1872_v61 = vrot.slane %v1870_v58, 1 }
  0x43   : > { %2477 = vmatmul.mubr.msk.bf16.vlgmr.msra.gmra.mrb[20].mxu0 %vm363_vm1, %v2229_v39  ;;  %2512 = vmatprep.subr.bf16.mxu1 %v2725_v1  ;;  %v1596_v39 = vor.u32 %v1595_v35, %v1591_v34 }
  0x44   : > { %2489 = vmatpush3.bf16.msra.mxu0 %v2773_v0  ;;  %2492 = vmatprep.mubr.msk.bf16.mxu0 %vm2726_vm0, %v2725_v1 }
  0x45   : > { %2490 = vmatprep.subr.bf16.mxu0 %v2725_v1  ;;  %2501 = vmatmul.mubr.msk.bf16.vlgmr.msra.gmra.mrb[24].mxu1 %vm363_vm1, %v2238_v50  ;;  %v1664_v50 = vor.u32 %v1663_v47, %v1659_v46 }
  0x46   : > { %2513 = vmatpush3.bf16.msra.mxu1 %v2809_v5  ;;  %2516 = vmatprep.mubr.msk.bf16.mxu1 %vm2726_vm0, %v2725_v1 }
  0x47   : > { %2514 = vmatprep.subr.bf16.mxu1 %v2725_v1 }
  0x48   : > { %2491 = vmatpush3.bf16.msra.mxu0 %v2786_v3 }
  0x49   : > { %2504 = vmatprep.subr.bf16.mxu0 %v2725_v1 }
  0x4a   : > { %2515 = vmatpush3.bf16.msra.mxu1 %v2828_v11 }
  0x4b   : > { %2493 = vmatmul.mubr.msk.bf16.vlgmr.msra.gmra.mrb[24].mxu0 %vm363_vm1, %v1034_v63  ;;  %2528 = vmatprep.subr.bf16.mxu1 %v2725_v1 }
  0x4c   : > { %2505 = vmatpush3.bf16.msra.mxu0 %v2836_v18  ;;  %2508 = vmatprep.mubr.msk.bf16.mxu0 %vm2726_vm0, %v2725_v1 }
  0x4d   : > { %2506 = vmatprep.subr.bf16.mxu0 %v2725_v1  ;;  %2517 = vmatmul.mubr.msk.bf16.vlgmr.msra.gmra.mrb[28].mxu1 %vm363_vm1, %v1176_v8 }
  0x4e   : > { %2529 = vmatpush3.bf16.msra.mxu1 %v2780_v2  ;;  %2532 = vmatprep.mubr.msk.bf16.mxu1 %vm2726_vm0, %v2725_v1 }
  0x4f   : > { %2530 = vmatprep.subr.bf16.mxu1 %v2725_v1 }
  0x50   : > { %2507 = vmatpush3.bf16.msra.mxu0 %v2849_v27 }
  0x51   : > { %2520 = vmatprep.subr.bf16.mxu0 %v2725_v1 }
  0x52   : > { %2531 = vmatpush3.bf16.msra.mxu1 %v2795_v4 }
  0x53   : > { %2509 = vmatmul.mubr.msk.bf16.vlgmr.msra.gmra.mrb[28].mxu0 %vm363_vm1, %v2240_v53  ;;  %2544 = vmatprep.subr.bf16.mxu1 %v2725_v1  ;;  %v1806_v53 = vor.u32 %v1805_v49, %v1801_v48 }
  0x54   : > { %2521 = vmatpush3.bf16.msra.mxu0 %v2773_v0  ;;  %2524 = vmatprep.mubr.msk.bf16.mxu0 %vm2726_vm0, %v2725_v1 }
  0x55   : > { %2522 = vmatprep.subr.bf16.mxu0 %v2725_v1  ;;  %2533 = vmatmul.mubr.msk.bf16.vlgmr.msra.gmra.mrb[32].mxu1 %vm363_vm1, %v2249_v6 }
  0x56   : > { %2545 = vmatpush3.bf16.msra.mxu1 %v2809_v5  ;;  %2548 = vmatprep.mubr.msk.bf16.mxu1 %vm2726_vm0, %v2725_v1 }
  0x57   : > { %2546 = vmatprep.subr.bf16.mxu1 %v2725_v1 }
  0x58   : > { %2523 = vmatpush3.bf16.msra.mxu0 %v2786_v3 }
  0x59   : > { %2536 = vmatprep.subr.bf16.mxu0 %v2725_v1 }
  0x5a   : > { %2547 = vmatpush3.bf16.msra.mxu1 %v2828_v11 }
  0x5b   : > { %2525 = vmatmul.mubr.msk.bf16.vlgmr.msra.gmra.mrb[32].mxu0 %vm363_vm1, %v1244_v21  ;;  %2560 = vmatprep.subr.bf16.mxu1 %v2725_v1 }
  0x5c   : > { %2537 = vmatpush3.bf16.msra.mxu0 %v2836_v18  ;;  %2540 = vmatprep.mubr.msk.bf16.mxu0 %vm2726_vm0, %v2725_v1 }
  0x5d   : > { %2538 = vmatprep.subr.bf16.mxu0 %v2725_v1  ;;  %2549 = vmatmul.mubr.msk.bf16.vlgmr.msra.gmra.mrb[36].mxu1 %vm363_vm1, %v1386_v24 }
  0x5e   : > { %2561 = vmatpush3.bf16.msra.mxu1 %v2780_v2  ;;  %2564 = vmatprep.mubr.msk.bf16.mxu1 %vm2726_vm0, %v2725_v1 }
  0x5f   : > { %2562 = vmatprep.subr.bf16.mxu1 %v2725_v1 }
  0x60   : > { %2539 = vmatpush3.bf16.msra.mxu0 %v2849_v27 }
  0x61   : > { %2552 = vmatprep.subr.bf16.mxu0 %v2725_v1 }
  0x62   : > { %2563 = vmatpush3.bf16.msra.mxu1 %v2795_v4 }
  0x63   : > { %2541 = vmatmul.mubr.msk.bf16.vlgmr.msra.gmra.mrb[36].mxu0 %vm363_vm1, %v2251_v9  ;;  %2576 = vmatprep.subr.bf16.mxu1 %v2725_v1 }
  0x64   : > { %2553 = vmatpush3.bf16.msra.mxu0 %v2773_v0  ;;  %2556 = vmatprep.mubr.msk.bf16.mxu0 %vm2726_vm0, %v2725_v1 }
  0x65   : > { %2554 = vmatprep.subr.bf16.mxu0 %v2725_v1  ;;  %2565 = vmatmul.mubr.msk.bf16.vlgmr.msra.gmra.mrb[40].mxu1 %vm363_vm1, %v2260_v22 }
  0x66   : > { %2577 = vmatpush3.bf16.msra.mxu1 %v2809_v5  ;;  %2580 = vmatprep.mubr.msk.bf16.mxu1 %vm2726_vm0, %v2725_v1 }
  0x67   : > { %2578 = vmatprep.subr.bf16.mxu1 %v2725_v1 }
  0x68   : > { %2555 = vmatpush3.bf16.msra.mxu0 %v2786_v3 }
  0x69   : > { %2568 = vmatprep.subr.bf16.mxu0 %v2725_v1 }
  0x6a   : > { %2579 = vmatpush3.bf16.msra.mxu1 %v2828_v11 }
  0x6b   : > { %2557 = vmatmul.mubr.msk.bf16.vlgmr.msra.gmra.mrb[40].mxu0 %vm363_vm1, %v1454_v36  ;;  %2592 = vmatprep.subr.bf16.mxu1 %v2725_v1 }
  0x6c   : > { %2569 = vmatpush3.bf16.msra.mxu0 %v2836_v18  ;;  %2572 = vmatprep.mubr.msk.bf16.mxu0 %vm2726_vm0, %v2725_v1 }
  0x6d   : > { %2570 = vmatprep.subr.bf16.mxu0 %v2725_v1  ;;  %2581 = vmatmul.mubr.msk.bf16.vlgmr.msra.gmra.mrb[44].mxu1 %vm363_vm1, %v1596_v39 }
  0x6e   : > { %2593 = vmatpush3.bf16.msra.mxu1 %v2780_v2  ;;  %2596 = vmatprep.mubr.msk.bf16.mxu1 %vm2726_vm0, %v2725_v1 }
  0x6f   : > { %2594 = vmatprep.subr.bf16.mxu1 %v2725_v1 }
  0x70   : > { %2571 = vmatpush3.bf16.msra.mxu0 %v2849_v27 }
  0x71   : > { %2584 = vmatprep.subr.bf16.mxu0 %v2725_v1 }
  0x72   : > { %2595 = vmatpush3.bf16.msra.mxu1 %v2795_v4 }
  0x73   : > { %2573 = vmatmul.mubr.msk.bf16.vlgmr.msra.gmra.mrb[44].mxu0 %vm363_vm1, %v2262_v25  ;;  %2608 = vmatprep.subr.bf16.mxu1 %v2725_v1 }
  0x74   : > { %2585 = vmatpush3.bf16.msra.mxu0 %v2773_v0  ;;  %2588 = vmatprep.mubr.msk.bf16.mxu0 %vm2726_vm0, %v2725_v1 }
  0x75   : > { %2586 = vmatprep.subr.bf16.mxu0 %v2725_v1  ;;  %2597 = vmatmul.mubr.msk.bf16.vlgmr.msra.gmra.mrb[48].mxu1 %vm363_vm1, %v2271_v37 }
  0x76   : > { %2609 = vmatpush3.bf16.msra.mxu1 %v2809_v5  ;;  %2612 = vmatprep.mubr.msk.bf16.mxu1 %vm2726_vm0, %v2725_v1 }
  0x77   : > { %2610 = vmatprep.subr.bf16.mxu1 %v2725_v1 }
  0x78   : > { %2587 = vmatpush3.bf16.msra.mxu0 %v2786_v3 }
  0x79   : > { %2600 = vmatprep.subr.bf16.mxu0 %v2725_v1 }
  0x7a   : > { %2611 = vmatpush3.bf16.msra.mxu1 %v2828_v11 }
  0x7b   : > { %2589 = vmatmul.mubr.msk.bf16.vlgmr.msra.gmra.mrb[48].mxu0 %vm363_vm1, %v1664_v50  ;;  %2624 = vmatprep.subr.bf16.mxu1 %v2725_v1 }
  0x7c   : > { %2601 = vmatpush3.bf16.msra.mxu0 %v2836_v18  ;;  %2604 = vmatprep.mubr.msk.bf16.mxu0 %vm2726_vm0, %v2725_v1 }
  0x7d   : > { %2602 = vmatprep.subr.bf16.mxu0 %v2725_v1  ;;  %2613 = vmatmul.mubr.msk.bf16.vlgmr.msra.gmra.mrb[52].mxu1 %vm363_vm1, %v1806_v53 }
  0x7e   : > { %2625 = vmatpush3.bf16.msra.mxu1 %v2780_v2  ;;  %2628 = vmatprep.mubr.msk.bf16.mxu1 %vm2726_vm0, %v2725_v1  ;;  %v2010_v2 = vshrl.u32 %v2288_v57, 16 }
  0x7f   : > { %2626 = vmatprep.subr.bf16.mxu1 %v2725_v1 }
  0x80   : > { %2603 = vmatpush3.bf16.msra.mxu0 %v2849_v27 }
  0x81   : > { %2616 = vmatprep.subr.bf16.mxu0 %v2725_v1 }
  0x82   : > { %2627 = vmatpush3.bf16.msra.mxu1 %v2795_v4  ;;  %v1873_v4 = vor.u32 %v1872_v61, %v1868_v60 }
  0x83   : > { %2605 = vmatmul.mubr.msk.bf16.vlgmr.msra.gmra.mrb[52].mxu0 %vm363_vm1, %v2273_v40  ;;  %2640 = vmatprep.subr.bf16.mxu1 %v2725_v1 }
  0x84   : > { %2617 = vmatpush3.bf16.msra.mxu0 %v2773_v0  ;;  %2620 = vmatprep.mubr.msk.bf16.mxu0 %vm2726_vm0, %v2725_v1  ;;  %v2015_v0 = vor.u32 %v2014_v62, %v2010_v2 }
  0x85   : > { %2618 = vmatprep.subr.bf16.mxu0 %v2725_v1  ;;  %2629 = vmatmul.mubr.msk.bf16.vlgmr.msra.gmra.mrb[56].mxu1 %vm363_vm1, %v2282_v51 }
  0x86   : > { %2641 = vmatpush3.bf16.msra.mxu1 %v2809_v5  ;;  %2644 = vmatprep.mubr.msk.bf16.mxu1 %vm2726_vm0, %v2725_v1 }
  0x87   : > { %2642 = vmatprep.subr.bf16.mxu1 %v2725_v1 }
  0x88   : > { %2619 = vmatpush3.bf16.msra.mxu0 %v2786_v3 }
  0x89   : > { %2632 = vmatprep.subr.bf16.mxu0 %v2725_v1 }
  0x8a   : > { %2643 = vmatpush3.bf16.msra.mxu1 %v2828_v11 }
  0x8b   : > { %2621 = vmatmul.mubr.msk.bf16.vlgmr.msra.gmra.mrb[56].mxu0 %vm363_vm1, %v1873_v4 }
  0x8c   : > { %2633 = vmatpush3.bf16.msra.mxu0 %v2836_v18  ;;  %2636 = vmatprep.mubr.msk.bf16.mxu0 %vm2726_vm0, %v2725_v1 }
  0x8d   : > { %2634 = vmatprep.subr.bf16.mxu0 %v2725_v1  ;;  %2645 = vmatmul.mubr.msk.bf16.vlgmr.msra.gmra.mrb[60].mxu1 %vm363_vm1, %v2015_v0 }
  0x90   : > { %2635 = vmatpush3.bf16.msra.mxu0 %v2849_v27  ;;  %v3082_v27 = vld [vmem:[%s3118_s3] ss:$0 sm:$0xff] }
  0x93   : > { %2637 = vmatmul.mubr.msk.bf16.vlgmr.msra.gmra.mrb[60].mxu0 %vm363_vm1, %v1860_v54 }
  0xe6   : > { %v456_v3 = vpop.f32.mrb[0].mxu1 }
  0xe7   : > { %v2406_v5 = vpop.f32.mrb[1].mxu1 }
  0xe8   : > { %v459_v63 = vpop.f32.mrb[2].mxu1 }
  0xe9   : > { %v2407_v6 = vpop.f32.mrb[3].mxu1 }
  0xee   : > { %v401_v11 = vpop.f32.mrb[0].mxu0 }
  0xef   : > { %v457_v7 = vadd.f32 %v456_v3, %v401_v11  ;;  %v2398_v8 = vpop.f32.mrb[1].mxu0 }
  0xf0   : > { %v404_v9 = vpop.f32.mrb[2].mxu0  ;;  %v579_v18 = vpop.f32.mrb[4].mxu1 }
  0xf1   : > { %v2399_v10 = vpop.f32.mrb[3].mxu0  ;;  %v2422_v12 = vpop.f32.mrb[5].mxu1 }
  0xf2   : > { %v582_v13 = vpop.f32.mrb[6].mxu1 }
  0xf3   : > { %v2423_v1 = vpop.f32.mrb[7].mxu1 }
  0xf6   : > { %v511_v14 = vpop.f32.mrb[4].mxu0 }
  0xf7   : > { %v517_v15 = vadd.f32 %v511_v14, %v457_v7  ;;  %v2414_v16 = vpop.f32.mrb[5].mxu0 }
  0xf8   : > { %v514_v17 = vpop.f32.mrb[6].mxu0  ;;  %v695_v19 = vpop.f32.mrb[8].mxu1 }
  0xf9   : > { %v585_v20 = vadd.f32 %v579_v18, %v517_v15  ;;  %v2415_v21 = vpop.f32.mrb[7].mxu0  ;;  %v2438_v22 = vpop.f32.mrb[9].mxu1 }
  0xfa   : > { %v698_v23 = vpop.f32.mrb[10].mxu1 }
  0xfb   : > { %v592_v24 = vadd.f32 %v3082_v27, %v585_v20  ;;  %v2439_v25 = vpop.f32.mrb[11].mxu1 }
  0xfd   : > { %vm593_vm2 = vcmp.ge.f32.partialorder %v592_v24, 0.0  ;;  %v594_v26 = vmul.f32 0.2, %v592_v24 }
  0xfe   : > { %v652_v28 = vpop.f32.mrb[8].mxu0 }
  0xff   : > { %v595_v29 = vsel %vm593_vm2, %v592_v24, %v594_v26  ;;  %v696_v30 = vadd.f32 %v695_v19, %v652_v28  ;;  %v2430_v31 = vpop.f32.mrb[9].mxu0 }
 0x100   : > { %v596_v32 = vpack.c.bf16 %v595_v29, %v595_v29  ;;  %v655_v33 = vpop.f32.mrb[10].mxu0  ;;  %v794_v34 = vpop.f32.mrb[12].mxu1 }
 0x101   : > { %v2431_v35 = vpop.f32.mrb[11].mxu0  ;;  %v2454_v36 = vpop.f32.mrb[13].mxu1 }
 0x102   : > { %597 = vst [vmem:[%s3089_s26] sm:$0xf] %v596_v32  ;;  %v797_v37 = vpop.f32.mrb[14].mxu1 }
 0x103   : > { %v2455_v38 = vpop.f32.mrb[15].mxu1 }
 0x106   : > { %v738_v39 = vpop.f32.mrb[12].mxu0 }
 0x107   : > { %v744_v40 = vadd.f32 %v738_v39, %v696_v30  ;;  %v2446_v41 = vpop.f32.mrb[13].mxu0 }
 0x108   : > { %v741_v42 = vpop.f32.mrb[14].mxu0  ;;  %v905_v43 = vpop.f32.mrb[16].mxu1 }
 0x109   : > { %v800_v44 = vadd.f32 %v794_v34, %v744_v40  ;;  %v2447_v45 = vpop.f32.mrb[15].mxu0  ;;  %v2470_v46 = vpop.f32.mrb[17].mxu1 }
 0x10a   : > { %v908_v47 = vpop.f32.mrb[18].mxu1 }
 0x10b   : > { %v801_v48 = vadd.f32 %v3082_v27, %v800_v44  ;;  %v2471_v49 = vpop.f32.mrb[19].mxu1 }
 0x10d   : > { %vm802_vm3 = vcmp.ge.f32.partialorder %v801_v48, 0.0  ;;  %v803_v50 = vmul.f32 0.2, %v801_v48 }
 0x10e   : > { %v862_v51 = vpop.f32.mrb[16].mxu0 }
 0x10f   : > { %v804_v52 = vsel %vm802_vm3, %v801_v48, %v803_v50  ;;  %v906_v53 = vadd.f32 %v905_v43, %v862_v51  ;;  %v2462_v54 = vpop.f32.mrb[17].mxu0 }
 0x110   : > { %v805_v55 = vpack.c.bf16 %v804_v52, %v804_v52  ;;  %v865_v56 = vpop.f32.mrb[18].mxu0  ;;  %v1004_v57 = vpop.f32.mrb[20].mxu1 }
 0x111   : > { %v2463_v58 = vpop.f32.mrb[19].mxu0  ;;  %v2486_v59 = vpop.f32.mrb[21].mxu1 }
 0x112   : > { %2226 = vst [vmem:[%s3089_s26 + $0x4] sm:$0xf] %v805_v55  ;;  %v1007_v60 = vpop.f32.mrb[22].mxu1 }
 0x113   : > { %v2487_v61 = vpop.f32.mrb[23].mxu1 }
 0x116   : > { %v948_v2 = vpop.f32.mrb[20].mxu0 }
 0x117   : > { %v954_v62 = vadd.f32 %v948_v2, %v906_v53  ;;  %v2478_v4 = vpop.f32.mrb[21].mxu0 }
 0x118   : > { %v951_v0 = vpop.f32.mrb[22].mxu0  ;;  %v1115_v3 = vpop.f32.mrb[24].mxu1 }
 0x119   : > { %v1010_v5 = vadd.f32 %v1004_v57, %v954_v62  ;;  %v2479_v63 = vpop.f32.mrb[23].mxu0  ;;  %v2502_v6 = vpop.f32.mrb[25].mxu1 }
 0x11a   : > { %v1118_v11 = vpop.f32.mrb[26].mxu1 }
 0x11b   : > { %v1011_v7 = vadd.f32 %v3082_v27, %v1010_v5  ;;  %v2503_v8 = vpop.f32.mrb[27].mxu1 }
 0x11d   : > { %vm1012_vm4 = vcmp.ge.f32.partialorder %v1011_v7, 0.0  ;;  %v1013_v9 = vmul.f32 0.2, %v1011_v7 }
 0x11e   : > { %v1072_v18 = vpop.f32.mrb[24].mxu0 }
 0x11f   : > { %v1014_v10 = vsel %vm1012_vm4, %v1011_v7, %v1013_v9  ;;  %v1116_v12 = vadd.f32 %v1115_v3, %v1072_v18  ;;  %v2494_v13 = vpop.f32.mrb[25].mxu0 }
 0x120   : > { %v1015_v1 = vpack.c.bf16 %v1014_v10, %v1014_v10  ;;  %v1075_v14 = vpop.f32.mrb[26].mxu0  ;;  %v1214_v15 = vpop.f32.mrb[28].mxu1 }
 0x121   : > { %v2495_v16 = vpop.f32.mrb[27].mxu0  ;;  %v2518_v17 = vpop.f32.mrb[29].mxu1 }
 0x122   : > { %2237 = vst [vmem:[%s3089_s26 + $0x8] sm:$0xf] %v1015_v1  ;;  %v1217_v19 = vpop.f32.mrb[30].mxu1 }
 0x123   : > { %v2519_v20 = vpop.f32.mrb[31].mxu1 }
 0x126   : > { %v1158_v21 = vpop.f32.mrb[28].mxu0 }
 0x127   : > { %v1164_v22 = vadd.f32 %v1158_v21, %v1116_v12  ;;  %v2510_v23 = vpop.f32.mrb[29].mxu0 }
 0x128   : > { %v1161_v24 = vpop.f32.mrb[30].mxu0  ;;  %v1325_v25 = vpop.f32.mrb[32].mxu1 }
 0x129   : > { %v1220_v26 = vadd.f32 %v1214_v15, %v1164_v22  ;;  %v2511_v28 = vpop.f32.mrb[31].mxu0  ;;  %v2534_v29 = vpop.f32.mrb[33].mxu1 }
 0x12a   : > { %v1328_v30 = vpop.f32.mrb[34].mxu1 }
 0x12b   : > { %v1221_v31 = vadd.f32 %v3082_v27, %v1220_v26  ;;  %v2535_v32 = vpop.f32.mrb[35].mxu1 }
 0x12d   : > { %vm1222_vm5 = vcmp.ge.f32.partialorder %v1221_v31, 0.0  ;;  %v1223_v33 = vmul.f32 0.2, %v1221_v31 }
 0x12e   : > { %v1282_v34 = vpop.f32.mrb[32].mxu0 }
 0x12f   : > { %v1224_v35 = vsel %vm1222_vm5, %v1221_v31, %v1223_v33  ;;  %v1326_v36 = vadd.f32 %v1325_v25, %v1282_v34  ;;  %v2526_v37 = vpop.f32.mrb[33].mxu0 }
 0x130   : > { %v1225_v38 = vpack.c.bf16 %v1224_v35, %v1224_v35  ;;  %v1285_v39 = vpop.f32.mrb[34].mxu0  ;;  %v1424_v40 = vpop.f32.mrb[36].mxu1 }
 0x131   : > { %v2527_v41 = vpop.f32.mrb[35].mxu0  ;;  %v2550_v42 = vpop.f32.mrb[37].mxu1 }
 0x132   : > { %2248 = vst [vmem:[%s3089_s26 + $0xc] sm:$0xf] %v1225_v38  ;;  %v1427_v43 = vpop.f32.mrb[38].mxu1 }
 0x133   : > { %v2551_v44 = vpop.f32.mrb[39].mxu1 }
 0x136   : > { %v1368_v45 = vpop.f32.mrb[36].mxu0 }
 0x137   : > { %v1374_v46 = vadd.f32 %v1368_v45, %v1326_v36  ;;  %v2542_v47 = vpop.f32.mrb[37].mxu0 }
 0x138   : > { %v1371_v48 = vpop.f32.mrb[38].mxu0  ;;  %v1535_v49 = vpop.f32.mrb[40].mxu1 }
 0x139   : > { %v1430_v50 = vadd.f32 %v1424_v40, %v1374_v46  ;;  %v2543_v51 = vpop.f32.mrb[39].mxu0  ;;  %v2566_v52 = vpop.f32.mrb[41].mxu1 }
 0x13a   : > { %v1538_v53 = vpop.f32.mrb[42].mxu1 }
 0x13b   : > { %v1431_v54 = vadd.f32 %v3082_v27, %v1430_v50  ;;  %v2567_v55 = vpop.f32.mrb[43].mxu1 }
 0x13d   : > { %vm1432_vm6 = vcmp.ge.f32.partialorder %v1431_v54, 0.0  ;;  %v1433_v56 = vmul.f32 0.2, %v1431_v54 }
 0x13e   : > { %v1492_v57 = vpop.f32.mrb[40].mxu0 }
 0x13f   : > { %v1434_v58 = vsel %vm1432_vm6, %v1431_v54, %v1433_v56  ;;  %v1536_v59 = vadd.f32 %v1535_v49, %v1492_v57  ;;  %v2558_v60 = vpop.f32.mrb[41].mxu0 }
 0x140   : > { %v1435_v61 = vpack.c.bf16 %v1434_v58, %v1434_v58  ;;  %v1495_v2 = vpop.f32.mrb[42].mxu0  ;;  %v1634_v62 = vpop.f32.mrb[44].mxu1 }
 0x141   : > { %v2559_v4 = vpop.f32.mrb[43].mxu0  ;;  %v2582_v0 = vpop.f32.mrb[45].mxu1 }
 0x142   : > { %2259 = vst [vmem:[%s3089_s26 + $0x10] sm:$0xf] %v1435_v61  ;;  %v1637_v3 = vpop.f32.mrb[46].mxu1 }
 0x143   : > { %v2583_v5 = vpop.f32.mrb[47].mxu1 }
 0x146   : > { %v1578_v63 = vpop.f32.mrb[44].mxu0 }
 0x147   : > { %v1584_v6 = vadd.f32 %v1578_v63, %v1536_v59  ;;  %v2574_v11 = vpop.f32.mrb[45].mxu0 }
 0x148   : > { %v1581_v7 = vpop.f32.mrb[46].mxu0  ;;  %v1745_v8 = vpop.f32.mrb[48].mxu1 }
 0x149   : > { %v1640_v9 = vadd.f32 %v1634_v62, %v1584_v6  ;;  %v2575_v18 = vpop.f32.mrb[47].mxu0  ;;  %v2598_v10 = vpop.f32.mrb[49].mxu1 }
 0x14a   : > { %v1748_v12 = vpop.f32.mrb[50].mxu1 }
 0x14b   : > { %v1641_v13 = vadd.f32 %v3082_v27, %v1640_v9  ;;  %v2599_v1 = vpop.f32.mrb[51].mxu1 }
 0x14d   : > { %vm1642_vm7 = vcmp.ge.f32.partialorder %v1641_v13, 0.0  ;;  %v1643_v14 = vmul.f32 0.2, %v1641_v13 }
 0x14e   : > { %v1702_v15 = vpop.f32.mrb[48].mxu0 }
 0x14f   : > { %v1644_v16 = vsel %vm1642_vm7, %v1641_v13, %v1643_v14  ;;  %v1746_v17 = vadd.f32 %v1745_v8, %v1702_v15  ;;  %v2590_v19 = vpop.f32.mrb[49].mxu0 }
 0x150   : > { %v1645_v20 = vpack.c.bf16 %v1644_v16, %v1644_v16  ;;  %v1705_v21 = vpop.f32.mrb[50].mxu0  ;;  %v1844_v22 = vpop.f32.mrb[52].mxu1 }
 0x151   : > { %v2591_v23 = vpop.f32.mrb[51].mxu0  ;;  %v2614_v24 = vpop.f32.mrb[53].mxu1 }
 0x152   : > { %2270 = vst [vmem:[%s3089_s26 + $0x14] sm:$0xf] %v1645_v20  ;;  %v1847_v25 = vpop.f32.mrb[54].mxu1 }
 0x153   : > { %v2615_v26 = vpop.f32.mrb[55].mxu1 }
 0x156   : > { %v1788_v28 = vpop.f32.mrb[52].mxu0 }
 0x157   : > { %v1794_v29 = vadd.f32 %v1788_v28, %v1746_v17  ;;  %v2606_v30 = vpop.f32.mrb[53].mxu0 }
 0x158   : > { %v1791_v31 = vpop.f32.mrb[54].mxu0  ;;  %v1954_v32 = vpop.f32.mrb[56].mxu1 }
 0x159   : > { %v1850_v33 = vadd.f32 %v1844_v22, %v1794_v29  ;;  %v2607_v34 = vpop.f32.mrb[55].mxu0  ;;  %v2630_v35 = vpop.f32.mrb[57].mxu1 }
 0x15a   : > { %v1957_v36 = vpop.f32.mrb[58].mxu1 }
 0x15b   : > { %v1851_v37 = vadd.f32 %v3082_v27, %v1850_v33  ;;  %v2631_v38 = vpop.f32.mrb[59].mxu1 }
 0x15d   : > { %vm1852_vm8 = vcmp.ge.f32.partialorder %v1851_v37, 0.0  ;;  %v1853_v39 = vmul.f32 0.2, %v1851_v37 }
 0x15e   : > { %v1911_v40 = vpop.f32.mrb[56].mxu0 }
 0x15f   : > { %v1854_v41 = vsel %vm1852_vm8, %v1851_v37, %v1853_v39  ;;  %v1955_v42 = vadd.f32 %v1954_v32, %v1911_v40  ;;  %v2622_v43 = vpop.f32.mrb[57].mxu0 }
 0x160   : > { %v1855_v44 = vpack.c.bf16 %v1854_v41, %v1854_v41  ;;  %v1914_v45 = vpop.f32.mrb[58].mxu0  ;;  %v2053_v46 = vpop.f32.mrb[60].mxu1 }
 0x161   : > { %v2623_v47 = vpop.f32.mrb[59].mxu0  ;;  %v2646_v48 = vpop.f32.mrb[61].mxu1 }
 0x162   : > { %2281 = vst [vmem:[%s3089_s26 + $0x18] sm:$0xf] %v1855_v44  ;;  %v2056_v49 = vpop.f32.mrb[62].mxu1 }
 0x163   : > { %v2647_v50 = vpop.f32.mrb[63].mxu1 }
 0x166   : > { %v1997_v51 = vpop.f32.mrb[60].mxu0 }
 0x167   : > { %v2003_v52 = vadd.f32 %v1997_v51, %v1955_v42  ;;  %v2638_v53 = vpop.f32.mrb[61].mxu0 }
 0x168   : > { %v2000_v54 = vpop.f32.mrb[62].mxu0 }
 0x169   : > { %v2059_v55 = vadd.f32 %v2053_v46, %v2003_v52  ;;  %v2639_v56 = vpop.f32.mrb[63].mxu0 }
 0x16b   : > { %v2060_v57 = vadd.f32 %v3082_v27, %v2059_v55 }
 0x16d   : > { %vm2061_vm9 = vcmp.ge.f32.partialorder %v2060_v57, 0.0  ;;  %v2062_v58 = vmul.f32 0.2, %v2060_v57 }
 0x16f   : > { %v2063_v59 = vsel %vm2061_vm9, %v2060_v57, %v2062_v58 }
 0x170   : > { %v2064_v60 = vpack.c.bf16 %v2063_v59, %v2063_v59 }
 0x172   : > { %2290 = vst [vmem:[%s3089_s26 + $0x1c] sm:$0xf] %v2064_v60 }
 0x173 PF: > { %s14_s17 = sadd.s32 1, %s2723_s17   ;;  %s3120_s15 = smov %s2719_s16 }
 0x174   : > { %p11_p5 = scmp.ge.s32.totalorder %s14_s17, 4   ;;  %s3121_s16 = smov %s3123_s18 }
 0x176   :  { %13 = sbr.rel (!%p11_p5) target bundleno = 2 (0x2), region = 86 }

// kernel: fc_discriminator_forward.7
= control target key start
LH: loop header
LB: loop body
LE: loop exit
PB: predicated region body
PF: predicated region fallthrough
CT: control target
= control target key end

     0   :  { %s1825_s15 = smov 0   ;;  %s1827_s16 = smov 0   ;;  %s2149_s0 = inlined_call_operand.vmem [shape: bf16[2,5,5,64], index: 0, kind: input, shape index: {}, may-alias: {0,1}]   ;;  %s2150_s1 = inlined_call_operand.vmem [shape: bf16[2,5,5,64], index: 1, kind: input, shape index: {}, may-alias: {0,1}]   ;;  %s2151_s2 = inlined_call_operand.vmem [shape: bf16[4,64,128], index: 2, kind: input, shape index: {}]   ;;  %s2152_s3 = inlined_call_operand.vmem [shape: f32[1,128], index: 3, kind: input, shape index: {}]   ;;  %s2153_s4 = inlined_call_operand.vmem [shape: bf16[2,4,4,128], index: 4, kind: output, shape index: {}]  }
   0x1   :  { %s1829_s17 = smov 0  }
   0x2 LB: > { %s26_s18 = sadd.s32 1, %s1792_s16  ;;  %p1365_p0 = scmp.ge.s32.totalorder %s1796_s17, 1  ;;  %s1796_s17 = sphi %s1829_s17, %s14_s17   ;;  %s1792_s16 = sphi %s1827_s16, %s2155_s16   ;;  %s1788_s15 = sphi %s1825_s15, %s2154_s15  }
   0x3   : > { %p28_p1 = scmp.ge.s32.totalorder %s26_s18, 2  ;;  %p214_p2 = scmp.lt.s32.totalorder %s1796_s17, 3 }
   0x5   : > { %s2157_s18 = smov (%p28_p1, %s26_s18), 0  ;;  %p215_p3 = pnand %p1365_p0, %p214_p2 }
   0x6   : > { %v1846_v0 = vld [vmem:[%s2151_s2 + $0x20] sm:$0xff] (!%p215_p3)   ;;  %v1798_v1 = vmov (!%p215_p3), 0.0   ;;  %v1859_v3 = vld [vmem:[%s2151_s2 + $0x28] sm:$0xff] (!%p215_p3)   ;;  %vm1799_vm0 = vmmov (!%p215_p3), 0   ;;  %p267_p4 = scmp.lt.s32.totalorder (!%p215_p3), %s1788_s15, 1  ;;  %v1879_v5 = vld [vmem:[%s2151_s2 + $0x30] sm:$0xff] (!%p215_p3)  }
   0x7   : > { %218 = sbr.rel (%p215_p3) target bundleno = 363 (0x16b), region = 36  ;;  %1529 = vmatprep.subr.bf16.mxu0 (!%p215_p3), %v1798_v1  ;;  %1541 = vmatprep.subr.bf16.mxu1 (!%p215_p3), %v1798_v1  ;;  %v1853_v2 = vld [vmem:[%s2151_s2] sm:$0xff] (!%p215_p3)   ;;  %v1868_v4 = vld [vmem:[%s2151_s2 + $0x8] sm:$0xff] (!%p215_p3)   ;;  %v1887_v6 = vld [vmem:[%s2151_s2 + $0x10] sm:$0xff] (!%p215_p3)   ;;  %vm376_vm1 = vcmask (!%p215_p3), 523264  }
   0x8   : > { %1530 = vmatpush3.bf16.msra.mxu0 (!%p215_p3), %v1846_v0  ;;  %1537 = vmatprep.mubr.msk.bf16.mxu0 (!%p215_p3), %vm1799_vm0, %v1798_v1  ;;  %v1902_v8 = vld [vmem:[%s2151_s2 + $0x38] sm:$0xff] (!%p215_p3)   ;;  %v1916_v14 = vld [vmem:[%s2151_s2 + $0x40] sm:$0xff] (!%p215_p3)   ;;  %v1934_v19 = vld [vmem:[%s2151_s2 + $0x48] sm:$0xff] (!%p215_p3)  }
   0x9   : > { %1542 = vmatpush3.bf16.msra.mxu1 (!%p215_p3), %v1853_v2  ;;  %1531 = vmatprep.subr.bf16.mxu0 (!%p215_p3), %v1798_v1  ;;  %v1909_v10 = vld [vmem:[%s2151_s2 + $0x18] sm:$0xff] (!%p215_p3)   ;;  %v1923_v15 = vld [vmem:[%s2151_s2 + $0x60] sm:$0xff] (!%p215_p3)   ;;  %v1939_v20 = vld [vmem:[%s2151_s2 + $0x68] sm:$0xff] (!%p215_p3)  }
   0xa   : > { %1543 = vmatprep.subr.bf16.mxu1 (!%p215_p3), %v1798_v1  ;;  %1549 = vmatprep.mubr.msk.bf16.mxu1 (!%p215_p3), %vm1799_vm0, %v1798_v1  ;;  %v1952_v22 = vld [vmem:[%s2151_s2 + $0x50] sm:$0xff] (!%p215_p3)   ;;  %v1966_v26 = vld [vmem:[%s2151_s2 + $0x58] sm:$0xff] (!%p215_p3)  }
   0xb   : > { %v1957_v23 = vld [vmem:[%s2151_s2 + $0x70] sm:$0xff] (!%p215_p3)   ;;  %v1971_v27 = vld [vmem:[%s2151_s2 + $0x78] sm:$0xff] (!%p215_p3)  }
   0xc   : > { %1532 = vmatpush3.bf16.msra.mxu0 (!%p215_p3), %v1859_v3 }
   0xd   : > { %1544 = vmatpush3.bf16.msra.mxu1 (!%p215_p3), %v1868_v4  ;;  %1533 = vmatprep.subr.bf16.mxu0 (!%p215_p3), %v1798_v1 }
   0xe   : > { %s2159_s15 = smov (!%p267_p4, %s1788_s15), 1  ;;  %1545 = vmatprep.subr.bf16.mxu1 %v1798_v1 }
   0xf   : > { %s1721_s29 = smul.u32 20, %s2159_s15  ;;  %s1448_s13 = sshll.u32 %s2159_s15, 3 }
  0x10   : > { %1534 = vmatpush3.bf16.msra.mxu0 %v1879_v5  ;;  %s2131_s20 = scalar_lea.vmem %s2153_s4, %s1448_s13 }
  0x11   : > { %s1895_s8 = scalar_lea.vmem %s2149_s0, %s1721_s29  ;;  %1546 = vmatpush3.bf16.msra.mxu1 %v1887_v6  ;;  %1535 = vmatprep.subr.bf16.mxu0 %v1798_v1 }
  0x12   : > { %v339_v7 = vld [vmem:[%s1895_s8] sm:$0x7]  ;;  %1547 = vmatprep.subr.bf16.mxu1 %v1798_v1  ;;  %v1394_v17 = vld [vmem:[%s1895_s8 + $0x4] sm:$0x7]  ;;  %v1419_v35 = vld [vmem:[%s1895_s8 + $0x8] sm:$0x7] }
  0x13   : > { %v1395_v9 = vcombine.low %v339_v7, %v339_v7  ;;  %v1411_v18 = vcombine.low %v1394_v17, %v1394_v17  ;;  %v1418_v29 = vld [vmem:[%s1895_s8 + $0x4] sm:$0x7]  ;;  %v1424_v36 = vcombine.low %v1419_v35, %v1419_v35  ;;  %v1427_v41 = vld [vmem:[%s1895_s8 + $0x8] sm:$0x7]  ;;  %v1428_v47 = vld [vmem:[%s1895_s8 + $0xc] sm:$0x7] }
  0x14   : > { %1536 = vmatpush3.bf16.msra.mxu0 %v1902_v8  ;;  %v1420_v30 = vcombine.low %v1418_v29, %v1418_v29  ;;  %v1429_v42 = vcombine.low %v1427_v41, %v1427_v41  ;;  %v1433_v48 = vcombine.low %v1428_v47, %v1428_v47  ;;  %v1436_v53 = vld [vmem:[%s1895_s8 + $0xc] sm:$0x7]  ;;  %s1447_s8 = sadd.s32 16, %s1721_s29 }
  0x15   : > { %v346_v11 = vshrl.u32 %v1395_v9, 16  ;;  %v348_v12 = vshll.u32 %v1395_v9, 16  ;;  %1548 = vmatpush3.bf16.msra.mxu1 %v1909_v10  ;;  %1553 = vmatprep.subr.bf16.mxu0 %v1798_v1  ;;  %v561_v21 = vshll.u32 %v1411_v18, 16  ;;  %v559_v24 = vshrl.u32 %v1411_v18, 16  ;;  %s289_s11 = scalar_lea.vmem %s2150_s1, %s1447_s8 }
  0x16   : > { %1565 = vmatprep.subr.bf16.mxu1 %v1798_v1  ;;  %v654_v31 = vshll.u32 %v1420_v30, 16  ;;  %v652_v32 = vshrl.u32 %v1420_v30, 16  ;;  %v794_v37 = vshll.u32 %v1424_v36, 16  ;;  %v792_v38 = vshrl.u32 %v1424_v36, 16  ;;  %v1054_v59 = vld [vmem:[%s289_s11] sm:$0x7] }
  0x17   : > { %v350_v13 = vrot.slane %v348_v12, 1  ;;  %v563_v25 = vrot.slane %v561_v21, 1  ;;  %v858_v43 = vshll.u32 %v1429_v42, 16  ;;  %v856_v44 = vshrl.u32 %v1429_v42, 16 }
  0x18   : > { %1550 = vmatmul.mubr.msk.bf16.vlgmr.msra.gmra.mrb[0].mxu1 %vm376_vm1, %v339_v7  ;;  %v656_v33 = vrot.slane %v654_v31, 1  ;;  %v796_v39 = vrot.slane %v794_v37, 1  ;;  %v998_v49 = vshll.u32 %v1433_v48, 16  ;;  %v996_v50 = vshrl.u32 %v1433_v48, 16 }
  0x19   : > { %v351_v16 = vor.u32 %v350_v13, %v346_v11  ;;  %1566 = vmatpush3.bf16.msra.mxu1 %v1923_v15  ;;  %1573 = vmatprep.mubr.msk.bf16.mxu1 %vm1799_vm0, %v1798_v1  ;;  %v564_v28 = vor.u32 %v563_v25, %v559_v24  ;;  %v860_v45 = vrot.slane %v858_v43, 1  ;;  %v1437_v54 = vcombine.low %v1436_v53, %v1436_v53 }
  0x1a   : > { %1567 = vmatprep.subr.bf16.mxu1 %v1798_v1  ;;  %v657_v34 = vor.u32 %v656_v33, %v652_v32  ;;  %v797_v40 = vor.u32 %v796_v39, %v792_v38  ;;  %v1000_v51 = vrot.slane %v998_v49, 1  ;;  %v1441_v60 = vcombine.low %v1054_v59, %v1054_v59 }
  0x1b   : > { %1538 = vmatmul.mubr.msk.bf16.vlgmr.msra.gmra.mrb[0].mxu0 %vm376_vm1, %v351_v16  ;;  %v861_v46 = vor.u32 %v860_v45, %v856_v44  ;;  %v1061_v55 = vshll.u32 %v1437_v54, 16  ;;  %v1059_v56 = vshrl.u32 %v1437_v54, 16 }
  0x1c   : > { %1554 = vmatpush3.bf16.msra.mxu0 %v1916_v14  ;;  %1561 = vmatprep.mubr.msk.bf16.mxu0 %vm1799_vm0, %v1798_v1  ;;  %v1001_v52 = vor.u32 %v1000_v51, %v996_v50  ;;  %v1201_v61 = vshll.u32 %v1441_v60, 16  ;;  %v1199_v62 = vshrl.u32 %v1441_v60, 16 }
  0x1d   : > { %1555 = vmatprep.subr.bf16.mxu0 %v1798_v1  ;;  %1568 = vmatpush3.bf16.msra.mxu1 %v1939_v20  ;;  %v1063_v57 = vrot.slane %v1061_v55, 1 }
  0x1e   : > { %1569 = vmatprep.subr.bf16.mxu1 %v1798_v1  ;;  %v1203_v63 = vrot.slane %v1201_v61, 1 }
  0x1f   : > { %v1064_v58 = vor.u32 %v1063_v57, %v1059_v56 }
  0x20   : > { %1556 = vmatpush3.bf16.msra.mxu0 %v1934_v19 }
  0x21   : > { %1557 = vmatprep.subr.bf16.mxu0 %v1798_v1  ;;  %1570 = vmatpush3.bf16.msra.mxu1 %v1957_v23 }
  0x22   : > { %1571 = vmatprep.subr.bf16.mxu1 %v1798_v1 }
  0x24   : > { %1558 = vmatpush3.bf16.msra.mxu0 %v1952_v22 }
  0x25   : > { %1559 = vmatprep.subr.bf16.mxu0 %v1798_v1  ;;  %1572 = vmatpush3.bf16.msra.mxu1 %v1971_v27 }
  0x26   : > { %1589 = vmatprep.subr.bf16.mxu1 %v1798_v1 }
  0x28   : > { %1560 = vmatpush3.bf16.msra.mxu0 %v1966_v26  ;;  %1574 = vmatmul.mubr.msk.bf16.vlgmr.msra.gmra.mrb[4].mxu1 %vm376_vm1, %v564_v28 }
  0x29   : > { %1577 = vmatprep.subr.bf16.mxu0 %v1798_v1  ;;  %1590 = vmatpush3.bf16.msra.mxu1 %v1853_v2 }
  0x2a   : > { %1591 = vmatprep.subr.bf16.mxu1 %v1798_v1  ;;  %1597 = vmatprep.mubr.msk.bf16.mxu1 %vm1799_vm0, %v1798_v1 }
  0x2b   : > { %1562 = vmatmul.mubr.msk.bf16.vlgmr.msra.gmra.mrb[4].mxu0 %vm376_vm1, %v1394_v17 }
  0x2c   : > { %1578 = vmatpush3.bf16.msra.mxu0 %v1846_v0  ;;  %1585 = vmatprep.mubr.msk.bf16.mxu0 %vm1799_vm0, %v1798_v1 }
  0x2d   : > { %1579 = vmatprep.subr.bf16.mxu0 %v1798_v1  ;;  %1592 = vmatpush3.bf16.msra.mxu1 %v1868_v4 }
  0x2e   : > { %1593 = vmatprep.subr.bf16.mxu1 %v1798_v1 }
  0x30   : > { %1580 = vmatpush3.bf16.msra.mxu0 %v1859_v3 }
  0x31   : > { %1581 = vmatprep.subr.bf16.mxu0 %v1798_v1  ;;  %1594 = vmatpush3.bf16.msra.mxu1 %v1887_v6 }
  0x32   : > { %1595 = vmatprep.subr.bf16.mxu1 %v1798_v1 }
  0x34   : > { %1582 = vmatpush3.bf16.msra.mxu0 %v1879_v5 }
  0x35   : > { %1583 = vmatprep.subr.bf16.mxu0 %v1798_v1  ;;  %1596 = vmatpush3.bf16.msra.mxu1 %v1909_v10 }
  0x36   : > { %1613 = vmatprep.subr.bf16.mxu1 %v1798_v1 }
  0x38   : > { %1584 = vmatpush3.bf16.msra.mxu0 %v1902_v8  ;;  %1598 = vmatmul.mubr.msk.bf16.vlgmr.msra.gmra.mrb[8].mxu1 %vm376_vm1, %v1418_v29 }
  0x39   : > { %1601 = vmatprep.subr.bf16.mxu0 %v1798_v1  ;;  %1614 = vmatpush3.bf16.msra.mxu1 %v1923_v15 }
  0x3a   : > { %1615 = vmatprep.subr.bf16.mxu1 %v1798_v1  ;;  %1621 = vmatprep.mubr.msk.bf16.mxu1 %vm1799_vm0, %v1798_v1 }
  0x3b   : > { %1586 = vmatmul.mubr.msk.bf16.vlgmr.msra.gmra.mrb[8].mxu0 %vm376_vm1, %v657_v34 }
  0x3c   : > { %1602 = vmatpush3.bf16.msra.mxu0 %v1916_v14  ;;  %1609 = vmatprep.mubr.msk.bf16.mxu0 %vm1799_vm0, %v1798_v1 }
  0x3d   : > { %1603 = vmatprep.subr.bf16.mxu0 %v1798_v1  ;;  %1616 = vmatpush3.bf16.msra.mxu1 %v1939_v20 }
  0x3e   : > { %1617 = vmatprep.subr.bf16.mxu1 %v1798_v1 }
  0x40   : > { %1604 = vmatpush3.bf16.msra.mxu0 %v1934_v19 }
  0x41   : > { %1605 = vmatprep.subr.bf16.mxu0 %v1798_v1  ;;  %1618 = vmatpush3.bf16.msra.mxu1 %v1957_v23 }
  0x42   : > { %1619 = vmatprep.subr.bf16.mxu1 %v1798_v1 }
  0x44   : > { %1606 = vmatpush3.bf16.msra.mxu0 %v1952_v22 }
  0x45   : > { %1607 = vmatprep.subr.bf16.mxu0 %v1798_v1  ;;  %1620 = vmatpush3.bf16.msra.mxu1 %v1971_v27 }
  0x46   : > { %1637 = vmatprep.subr.bf16.mxu1 %v1798_v1 }
  0x48   : > { %1608 = vmatpush3.bf16.msra.mxu0 %v1966_v26  ;;  %1622 = vmatmul.mubr.msk.bf16.vlgmr.msra.gmra.mrb[12].mxu1 %vm376_vm1, %v797_v40 }
  0x49   : > { %1625 = vmatprep.subr.bf16.mxu0 %v1798_v1  ;;  %1638 = vmatpush3.bf16.msra.mxu1 %v1853_v2 }
  0x4a   : > { %1639 = vmatprep.subr.bf16.mxu1 %v1798_v1  ;;  %1645 = vmatprep.mubr.msk.bf16.mxu1 %vm1799_vm0, %v1798_v1 }
  0x4b   : > { %1610 = vmatmul.mubr.msk.bf16.vlgmr.msra.gmra.mrb[12].mxu0 %vm376_vm1, %v1419_v35 }
  0x4c   : > { %1626 = vmatpush3.bf16.msra.mxu0 %v1846_v0  ;;  %1633 = vmatprep.mubr.msk.bf16.mxu0 %vm1799_vm0, %v1798_v1 }
  0x4d   : > { %1627 = vmatprep.subr.bf16.mxu0 %v1798_v1  ;;  %1640 = vmatpush3.bf16.msra.mxu1 %v1868_v4 }
  0x4e   : > { %1641 = vmatprep.subr.bf16.mxu1 %v1798_v1 }
  0x50   : > { %1628 = vmatpush3.bf16.msra.mxu0 %v1859_v3 }
  0x51   : > { %1629 = vmatprep.subr.bf16.mxu0 %v1798_v1  ;;  %1642 = vmatpush3.bf16.msra.mxu1 %v1887_v6 }
  0x52   : > { %1643 = vmatprep.subr.bf16.mxu1 %v1798_v1 }
  0x54   : > { %1630 = vmatpush3.bf16.msra.mxu0 %v1879_v5 }
  0x55   : > { %1631 = vmatprep.subr.bf16.mxu0 %v1798_v1  ;;  %1644 = vmatpush3.bf16.msra.mxu1 %v1909_v10 }
  0x56   : > { %1661 = vmatprep.subr.bf16.mxu1 %v1798_v1 }
  0x58   : > { %1632 = vmatpush3.bf16.msra.mxu0 %v1902_v8  ;;  %1646 = vmatmul.mubr.msk.bf16.vlgmr.msra.gmra.mrb[16].mxu1 %vm376_vm1, %v1427_v41 }
  0x59   : > { %1649 = vmatprep.subr.bf16.mxu0 %v1798_v1  ;;  %1662 = vmatpush3.bf16.msra.mxu1 %v1923_v15 }
  0x5a   : > { %1663 = vmatprep.subr.bf16.mxu1 %v1798_v1  ;;  %1669 = vmatprep.mubr.msk.bf16.mxu1 %vm1799_vm0, %v1798_v1 }
  0x5b   : > { %1634 = vmatmul.mubr.msk.bf16.vlgmr.msra.gmra.mrb[16].mxu0 %vm376_vm1, %v861_v46 }
  0x5c   : > { %1650 = vmatpush3.bf16.msra.mxu0 %v1916_v14  ;;  %1657 = vmatprep.mubr.msk.bf16.mxu0 %vm1799_vm0, %v1798_v1 }
  0x5d   : > { %1651 = vmatprep.subr.bf16.mxu0 %v1798_v1  ;;  %1664 = vmatpush3.bf16.msra.mxu1 %v1939_v20 }
  0x5e   : > { %1665 = vmatprep.subr.bf16.mxu1 %v1798_v1 }
  0x60   : > { %1652 = vmatpush3.bf16.msra.mxu0 %v1934_v19 }
  0x61   : > { %1653 = vmatprep.subr.bf16.mxu0 %v1798_v1  ;;  %1666 = vmatpush3.bf16.msra.mxu1 %v1957_v23 }
  0x62   : > { %1667 = vmatprep.subr.bf16.mxu1 %v1798_v1 }
  0x64   : > { %1654 = vmatpush3.bf16.msra.mxu0 %v1952_v22 }
  0x65   : > { %1655 = vmatprep.subr.bf16.mxu0 %v1798_v1  ;;  %1668 = vmatpush3.bf16.msra.mxu1 %v1971_v27 }
  0x66   : > { %1685 = vmatprep.subr.bf16.mxu1 %v1798_v1 }
  0x68   : > { %1656 = vmatpush3.bf16.msra.mxu0 %v1966_v26  ;;  %1670 = vmatmul.mubr.msk.bf16.vlgmr.msra.gmra.mrb[20].mxu1 %vm376_vm1, %v1001_v52 }
  0x69   : > { %1673 = vmatprep.subr.bf16.mxu0 %v1798_v1  ;;  %1686 = vmatpush3.bf16.msra.mxu1 %v1853_v2 }
  0x6a   : > { %1687 = vmatprep.subr.bf16.mxu1 %v1798_v1  ;;  %1693 = vmatprep.mubr.msk.bf16.mxu1 %vm1799_vm0, %v1798_v1 }
  0x6b   : > { %1658 = vmatmul.mubr.msk.bf16.vlgmr.msra.gmra.mrb[20].mxu0 %vm376_vm1, %v1428_v47 }
  0x6c   : > { %1674 = vmatpush3.bf16.msra.mxu0 %v1846_v0  ;;  %1681 = vmatprep.mubr.msk.bf16.mxu0 %vm1799_vm0, %v1798_v1  ;;  %v1204_v0 = vor.u32 %v1203_v63, %v1199_v62 }
  0x6d   : > { %1675 = vmatprep.subr.bf16.mxu0 %v1798_v1  ;;  %1688 = vmatpush3.bf16.msra.mxu1 %v1868_v4 }
  0x6e   : > { %1689 = vmatprep.subr.bf16.mxu1 %v1798_v1 }
  0x70   : > { %1676 = vmatpush3.bf16.msra.mxu0 %v1859_v3 }
  0x71   : > { %1677 = vmatprep.subr.bf16.mxu0 %v1798_v1  ;;  %1690 = vmatpush3.bf16.msra.mxu1 %v1887_v6 }
  0x72   : > { %1691 = vmatprep.subr.bf16.mxu1 %v1798_v1 }
  0x74   : > { %1678 = vmatpush3.bf16.msra.mxu0 %v1879_v5 }
  0x75   : > { %1679 = vmatprep.subr.bf16.mxu0 %v1798_v1  ;;  %1692 = vmatpush3.bf16.msra.mxu1 %v1909_v10 }
  0x76   : > { %1709 = vmatprep.subr.bf16.mxu1 %v1798_v1 }
  0x78   : > { %1680 = vmatpush3.bf16.msra.mxu0 %v1902_v8  ;;  %1694 = vmatmul.mubr.msk.bf16.vlgmr.msra.gmra.mrb[24].mxu1 %vm376_vm1, %v1436_v53 }
  0x79   : > { %1697 = vmatprep.subr.bf16.mxu0 %v1798_v1  ;;  %1710 = vmatpush3.bf16.msra.mxu1 %v1923_v15  ;;  %v2124_v15 = vld [vmem:[%s2152_s3] ss:$0 sm:$0xff] }
  0x7a   : > { %1711 = vmatprep.subr.bf16.mxu1 %v1798_v1  ;;  %1717 = vmatprep.mubr.msk.bf16.mxu1 %vm1799_vm0, %v1798_v1 }
  0x7b   : > { %1682 = vmatmul.mubr.msk.bf16.vlgmr.msra.gmra.mrb[24].mxu0 %vm376_vm1, %v1064_v58 }
  0x7c   : > { %1698 = vmatpush3.bf16.msra.mxu0 %v1916_v14  ;;  %1705 = vmatprep.mubr.msk.bf16.mxu0 %vm1799_vm0, %v1798_v1 }
  0x7d   : > { %1699 = vmatprep.subr.bf16.mxu0 %v1798_v1  ;;  %1712 = vmatpush3.bf16.msra.mxu1 %v1939_v20 }
  0x7e   : > { %1713 = vmatprep.subr.bf16.mxu1 %v1798_v1 }
  0x80   : > { %1700 = vmatpush3.bf16.msra.mxu0 %v1934_v19 }
  0x81   : > { %1701 = vmatprep.subr.bf16.mxu0 %v1798_v1  ;;  %1714 = vmatpush3.bf16.msra.mxu1 %v1957_v23 }
  0x82   : > { %1715 = vmatprep.subr.bf16.mxu1 %v1798_v1 }
  0x84   : > { %1702 = vmatpush3.bf16.msra.mxu0 %v1952_v22 }
  0x85   : > { %1703 = vmatprep.subr.bf16.mxu0 %v1798_v1  ;;  %1716 = vmatpush3.bf16.msra.mxu1 %v1971_v27 }
  0x88   : > { %1704 = vmatpush3.bf16.msra.mxu0 %v1966_v26  ;;  %1718 = vmatmul.mubr.msk.bf16.vlgmr.msra.gmra.mrb[28].mxu1 %vm376_vm1, %v1204_v0 }
  0x8b   : > { %1706 = vmatmul.mubr.msk.bf16.vlgmr.msra.gmra.mrb[28].mxu0 %vm376_vm1, %v1054_v59 }
  0xeb   : > { %v481_v3 = vpop.f32.mrb[0].mxu1 }
  0xec   : > { %v1551_v6 = vpop.f32.mrb[1].mxu1 }
  0xed   : > { %v484_v8 = vpop.f32.mrb[2].mxu1 }
  0xee   : > { %v414_v2 = vpop.f32.mrb[0].mxu0  ;;  %v1552_v10 = vpop.f32.mrb[3].mxu1 }
  0xef   : > { %v482_v4 = vadd.f32 %v481_v3, %v414_v2  ;;  %v1539_v5 = vpop.f32.mrb[1].mxu0 }
  0xf0   : > { %v417_v7 = vpop.f32.mrb[2].mxu0 }
  0xf1   : > { %v1540_v9 = vpop.f32.mrb[3].mxu0 }
  0xfb   : > { %v626_v11 = vpop.f32.mrb[4].mxu1 }
  0xfc   : > { %v1575_v14 = vpop.f32.mrb[5].mxu1 }
  0xfd   : > { %v629_v17 = vpop.f32.mrb[6].mxu1 }
  0xfe   : > { %v548_v1 = vpop.f32.mrb[4].mxu0  ;;  %v1576_v20 = vpop.f32.mrb[7].mxu1 }
  0xff   : > { %v554_v12 = vadd.f32 %v548_v1, %v482_v4  ;;  %v1563_v13 = vpop.f32.mrb[5].mxu0 }
 0x100   : > { %v551_v16 = vpop.f32.mrb[6].mxu0 }
 0x101   : > { %v632_v18 = vadd.f32 %v626_v11, %v554_v12  ;;  %v1564_v19 = vpop.f32.mrb[7].mxu0 }
 0x103   : > { %v639_v21 = vadd.f32 %v2124_v15, %v632_v18 }
 0x105   : > { %vm640_vm2 = vcmp.ge.f32.partialorder %v639_v21, 0.0  ;;  %v641_v22 = vmul.f32 0.2, %v639_v21 }
 0x107   : > { %v642_v23 = vsel %vm640_vm2, %v639_v21, %v641_v22 }
 0x108   : > { %v643_v24 = vpack.c.bf16 %v642_v23, %v642_v23 }
 0x10a   : > { %644 = vst [vmem:[%s2131_s20] sm:$0x3] %v643_v24 }
 0x10b   : > { %v738_v26 = vpop.f32.mrb[8].mxu1 }
 0x10c   : > { %v1599_v29 = vpop.f32.mrb[9].mxu1 }
 0x10d   : > { %v741_v31 = vpop.f32.mrb[10].mxu1 }
 0x10e   : > { %v695_v25 = vpop.f32.mrb[8].mxu0  ;;  %v1600_v33 = vpop.f32.mrb[11].mxu1 }
 0x10f   : > { %v739_v27 = vadd.f32 %v738_v26, %v695_v25  ;;  %v1587_v28 = vpop.f32.mrb[9].mxu0 }
 0x110   : > { %v698_v30 = vpop.f32.mrb[10].mxu0 }
 0x111   : > { %v1588_v32 = vpop.f32.mrb[11].mxu0 }
 0x11b   : > { %v835_v35 = vpop.f32.mrb[12].mxu1 }
 0x11c   : > { %v1623_v38 = vpop.f32.mrb[13].mxu1 }
 0x11d   : > { %v838_v40 = vpop.f32.mrb[14].mxu1 }
 0x11e   : > { %v781_v34 = vpop.f32.mrb[12].mxu0  ;;  %v1624_v43 = vpop.f32.mrb[15].mxu1 }
 0x11f   : > { %v787_v36 = vadd.f32 %v781_v34, %v739_v27  ;;  %v1611_v37 = vpop.f32.mrb[13].mxu0 }
 0x120   : > { %v784_v39 = vpop.f32.mrb[14].mxu0 }
 0x121   : > { %v841_v41 = vadd.f32 %v835_v35, %v787_v36  ;;  %v1612_v42 = vpop.f32.mrb[15].mxu0 }
 0x123   : > { %v842_v44 = vadd.f32 %v2124_v15, %v841_v41 }
 0x125   : > { %vm843_vm3 = vcmp.ge.f32.partialorder %v842_v44, 0.0  ;;  %v844_v45 = vmul.f32 0.2, %v842_v44 }
 0x127   : > { %v845_v46 = vsel %vm843_vm3, %v842_v44, %v844_v45 }
 0x128   : > { %v846_v47 = vpack.c.bf16 %v845_v46, %v845_v46 }
 0x12a   : > { %1426 = vst [vmem:[%s2131_s20 + $0x2] sm:$0x3] %v846_v47 }
 0x12b   : > { %v942_v49 = vpop.f32.mrb[16].mxu1 }
 0x12c   : > { %v1647_v52 = vpop.f32.mrb[17].mxu1 }
 0x12d   : > { %v945_v54 = vpop.f32.mrb[18].mxu1 }
 0x12e   : > { %v899_v48 = vpop.f32.mrb[16].mxu0  ;;  %v1648_v56 = vpop.f32.mrb[19].mxu1 }
 0x12f   : > { %v943_v50 = vadd.f32 %v942_v49, %v899_v48  ;;  %v1635_v51 = vpop.f32.mrb[17].mxu0 }
 0x130   : > { %v902_v53 = vpop.f32.mrb[18].mxu0 }
 0x131   : > { %v1636_v55 = vpop.f32.mrb[19].mxu0 }
 0x13b   : > { %v1039_v58 = vpop.f32.mrb[20].mxu1 }
 0x13c   : > { %v1671_v61 = vpop.f32.mrb[21].mxu1 }
 0x13d   : > { %v1042_v63 = vpop.f32.mrb[22].mxu1 }
 0x13e   : > { %v985_v57 = vpop.f32.mrb[20].mxu0  ;;  %v1672_v3 = vpop.f32.mrb[23].mxu1 }
 0x13f   : > { %v991_v59 = vadd.f32 %v985_v57, %v943_v50  ;;  %v1659_v60 = vpop.f32.mrb[21].mxu0 }
 0x140   : > { %v988_v62 = vpop.f32.mrb[22].mxu0 }
 0x141   : > { %v1045_v0 = vadd.f32 %v1039_v58, %v991_v59  ;;  %v1660_v2 = vpop.f32.mrb[23].mxu0 }
 0x143   : > { %v1046_v4 = vadd.f32 %v2124_v15, %v1045_v0 }
 0x145   : > { %vm1047_vm4 = vcmp.ge.f32.partialorder %v1046_v4, 0.0  ;;  %v1048_v5 = vmul.f32 0.2, %v1046_v4 }
 0x147   : > { %v1049_v6 = vsel %vm1047_vm4, %v1046_v4, %v1048_v5 }
 0x148   : > { %v1050_v7 = vpack.c.bf16 %v1049_v6, %v1049_v6 }
 0x14a   : > { %1435 = vst [vmem:[%s2131_s20 + $0x4] sm:$0x3] %v1050_v7 }
 0x14b   : > { %v1145_v9 = vpop.f32.mrb[24].mxu1 }
 0x14c   : > { %v1695_v11 = vpop.f32.mrb[25].mxu1 }
 0x14d   : > { %v1148_v13 = vpop.f32.mrb[26].mxu1 }
 0x14e   : > { %v1102_v8 = vpop.f32.mrb[24].mxu0  ;;  %v1696_v16 = vpop.f32.mrb[27].mxu1 }
 0x14f   : > { %v1146_v10 = vadd.f32 %v1145_v9, %v1102_v8  ;;  %v1683_v1 = vpop.f32.mrb[25].mxu0 }
 0x150   : > { %v1105_v12 = vpop.f32.mrb[26].mxu0 }
 0x151   : > { %v1684_v14 = vpop.f32.mrb[27].mxu0 }
 0x15b   : > { %v1242_v18 = vpop.f32.mrb[28].mxu1 }
 0x15c   : > { %v1719_v21 = vpop.f32.mrb[29].mxu1 }
 0x15d   : > { %v1245_v23 = vpop.f32.mrb[30].mxu1 }
 0x15e   : > { %v1188_v17 = vpop.f32.mrb[28].mxu0  ;;  %v1720_v26 = vpop.f32.mrb[31].mxu1 }
 0x15f   : > { %v1194_v19 = vadd.f32 %v1188_v17, %v1146_v10  ;;  %v1707_v20 = vpop.f32.mrb[29].mxu0 }
 0x160   : > { %v1191_v22 = vpop.f32.mrb[30].mxu0 }
 0x161   : > { %v1248_v24 = vadd.f32 %v1242_v18, %v1194_v19  ;;  %v1708_v25 = vpop.f32.mrb[31].mxu0 }
 0x163   : > { %v1249_v27 = vadd.f32 %v2124_v15, %v1248_v24 }
 0x165   : > { %vm1250_vm5 = vcmp.ge.f32.partialorder %v1249_v27, 0.0  ;;  %v1251_v28 = vmul.f32 0.2, %v1249_v27 }
 0x167   : > { %v1252_v29 = vsel %vm1250_vm5, %v1249_v27, %v1251_v28 }
 0x168   : > { %v1253_v30 = vpack.c.bf16 %v1252_v29, %v1252_v29 }
 0x16a   : > { %1443 = vst [vmem:[%s2131_s20 + $0x6] sm:$0x3] %v1253_v30 }
 0x16b PF: > { %s14_s17 = sadd.s32 1, %s1796_s17   ;;  %s2154_s15 = smov %s1792_s16 }
 0x16c   : > { %p11_p5 = scmp.ge.s32.totalorder %s14_s17, 4   ;;  %s2155_s16 = smov %s2157_s18 }
 0x16e   :  { %13 = sbr.rel (!%p11_p5) target bundleno = 2 (0x2), region = 78 }

// kernel: fc_discriminator_forward.8
= control target key start
LH: loop header
LB: loop body
LE: loop exit
PB: predicated region body
PF: predicated region fallthrough
CT: control target
= control target key end

     0   :  { %s1514_s15 = smov 0   ;;  %s1516_s16 = smov 0   ;;  %s1886_s0 = inlined_call_operand.vmem [shape: bf16[2,3,3,128], index: 0, kind: input, shape index: {}, may-alias: {0,1}]   ;;  %s1887_s1 = inlined_call_operand.vmem [shape: bf16[2,3,3,128], index: 1, kind: input, shape index: {}, may-alias: {0,1}]   ;;  %s1888_s2 = inlined_call_operand.vmem [shape: bf16[4,128,128], index: 2, kind: input, shape index: {}]   ;;  %s1889_s3 = inlined_call_operand.vmem [shape: f32[1,128], index: 3, kind: input, shape index: {}]   ;;  %s1890_s4 = inlined_call_operand.vmem [shape: bf16[2,2,2,128], index: 4, kind: output, shape index: {}]  }
   0x1   :  { %s1518_s17 = smov 0  }
   0x2 LB: > { %s26_s18 = sadd.s32 1, %s1480_s16  ;;  %p1076_p0 = scmp.ge.s32.totalorder %s1484_s17, 1  ;;  %s1484_s17 = sphi %s1518_s17, %s14_s17   ;;  %s1480_s16 = sphi %s1516_s16, %s1892_s16   ;;  %s1476_s15 = sphi %s1514_s15, %s1891_s15  }
   0x3   : > { %p28_p1 = scmp.ge.s32.totalorder %s26_s18, 2  ;;  %p214_p2 = scmp.lt.s32.totalorder %s1484_s17, 3 }
   0x5   : > { %s1894_s18 = smov (%p28_p1, %s26_s18), 0  ;;  %p215_p3 = pnand %p1076_p0, %p214_p2 }
   0x6   : > { %v1535_v0 = vld [vmem:[%s1888_s2 + $0x40] sm:$0xff] (!%p215_p3)   ;;  %v1486_v1 = vmov (!%p215_p3), 0.0   ;;  %v1548_v3 = vld [vmem:[%s1888_s2 + $0x48] sm:$0xff] (!%p215_p3)   ;;  %vm1487_vm0 = vmmov (!%p215_p3), 0   ;;  %p266_p4 = scmp.lt.s32.totalorder (!%p215_p3), %s1476_s15, 1  ;;  %v1568_v5 = vld [vmem:[%s1888_s2 + $0x50] sm:$0xff] (!%p215_p3)   ;;  %v376_v9 = vlaneseq (!%p215_p3) }
   0x7   : > { %218 = sbr.rel (%p215_p3) target bundleno = 359 (0x167), region = 36  ;;  %1240 = vmatprep.subr.bf16.mxu0 (!%p215_p3), %v1486_v1  ;;  %1260 = vmatprep.subr.bf16.mxu1 (!%p215_p3), %v1486_v1  ;;  %v1542_v2 = vld [vmem:[%s1888_s2] sm:$0xff] (!%p215_p3)   ;;  %v1557_v4 = vld [vmem:[%s1888_s2 + $0x8] sm:$0xff] (!%p215_p3)   ;;  %v1575_v6 = vld [vmem:[%s1888_s2 + $0x10] sm:$0xff] (!%p215_p3)   ;;  %v1488_v12 = vmov (!%p215_p3), 1983009808  }
   0x8   : > { %1241 = vmatpush3.bf16.msra.mxu0 (!%p215_p3), %v1535_v0  ;;  %1256 = vmatprep.mubr.msk.bf16.mxu0 (!%p215_p3), %vm1487_vm0, %v1486_v1  ;;  %v1582_v7 = vld [vmem:[%s1888_s2 + $0x58] sm:$0xff] (!%p215_p3)   ;;  %v1597_v10 = vld [vmem:[%s1888_s2 + $0x60] sm:$0xff] (!%p215_p3)   ;;  %v374_v13 = vunpack.c.l.s4 (!%p215_p3), %v1488_v12  ;;  %v377_v14 = vshrl.u32 (!%p215_p3), %v376_v9, 7  ;;  %v1618_v15 = vld [vmem:[%s1888_s2 + $0x68] sm:$0xff] (!%p215_p3)  }
   0x9   : > { %1261 = vmatpush3.bf16.msra.mxu1 (!%p215_p3), %v1542_v2  ;;  %1242 = vmatprep.subr.bf16.mxu0 (!%p215_p3), %v1486_v1  ;;  %v1589_v8 = vld [vmem:[%s1888_s2 + $0x18] sm:$0xff] (!%p215_p3)   ;;  %v1604_v11 = vld [vmem:[%s1888_s2 + $0x20] sm:$0xff] (!%p215_p3)   ;;  %v1625_v16 = vld [vmem:[%s1888_s2 + $0x28] sm:$0xff] (!%p215_p3)  }
   0xa   : > { %1262 = vmatprep.subr.bf16.mxu1 (!%p215_p3), %v1486_v1  ;;  %1276 = vmatprep.mubr.msk.bf16.mxu1 (!%p215_p3), %vm1487_vm0, %v1486_v1  ;;  %v375_v17 = vunpack.c.0.s8 (!%p215_p3), %v374_v13  ;;  %v1633_v20 = vld [vmem:[%s1888_s2 + $0x70] sm:$0xff] (!%p215_p3)   ;;  %v1646_v23 = vld [vmem:[%s1888_s2 + $0x78] sm:$0xff] (!%p215_p3)   ;;  %v1663_v29 = vld [vmem:[%s1888_s2 + $0x80] sm:$0xff] (!%p215_p3)  }
   0xb   : > { %v1640_v21 = vld [vmem:[%s1888_s2 + $0x30] sm:$0xff] (!%p215_p3)   ;;  %v1656_v26 = vld [vmem:[%s1888_s2 + $0x38] sm:$0xff] (!%p215_p3)   ;;  %v1673_v30 = vld [vmem:[%s1888_s2 + $0xc0] sm:$0xff] (!%p215_p3)  }
   0xc   : > { %1243 = vmatpush3.bf16.msra.mxu0 (!%p215_p3), %v1548_v3  ;;  %v378_v19 = vsub.s32 (!%p215_p3), %v375_v17, %v377_v14  ;;  %v1685_v33 = vld [vmem:[%s1888_s2 + $0x88] sm:$0xff] (!%p215_p3)   ;;  %v1709_v37 = vld [vmem:[%s1888_s2 + $0x90] sm:$0xff] (!%p215_p3)   ;;  %v1723_v39 = vld [vmem:[%s1888_s2 + $0x98] sm:$0xff] (!%p215_p3)  }
   0xd   : > { %1263 = vmatpush3.bf16.msra.mxu1 (!%p215_p3), %v1557_v4  ;;  %1244 = vmatprep.subr.bf16.mxu0 (!%p215_p3), %v1486_v1  ;;  %v1698_v36 = vld [vmem:[%s1888_s2 + $0xc8] sm:$0xff] (!%p215_p3)   ;;  %v1716_v38 = vld [vmem:[%s1888_s2 + $0xd0] sm:$0xff] (!%p215_p3)   ;;  %v1730_v40 = vld [vmem:[%s1888_s2 + $0xd8] sm:$0xff] (!%p215_p3)  }
   0xe   : > { %s1896_s15 = smov (!%p266_p4, %s1476_s15), 1  ;;  %1264 = vmatprep.subr.bf16.mxu1 %v1486_v1  ;;  %v1737_v41 = vld [vmem:[%s1888_s2 + $0xa0] sm:$0xff]   ;;  %v1752_v44 = vld [vmem:[%s1888_s2 + $0xa8] sm:$0xff]   ;;  %v1766_v47 = vld [vmem:[%s1888_s2 + $0xb0] sm:$0xff]  }
   0xf   : > { %s1400_s9 = smul.u32 6, %s1896_s15  ;;  %v1744_v42 = vld [vmem:[%s1888_s2 + $0xe0] sm:$0xff]   ;;  %v1759_v46 = vld [vmem:[%s1888_s2 + $0xe8] sm:$0xff]   ;;  %v1773_v49 = vld [vmem:[%s1888_s2 + $0xf0] sm:$0xff]   ;;  %s1079_s28 = sshll.u32 %s1896_s15, 1 }
  0x10   : > { %1245 = vmatpush3.bf16.msra.mxu0 %v1568_v5  ;;  %v1780_v50 = vld [vmem:[%s1888_s2 + $0xb8] sm:$0xff]   ;;  %v1161_v12 = vld [vmem:[%s1889_s3] ss:$0 sm:$0xff] }
  0x11   : > { %1265 = vmatpush3.bf16.msra.mxu1 %v1575_v6  ;;  %1246 = vmatprep.subr.bf16.mxu0 %v1486_v1  ;;  %s1612_s20 = scalar_lea.vmem %s1886_s0, %s1400_s9  ;;  %s1167_s5 = sadd.s32 4, %s1400_s9  ;;  %v1787_v53 = vld [vmem:[%s1888_s2 + $0xf8] sm:$0xff]  }
  0x12   : > { %1266 = vmatprep.subr.bf16.mxu1 %v1486_v1  ;;  %v369_v18 = vld [vmem:[%s1612_s20] sm:$0x3]  ;;  %s288_s12 = scalar_lea.vmem %s1887_s1, %s1167_s5  ;;  %v1677_v31 = vld [vmem:[%s1612_s20 + $0x2] sm:$0x3]  ;;  %s298_s5 = scalar_lea.vmem %s1890_s4, %s1079_s28 }
  0x13   : > { %v379_v22 = vrot.slane %v369_v18, %v378_v19  ;;  %v1679_v32 = vld [vmem:[%s288_s12] sm:$0x3]  ;;  %v1688_v34 = vrot.slane %v1677_v31, %v378_v19  ;;  %v1128_v43 = vld [vmem:[%s1612_s20 + $0x2] sm:$0x3] }
  0x14   : > { %1247 = vmatpush3.bf16.msra.mxu0 %v1582_v7  ;;  %v1691_v35 = vrot.slane %v1679_v32, %v378_v19  ;;  %v660_v45 = vrot.slane %v1128_v43, %v378_v19 }
  0x15   : > { %1267 = vmatpush3.bf16.msra.mxu1 %v1589_v8  ;;  %1248 = vmatprep.subr.bf16.mxu0 %v1486_v1  ;;  %v381_v24 = vshrl.u32 %v379_v22, 16  ;;  %v383_v25 = vshll.u32 %v379_v22, 16  ;;  %v783_v55 = vshll.u32 %v1688_v34, 16  ;;  %v781_v56 = vshrl.u32 %v1688_v34, 16 }
  0x16   : > { %1268 = vmatprep.subr.bf16.mxu1 %v1486_v1  ;;  %v664_v48 = vshll.u32 %v660_v45, 16  ;;  %v662_v51 = vshrl.u32 %v660_v45, 16  ;;  %v920_v59 = vshll.u32 %v1691_v35, 16  ;;  %v918_v60 = vshrl.u32 %v1691_v35, 16 }
  0x17   : > { %v385_v27 = vrot.slane %v383_v25, 1  ;;  %v785_v57 = vrot.slane %v783_v55, 1 }
  0x18   : > { %1249 = vmatpush3.bf16.msra.mxu0 %v1597_v10  ;;  %v666_v52 = vrot.slane %v664_v48, 1  ;;  %v922_v61 = vrot.slane %v920_v59, 1 }
  0x19   : > { %1269 = vmatpush3.bf16.msra.mxu1 %v1604_v11  ;;  %1250 = vmatprep.subr.bf16.mxu0 %v1486_v1  ;;  %v386_v28 = vor.u32 %v385_v27, %v381_v24  ;;  %v786_v58 = vor.u32 %v785_v57, %v781_v56 }
  0x1a   : > { %1270 = vmatprep.subr.bf16.mxu1 %v1486_v1  ;;  %v667_v54 = vor.u32 %v666_v52, %v662_v51  ;;  %v923_v62 = vor.u32 %v922_v61, %v918_v60 }
  0x1c   : > { %1251 = vmatpush3.bf16.msra.mxu0 %v1618_v15 }
  0x1d   : > { %1271 = vmatpush3.bf16.msra.mxu1 %v1625_v16  ;;  %1252 = vmatprep.subr.bf16.mxu0 %v1486_v1 }
  0x1e   : > { %1272 = vmatprep.subr.bf16.mxu1 %v1486_v1 }
  0x20   : > { %1253 = vmatpush3.bf16.msra.mxu0 %v1633_v20 }
  0x21   : > { %1273 = vmatpush3.bf16.msra.mxu1 %v1640_v21  ;;  %1254 = vmatprep.subr.bf16.mxu0 %v1486_v1 }
  0x22   : > { %1274 = vmatprep.subr.bf16.mxu1 %v1486_v1 }
  0x24   : > { %1255 = vmatpush3.bf16.msra.mxu0 %v1646_v23 }
  0x25   : > { %1275 = vmatpush3.bf16.msra.mxu1 %v1656_v26  ;;  %1280 = vmatprep.subr.bf16.mxu0 %v1486_v1 }
  0x26   : > { %1300 = vmatprep.subr.bf16.mxu1 %v1486_v1 }
  0x27   : > { %1257 = vmatmul.mubr.bf16.vlgmr.msra.gmra.mrb[0].mxu0 %v386_v28 }
  0x28   : > { %1277 = vmatmul.mubr.bf16.vlgmr.msra.gmra.mrb[0].mxu1 %v369_v18  ;;  %1281 = vmatpush3.bf16.msra.mxu0 %v1663_v29 }
  0x29   : > { %1301 = vmatpush3.bf16.msra.mxu1 %v1673_v30  ;;  %1282 = vmatprep.subr.bf16.mxu0 %v1486_v1 }
  0x2a   : > { %1302 = vmatprep.subr.bf16.mxu1 %v1486_v1  ;;  %1296 = vmatprep.mubr.msk.bf16.mxu0 %vm1487_vm0, %v1486_v1 }
  0x2b   : > { %1316 = vmatprep.mubr.msk.bf16.mxu1 %vm1487_vm0, %v1486_v1 }
  0x2c   : > { %1283 = vmatpush3.bf16.msra.mxu0 %v1685_v33 }
  0x2d   : > { %1303 = vmatpush3.bf16.msra.mxu1 %v1698_v36  ;;  %1284 = vmatprep.subr.bf16.mxu0 %v1486_v1 }
  0x2e   : > { %1304 = vmatprep.subr.bf16.mxu1 %v1486_v1 }
  0x30   : > { %1285 = vmatpush3.bf16.msra.mxu0 %v1709_v37 }
  0x31   : > { %1305 = vmatpush3.bf16.msra.mxu1 %v1716_v38  ;;  %1286 = vmatprep.subr.bf16.mxu0 %v1486_v1 }
  0x32   : > { %1306 = vmatprep.subr.bf16.mxu1 %v1486_v1 }
  0x34   : > { %1287 = vmatpush3.bf16.msra.mxu0 %v1723_v39 }
  0x35   : > { %1307 = vmatpush3.bf16.msra.mxu1 %v1730_v40  ;;  %1288 = vmatprep.subr.bf16.mxu0 %v1486_v1 }
  0x36   : > { %1308 = vmatprep.subr.bf16.mxu1 %v1486_v1 }
  0x38   : > { %1289 = vmatpush3.bf16.msra.mxu0 %v1737_v41 }
  0x39   : > { %1309 = vmatpush3.bf16.msra.mxu1 %v1744_v42  ;;  %1290 = vmatprep.subr.bf16.mxu0 %v1486_v1 }
  0x3a   : > { %1310 = vmatprep.subr.bf16.mxu1 %v1486_v1 }
  0x3c   : > { %1291 = vmatpush3.bf16.msra.mxu0 %v1752_v44 }
  0x3d   : > { %1311 = vmatpush3.bf16.msra.mxu1 %v1759_v46  ;;  %1292 = vmatprep.subr.bf16.mxu0 %v1486_v1 }
  0x3e   : > { %1312 = vmatprep.subr.bf16.mxu1 %v1486_v1 }
  0x40   : > { %1293 = vmatpush3.bf16.msra.mxu0 %v1766_v47 }
  0x41   : > { %1313 = vmatpush3.bf16.msra.mxu1 %v1773_v49  ;;  %1294 = vmatprep.subr.bf16.mxu0 %v1486_v1 }
  0x42   : > { %1314 = vmatprep.subr.bf16.mxu1 %v1486_v1 }
  0x44   : > { %1295 = vmatpush3.bf16.msra.mxu0 %v1780_v50 }
  0x45   : > { %1315 = vmatpush3.bf16.msra.mxu1 %v1787_v53  ;;  %1320 = vmatprep.subr.bf16.mxu0 %v1486_v1 }
  0x46   : > { %1340 = vmatprep.subr.bf16.mxu1 %v1486_v1 }
  0x47   : > { %1297 = vmatmul.mubr.bf16.vlgmr.msra.gmra.mrb[4].mxu0 %v1128_v43 }
  0x48   : > { %1317 = vmatmul.mubr.bf16.vlgmr.msra.gmra.mrb[4].mxu1 %v667_v54  ;;  %1321 = vmatpush3.bf16.msra.mxu0 %v1535_v0 }
  0x49   : > { %1341 = vmatpush3.bf16.msra.mxu1 %v1542_v2  ;;  %1322 = vmatprep.subr.bf16.mxu0 %v1486_v1 }
  0x4a   : > { %1342 = vmatprep.subr.bf16.mxu1 %v1486_v1  ;;  %1336 = vmatprep.mubr.msk.bf16.mxu0 %vm1487_vm0, %v1486_v1 }
  0x4b   : > { %1356 = vmatprep.mubr.msk.bf16.mxu1 %vm1487_vm0, %v1486_v1 }
  0x4c   : > { %1323 = vmatpush3.bf16.msra.mxu0 %v1548_v3 }
  0x4d   : > { %1343 = vmatpush3.bf16.msra.mxu1 %v1557_v4  ;;  %1324 = vmatprep.subr.bf16.mxu0 %v1486_v1 }
  0x4e   : > { %1344 = vmatprep.subr.bf16.mxu1 %v1486_v1 }
  0x50   : > { %1325 = vmatpush3.bf16.msra.mxu0 %v1568_v5 }
  0x51   : > { %1345 = vmatpush3.bf16.msra.mxu1 %v1575_v6  ;;  %1326 = vmatprep.subr.bf16.mxu0 %v1486_v1 }
  0x52   : > { %1346 = vmatprep.subr.bf16.mxu1 %v1486_v1 }
  0x54   : > { %1327 = vmatpush3.bf16.msra.mxu0 %v1582_v7 }
  0x55   : > { %1347 = vmatpush3.bf16.msra.mxu1 %v1589_v8  ;;  %1328 = vmatprep.subr.bf16.mxu0 %v1486_v1 }
  0x56   : > { %1348 = vmatprep.subr.bf16.mxu1 %v1486_v1 }
  0x58   : > { %1329 = vmatpush3.bf16.msra.mxu0 %v1597_v10 }
  0x59   : > { %1349 = vmatpush3.bf16.msra.mxu1 %v1604_v11  ;;  %1330 = vmatprep.subr.bf16.mxu0 %v1486_v1 }
  0x5a   : > { %1350 = vmatprep.subr.bf16.mxu1 %v1486_v1 }
  0x5c   : > { %1331 = vmatpush3.bf16.msra.mxu0 %v1618_v15 }
  0x5d   : > { %1351 = vmatpush3.bf16.msra.mxu1 %v1625_v16  ;;  %1332 = vmatprep.subr.bf16.mxu0 %v1486_v1 }
  0x5e   : > { %1352 = vmatprep.subr.bf16.mxu1 %v1486_v1 }
  0x60   : > { %1333 = vmatpush3.bf16.msra.mxu0 %v1633_v20 }
  0x61   : > { %1353 = vmatpush3.bf16.msra.mxu1 %v1640_v21  ;;  %1334 = vmatprep.subr.bf16.mxu0 %v1486_v1 }
  0x62   : > { %1354 = vmatprep.subr.bf16.mxu1 %v1486_v1 }
  0x64   : > { %1335 = vmatpush3.bf16.msra.mxu0 %v1646_v23 }
  0x65   : > { %1355 = vmatpush3.bf16.msra.mxu1 %v1656_v26  ;;  %1360 = vmatprep.subr.bf16.mxu0 %v1486_v1 }
  0x66   : > { %1380 = vmatprep.subr.bf16.mxu1 %v1486_v1 }
  0x67   : > { %1337 = vmatmul.mubr.bf16.vlgmr.msra.gmra.mrb[8].mxu0 %v786_v58 }
  0x68   : > { %1357 = vmatmul.mubr.bf16.vlgmr.msra.gmra.mrb[8].mxu1 %v1677_v31  ;;  %1361 = vmatpush3.bf16.msra.mxu0 %v1663_v29 }
  0x69   : > { %1381 = vmatpush3.bf16.msra.mxu1 %v1673_v30  ;;  %1362 = vmatprep.subr.bf16.mxu0 %v1486_v1 }
  0x6a   : > { %1382 = vmatprep.subr.bf16.mxu1 %v1486_v1  ;;  %1376 = vmatprep.mubr.msk.bf16.mxu0 %vm1487_vm0, %v1486_v1 }
  0x6b   : > { %1396 = vmatprep.mubr.msk.bf16.mxu1 %vm1487_vm0, %v1486_v1 }
  0x6c   : > { %1363 = vmatpush3.bf16.msra.mxu0 %v1685_v33 }
  0x6d   : > { %1383 = vmatpush3.bf16.msra.mxu1 %v1698_v36  ;;  %1364 = vmatprep.subr.bf16.mxu0 %v1486_v1 }
  0x6e   : > { %1384 = vmatprep.subr.bf16.mxu1 %v1486_v1 }
  0x70   : > { %1365 = vmatpush3.bf16.msra.mxu0 %v1709_v37 }
  0x71   : > { %1385 = vmatpush3.bf16.msra.mxu1 %v1716_v38  ;;  %1366 = vmatprep.subr.bf16.mxu0 %v1486_v1 }
  0x72   : > { %1386 = vmatprep.subr.bf16.mxu1 %v1486_v1 }
  0x74   : > { %1367 = vmatpush3.bf16.msra.mxu0 %v1723_v39 }
  0x75   : > { %1387 = vmatpush3.bf16.msra.mxu1 %v1730_v40  ;;  %1368 = vmatprep.subr.bf16.mxu0 %v1486_v1 }
  0x76   : > { %1388 = vmatprep.subr.bf16.mxu1 %v1486_v1 }
  0x78   : > { %1369 = vmatpush3.bf16.msra.mxu0 %v1737_v41 }
  0x79   : > { %1389 = vmatpush3.bf16.msra.mxu1 %v1744_v42  ;;  %1370 = vmatprep.subr.bf16.mxu0 %v1486_v1 }
  0x7a   : > { %1390 = vmatprep.subr.bf16.mxu1 %v1486_v1 }
  0x7c   : > { %1371 = vmatpush3.bf16.msra.mxu0 %v1752_v44 }
  0x7d   : > { %1391 = vmatpush3.bf16.msra.mxu1 %v1759_v46  ;;  %1372 = vmatprep.subr.bf16.mxu0 %v1486_v1 }
  0x7e   : > { %1392 = vmatprep.subr.bf16.mxu1 %v1486_v1 }
  0x80   : > { %1373 = vmatpush3.bf16.msra.mxu0 %v1766_v47 }
  0x81   : > { %1393 = vmatpush3.bf16.msra.mxu1 %v1773_v49  ;;  %1374 = vmatprep.subr.bf16.mxu0 %v1486_v1 }
  0x82   : > { %1394 = vmatprep.subr.bf16.mxu1 %v1486_v1 }
  0x84   : > { %1375 = vmatpush3.bf16.msra.mxu0 %v1780_v50 }
  0x85   : > { %1395 = vmatpush3.bf16.msra.mxu1 %v1787_v53 }
  0x87   : > { %1377 = vmatmul.mubr.bf16.vlgmr.msra.gmra.mrb[12].mxu0 %v1679_v32 }
  0x88   : > { %1397 = vmatmul.mubr.bf16.vlgmr.msra.gmra.mrb[12].mxu1 %v923_v62 }
  0xfa   : > { %v470_v63 = vpop.f32.mrb[0].mxu0 }
  0xfb   : > { %v558_v0 = vpop.f32.mrb[0].mxu1  ;;  %v1258_v2 = vpop.f32.mrb[1].mxu0 }
  0xfc   : > { %v559_v3 = vadd.f32 %v558_v0, %v470_v63  ;;  %v1278_v4 = vpop.f32.mrb[1].mxu1  ;;  %v473_v5 = vpop.f32.mrb[2].mxu0 }
  0xfd   : > { %v561_v6 = vpop.f32.mrb[2].mxu1  ;;  %v1259_v7 = vpop.f32.mrb[3].mxu0 }
  0xfe   : > { %v1279_v8 = vpop.f32.mrb[3].mxu1 }
 0x11a   : > { %v646_v9 = vpop.f32.mrb[4].mxu0 }
 0x11b   : > { %v652_v1 = vadd.f32 %v646_v9, %v559_v3  ;;  %v751_v10 = vpop.f32.mrb[4].mxu1  ;;  %v1298_v11 = vpop.f32.mrb[5].mxu0 }
 0x11c   : > { %v1318_v13 = vpop.f32.mrb[5].mxu1  ;;  %v649_v14 = vpop.f32.mrb[6].mxu0 }
 0x11d   : > { %v757_v15 = vadd.f32 %v751_v10, %v652_v1  ;;  %v754_v16 = vpop.f32.mrb[6].mxu1  ;;  %v1299_v17 = vpop.f32.mrb[7].mxu0 }
 0x11e   : > { %v1319_v18 = vpop.f32.mrb[7].mxu1 }
 0x11f   : > { %v764_v19 = vadd.f32 %v1161_v12, %v757_v15 }
 0x121   : > { %vm765_vm1 = vcmp.ge.f32.partialorder %v764_v19, 0.0  ;;  %v766_v20 = vmul.f32 0.2, %v764_v19 }
 0x123   : > { %v767_v21 = vsel %vm765_vm1, %v764_v19, %v766_v20 }
 0x124   : > { %v768_v22 = vpack.c.bf16 %v767_v21, %v767_v21 }
 0x126   : > { %769 = vst [vmem:[%s298_s5] sm:$0x1] %v768_v22 }
 0x13a   : > { %v822_v23 = vpop.f32.mrb[8].mxu0 }
 0x13b   : > { %v862_v24 = vpop.f32.mrb[8].mxu1  ;;  %v1338_v25 = vpop.f32.mrb[9].mxu0 }
 0x13c   : > { %v863_v26 = vadd.f32 %v862_v24, %v822_v23  ;;  %v1358_v27 = vpop.f32.mrb[9].mxu1  ;;  %v825_v28 = vpop.f32.mrb[10].mxu0 }
 0x13d   : > { %v865_v29 = vpop.f32.mrb[10].mxu1  ;;  %v1339_v30 = vpop.f32.mrb[11].mxu0 }
 0x13e   : > { %v1359_v31 = vpop.f32.mrb[11].mxu1 }
 0x15a   : > { %v902_v32 = vpop.f32.mrb[12].mxu0 }
 0x15b   : > { %v908_v33 = vadd.f32 %v902_v32, %v863_v26  ;;  %v959_v34 = vpop.f32.mrb[12].mxu1  ;;  %v1378_v35 = vpop.f32.mrb[13].mxu0 }
 0x15c   : > { %v1398_v36 = vpop.f32.mrb[13].mxu1  ;;  %v905_v37 = vpop.f32.mrb[14].mxu0 }
 0x15d   : > { %v965_v38 = vadd.f32 %v959_v34, %v908_v33  ;;  %v962_v39 = vpop.f32.mrb[14].mxu1  ;;  %v1379_v40 = vpop.f32.mrb[15].mxu0 }
 0x15e   : > { %v1399_v41 = vpop.f32.mrb[15].mxu1 }
 0x15f   : > { %v966_v42 = vadd.f32 %v1161_v12, %v965_v38 }
 0x161   : > { %vm967_vm2 = vcmp.ge.f32.partialorder %v966_v42, 0.0  ;;  %v968_v43 = vmul.f32 0.2, %v966_v42 }
 0x163   : > { %v969_v44 = vsel %vm967_vm2, %v966_v42, %v968_v43 }
 0x164   : > { %v970_v45 = vpack.c.bf16 %v969_v44, %v969_v44 }
 0x166   : > { %1163 = vst [vmem:[%s298_s5 + $0x1] sm:$0x1] %v970_v45 }
 0x167 PF: > { %s14_s17 = sadd.s32 1, %s1484_s17   ;;  %s1891_s15 = smov %s1480_s16 }
 0x168   : > { %p11_p5 = scmp.ge.s32.totalorder %s14_s17, 4   ;;  %s1892_s16 = smov %s1894_s18 }
 0x16a   :  { %13 = sbr.rel (!%p11_p5) target bundleno = 2 (0x2), region = 74 }

// kernel: fc_discriminator_forward.9
= control target key start
LH: loop header
LB: loop body
LE: loop exit
PB: predicated region body
PF: predicated region fallthrough
CT: control target
= control target key end

     0   :  { %s1499_s15 = smov 0   ;;  %s1501_s16 = smov 0   ;;  %s1748_s0 = inlined_call_operand.vmem [shape: bf16[2,2,2,256], index: 0, kind: input, shape index: {}, may-alias: {0,1}]   ;;  %s1749_s1 = inlined_call_operand.vmem [shape: bf16[2,2,2,256], index: 1, kind: input, shape index: {}, may-alias: {0,1}]   ;;  %s1750_s2 = inlined_call_operand.vmem [shape: bf16[4,256,128], index: 2, kind: input, shape index: {}]   ;;  %s1751_s3 = inlined_call_operand.vmem [shape: f32[1,128], index: 3, kind: input, shape index: {}]   ;;  %s1752_s4 = inlined_call_operand.vmem [shape: f32[2,1,1,128], index: 4, kind: output, shape index: {}]  }
   0x1   :  { %s1503_s17 = smov 0  }
   0x2 LB: > { %s26_s18 = sadd.s32 1, %s1467_s16  ;;  %p1105_p0 = scmp.ge.s32.totalorder %s1471_s17, 1  ;;  %s1471_s17 = sphi %s1503_s17, %s14_s17   ;;  %s1467_s16 = sphi %s1501_s16, %s1754_s16   ;;  %s1463_s15 = sphi %s1499_s15, %s1753_s15  }
   0x3   : > { %p28_p1 = scmp.ge.s32.totalorder %s26_s18, 2  ;;  %p200_p2 = scmp.lt.s32.totalorder %s1471_s17, 3 }
   0x5   : > { %s1756_s18 = smov (%p28_p1, %s26_s18), 0  ;;  %p201_p3 = pnand %p1105_p0, %p200_p2 }
   0x6   : > { %v1385_v0 = vld [vmem:[%s1750_s2 + $0xc0] sm:$0xff] (!%p201_p3)   ;;  %v1389_v4 = vld [vmem:[%s1750_s2 + $0xc8] sm:$0xff] (!%p201_p3)   ;;  %v1393_v8 = vld [vmem:[%s1750_s2 + $0xd0] sm:$0xff] (!%p201_p3)   ;;  %p239_p4 = scmp.lt.s32.totalorder (!%p201_p3), %s1463_s15, 1  ;;  %v410_v30 = vlaneseq (!%p201_p3)  ;;  %v1473_v34 = vmov (!%p201_p3), 1966171168  }
   0x7   : > { %204 = sbr.rel (%p201_p3) target bundleno = 294 (0x126), region = 36  ;;  %v1386_v1 = vld [vmem:[%s1750_s2 + $0x40] sm:$0xff] (!%p201_p3)   ;;  %1272 = vmatprep.subr.bf16.mxu0 (!%p201_p3), %v1385_v0  ;;  %v1390_v5 = vld [vmem:[%s1750_s2 + $0x48] sm:$0xff] (!%p201_p3)   ;;  %v1394_v9 = vld [vmem:[%s1750_s2 + $0x50] sm:$0xff] (!%p201_p3)   ;;  %v408_v35 = vunpack.c.l.s4 (!%p201_p3), %v1473_v34 }
   0x8   : > { %v1387_v2 = vld [vmem:[%s1750_s2 + $0x80] sm:$0xff] (!%p201_p3)   ;;  %1294 = vmatprep.subr.bf16.mxu1 (!%p201_p3), %v1386_v1  ;;  %v1391_v6 = vld [vmem:[%s1750_s2 + $0x88] sm:$0xff] (!%p201_p3)   ;;  %v1395_v10 = vld [vmem:[%s1750_s2 + $0x90] sm:$0xff] (!%p201_p3)   ;;  %v411_v36 = vshrl.u32 (!%p201_p3), %v410_v30, 7 }
   0x9   : > { %v1388_v3 = vld [vmem:[%s1750_s2] sm:$0xff] (!%p201_p3)   ;;  %1273 = vmatpush3.bf16.msra.mxu0 (!%p201_p3), %v1387_v2  ;;  %v1392_v7 = vld [vmem:[%s1750_s2 + $0x8] sm:$0xff] (!%p201_p3)   ;;  %v1396_v11 = vld [vmem:[%s1750_s2 + $0x10] sm:$0xff] (!%p201_p3)   ;;  %v409_v40 = vunpack.c.0.s8 (!%p201_p3), %v408_v35 }
   0xa   : > { %1295 = vmatpush3.bf16.msra.mxu1 (!%p201_p3), %v1388_v3  ;;  %1274 = vmatprep.subr.bf16.mxu0 (!%p201_p3), %v1389_v4  ;;  %v1397_v12 = vld [vmem:[%s1750_s2 + $0xd8] sm:$0xff] (!%p201_p3)   ;;  %v1401_v16 = vld [vmem:[%s1750_s2 + $0xe0] sm:$0xff] (!%p201_p3)   ;;  %v1405_v20 = vld [vmem:[%s1750_s2 + $0xe8] sm:$0xff] (!%p201_p3)  }
   0xb   : > { %1296 = vmatprep.subr.bf16.mxu1 (!%p201_p3), %v1390_v5  ;;  %v1398_v13 = vld [vmem:[%s1750_s2 + $0x58] sm:$0xff] (!%p201_p3)   ;;  %v1402_v17 = vld [vmem:[%s1750_s2 + $0x60] sm:$0xff] (!%p201_p3)   ;;  %v1406_v21 = vld [vmem:[%s1750_s2 + $0x68] sm:$0xff] (!%p201_p3)   ;;  %v1631_v41 = vsub.s32 (!%p201_p3), %v409_v40, %v411_v36 }
   0xc   : > { %v1399_v14 = vld [vmem:[%s1750_s2 + $0x98] sm:$0xff] (!%p201_p3)   ;;  %v1403_v18 = vld [vmem:[%s1750_s2 + $0xa0] sm:$0xff] (!%p201_p3)   ;;  %v1407_v22 = vld [vmem:[%s1750_s2 + $0xa8] sm:$0xff] (!%p201_p3)  }
   0xd   : > { %1275 = vmatpush3.bf16.msra.mxu0 (!%p201_p3), %v1391_v6  ;;  %v1400_v15 = vld [vmem:[%s1750_s2 + $0x18] sm:$0xff] (!%p201_p3)   ;;  %v1404_v19 = vld [vmem:[%s1750_s2 + $0x20] sm:$0xff] (!%p201_p3)   ;;  %v1408_v23 = vld [vmem:[%s1750_s2 + $0x28] sm:$0xff] (!%p201_p3)  }
   0xe   : > { %1297 = vmatpush3.bf16.msra.mxu1 %v1392_v7  ;;  %1276 = vmatprep.subr.bf16.mxu0 %v1393_v8  ;;  %s1758_s15 = smov (!%p239_p4, %s1463_s15), 1  ;;  %v1409_v24 = vld [vmem:[%s1750_s2 + $0xf0] sm:$0xff]   ;;  %v1413_v28 = vld [vmem:[%s1750_s2 + $0xf8] sm:$0xff]   ;;  %v1417_v37 = vld [vmem:[%s1750_s2 + $0x140] sm:$0xff]  }
   0xf   : > { %1298 = vmatprep.subr.bf16.mxu1 %v1394_v9  ;;  %v1410_v25 = vld [vmem:[%s1750_s2 + $0x70] sm:$0xff]   ;;  %s1106_s29 = sshll.u32 %s1758_s15, 2  ;;  %v1414_v29 = vld [vmem:[%s1750_s2 + $0x78] sm:$0xff]   ;;  %v1418_v38 = vld [vmem:[%s1750_s2 + $0x1c0] sm:$0xff]   ;;  %s262_s30 = scalar_lea.vmem %s1752_s4, %s1758_s15 }
  0x10   : > { %v1411_v26 = vld [vmem:[%s1750_s2 + $0xb0] sm:$0xff]   ;;  %s246_s12 = scalar_lea.vmem %s1748_s0, %s1106_s29  ;;  %v1415_v31 = vld [vmem:[%s1750_s2 + $0xb8] sm:$0xff]   ;;  %v1419_v44 = vld [vmem:[%s1750_s2 + $0x100] sm:$0xff]   ;;  %s254_s23 = sadd.s32 2, %s1106_s29 }
  0x11   : > { %1277 = vmatpush3.bf16.msra.mxu0 %v1395_v10  ;;  %v1412_v27 = vld [vmem:[%s1750_s2 + $0x30] sm:$0xff]   ;;  %v1416_v32 = vld [vmem:[%s1750_s2 + $0x38] sm:$0xff]   ;;  %v1204_v33 = vld.sshfl [vmem:[%s246_s12] sm:$0x11 pattern:$0x75316420]  ;;  %s255_s8 = scalar_lea.vmem %s1749_s1, %s254_s23 }
  0x12   : > { %1299 = vmatpush3.bf16.msra.mxu1 %v1396_v11  ;;  %1278 = vmatprep.subr.bf16.mxu0 %v1397_v12  ;;  %v406_v39 = vcombine.high %v1204_v33, %v1204_v33  ;;  %v413_v43 = vrot.slane %v1204_v33, %v1631_v41  ;;  %v1420_v45 = vld [vmem:[%s1750_s2 + $0x180] sm:$0xff]   ;;  %v1422_v46 = vld [vmem:[%s1750_s2 + $0x1c8] sm:$0xff]   ;;  %v1426_v51 = vld [vmem:[%s1750_s2 + $0x1d0] sm:$0xff]  }
  0x13   : > { %1300 = vmatprep.subr.bf16.mxu1 %v1398_v13  ;;  %v1421_v49 = vld [vmem:[%s1750_s2 + $0x148] sm:$0xff]   ;;  %v1425_v53 = vld [vmem:[%s1750_s2 + $0x150] sm:$0xff]   ;;  %v1430_v55 = vld [vmem:[%s1750_s2 + $0x1d8] sm:$0xff]  }
  0x14   : > { %v420_v42 = vrot.slane %v406_v39, %v1631_v41  ;;  %v422_v48 = vshrl.u32 %v413_v43, 16  ;;  %v1424_v50 = vld [vmem:[%s1750_s2 + $0x188] sm:$0xff]   ;;  %v1428_v54 = vld [vmem:[%s1750_s2 + $0x190] sm:$0xff]   ;;  %v1429_v57 = vld [vmem:[%s1750_s2 + $0x158] sm:$0xff]  }
  0x15   : > { %1279 = vmatpush3.bf16.msra.mxu0 %v1399_v14  ;;  %v1423_v52 = vld [vmem:[%s1750_s2 + $0x108] sm:$0xff]   ;;  %v1427_v56 = vld [vmem:[%s1750_s2 + $0x110] sm:$0xff]   ;;  %v1432_v58 = vld [vmem:[%s1750_s2 + $0x198] sm:$0xff]  }
  0x16   : > { %1301 = vmatpush3.bf16.msra.mxu1 %v1400_v15  ;;  %1280 = vmatprep.subr.bf16.mxu0 %v1401_v16  ;;  %v425_v47 = vshrl.u32 %v420_v42, 16  ;;  %v1434_v59 = vld [vmem:[%s1750_s2 + $0x1e0] sm:$0xff]   ;;  %v1431_v60 = vld [vmem:[%s1750_s2 + $0x118] sm:$0xff]   ;;  %v1438_v63 = vld [vmem:[%s1750_s2 + $0x1e8] sm:$0xff]  }
  0x17   : > { %1302 = vmatprep.subr.bf16.mxu1 %v1402_v17  ;;  %695 = vmatprep.mubr.bf16.mxu1 %v420_v42  ;;  %v1433_v61 = vld [vmem:[%s1750_s2 + $0x160] sm:$0xff]   ;;  %v1437_v1 = vld [vmem:[%s1750_s2 + $0x168] sm:$0xff]   ;;  %v1442_v3 = vld [vmem:[%s1750_s2 + $0x1f0] sm:$0xff]  }
  0x18   : > { %557 = vmatprep.mubr.bf16.mxu0 %v425_v47  ;;  %v1436_v62 = vld [vmem:[%s1750_s2 + $0x1a0] sm:$0xff]   ;;  %v1440_v2 = vld [vmem:[%s1750_s2 + $0x1a8] sm:$0xff]   ;;  %v1441_v5 = vld [vmem:[%s1750_s2 + $0x170] sm:$0xff]  }
  0x19   : > { %1281 = vmatpush3.bf16.msra.mxu0 %v1403_v18  ;;  %v1435_v0 = vld [vmem:[%s1750_s2 + $0x120] sm:$0xff]   ;;  %v1439_v4 = vld [vmem:[%s1750_s2 + $0x128] sm:$0xff]   ;;  %v1444_v6 = vld [vmem:[%s1750_s2 + $0x1b0] sm:$0xff]  }
  0x1a   : > { %1303 = vmatpush3.bf16.msra.mxu1 %v1404_v19  ;;  %1282 = vmatprep.subr.bf16.mxu0 %v1405_v20  ;;  %v1446_v7 = vld [vmem:[%s1750_s2 + $0x1f8] sm:$0xff]   ;;  %v1443_v8 = vld [vmem:[%s1750_s2 + $0x130] sm:$0xff]   ;;  %v1237_v9 = vld.sshfl [vmem:[%s255_s8] sm:$0x11 pattern:$0x75316420] }
  0x1b   : > { %1304 = vmatprep.subr.bf16.mxu1 %v1406_v21  ;;  %v1445_v10 = vld [vmem:[%s1750_s2 + $0x178] sm:$0xff]   ;;  %v711_v11 = vcombine.high %v1237_v9, %v1237_v9  ;;  %v718_v12 = vrot.slane %v1237_v9, %v1631_v41  ;;  %v395_v40 = vld [vmem:[%s1751_s3] sm:$0x1] }
  0x1c   : > { %v1448_v13 = vld [vmem:[%s1750_s2 + $0x1b8] sm:$0xff]  }
  0x1d   : > { %1283 = vmatpush3.bf16.msra.mxu0 %v1407_v22  ;;  %v725_v14 = vrot.slane %v711_v11, %v1631_v41  ;;  %v1447_v15 = vld [vmem:[%s1750_s2 + $0x138] sm:$0xff]   ;;  %v866_v17 = vshrl.u32 %v718_v12, 16 }
  0x1e   : > { %1305 = vmatpush3.bf16.msra.mxu1 %v1408_v23  ;;  %1284 = vmatprep.subr.bf16.mxu0 %v1409_v24 }
  0x1f   : > { %1306 = vmatprep.subr.bf16.mxu1 %v1410_v25  ;;  %v869_v16 = vshrl.u32 %v725_v14, 16 }
  0x21   : > { %1285 = vmatpush3.bf16.msra.mxu0 %v1411_v26 }
  0x22   : > { %1307 = vmatpush3.bf16.msra.mxu1 %v1412_v27  ;;  %1286 = vmatprep.subr.bf16.mxu0 %v1413_v28 }
  0x23   : > { %1308 = vmatprep.subr.bf16.mxu1 %v1414_v29 }
  0x25   : > { %1287 = vmatpush3.bf16.msra.mxu0 %v1415_v31 }
  0x26   : > { %1309 = vmatpush3.bf16.msra.mxu1 %v1416_v32  ;;  %1316 = vmatprep.subr.bf16.mxu0 %v1417_v37 }
  0x27   : > { %1338 = vmatprep.subr.bf16.mxu1 %v1418_v38 }
  0x28   : > { %558 = vmatmul.mubr.bf16.vlgmr.msra.gmra.mrb[0].mxu0 %v422_v48 }
  0x29   : > { %696 = vmatmul.mubr.bf16.vlgmr.msra.gmra.mrb[0].mxu1 %v413_v43  ;;  %1317 = vmatpush3.bf16.msra.mxu0 %v1419_v44 }
  0x2a   : > { %1339 = vmatpush3.bf16.msra.mxu1 %v1420_v45  ;;  %1318 = vmatprep.subr.bf16.mxu0 %v1421_v49 }
  0x2b   : > { %1340 = vmatprep.subr.bf16.mxu1 %v1422_v46  ;;  %856 = vmatprep.mubr.bf16.mxu0 %v725_v14 }
  0x2c   : > { %1001 = vmatprep.mubr.bf16.mxu1 %v869_v16 }
  0x2d   : > { %1319 = vmatpush3.bf16.msra.mxu0 %v1423_v52 }
  0x2e   : > { %1341 = vmatpush3.bf16.msra.mxu1 %v1424_v50  ;;  %1320 = vmatprep.subr.bf16.mxu0 %v1425_v53 }
  0x2f   : > { %1342 = vmatprep.subr.bf16.mxu1 %v1426_v51 }
  0x31   : > { %1321 = vmatpush3.bf16.msra.mxu0 %v1427_v56 }
  0x32   : > { %1343 = vmatpush3.bf16.msra.mxu1 %v1428_v54  ;;  %1322 = vmatprep.subr.bf16.mxu0 %v1429_v57 }
  0x33   : > { %1344 = vmatprep.subr.bf16.mxu1 %v1430_v55 }
  0x35   : > { %1323 = vmatpush3.bf16.msra.mxu0 %v1431_v60 }
  0x36   : > { %1345 = vmatpush3.bf16.msra.mxu1 %v1432_v58  ;;  %1324 = vmatprep.subr.bf16.mxu0 %v1433_v61 }
  0x37   : > { %1346 = vmatprep.subr.bf16.mxu1 %v1434_v59 }
  0x39   : > { %1325 = vmatpush3.bf16.msra.mxu0 %v1435_v0 }
  0x3a   : > { %1347 = vmatpush3.bf16.msra.mxu1 %v1436_v62  ;;  %1326 = vmatprep.subr.bf16.mxu0 %v1437_v1 }
  0x3b   : > { %1348 = vmatprep.subr.bf16.mxu1 %v1438_v63 }
  0x3d   : > { %1327 = vmatpush3.bf16.msra.mxu0 %v1439_v4 }
  0x3e   : > { %1349 = vmatpush3.bf16.msra.mxu1 %v1440_v2  ;;  %1328 = vmatprep.subr.bf16.mxu0 %v1441_v5 }
  0x3f   : > { %1350 = vmatprep.subr.bf16.mxu1 %v1442_v3 }
  0x41   : > { %1329 = vmatpush3.bf16.msra.mxu0 %v1443_v8 }
  0x42   : > { %1351 = vmatpush3.bf16.msra.mxu1 %v1444_v6  ;;  %1330 = vmatprep.subr.bf16.mxu0 %v1445_v10 }
  0x43   : > { %1352 = vmatprep.subr.bf16.mxu1 %v1446_v7 }
  0x45   : > { %1331 = vmatpush3.bf16.msra.mxu0 %v1447_v15 }
  0x46   : > { %1353 = vmatpush3.bf16.msra.mxu1 %v1448_v13 }
  0x48   : > { %857 = vmatmul.mubr.bf16.vlgmr.msra.gmra.mrb[4].mxu0 %v718_v12 }
  0x49   : > { %1002 = vmatmul.mubr.bf16.vlgmr.msra.gmra.mrb[4].mxu1 %v866_v17 }
  0xfb   : > { %v1288_v20 = vpop.f32.mrb[0].mxu0 }
  0xfc   : > { %v1310_v18 = vpop.f32.mrb[0].mxu1  ;;  %v1289_v23 = vpop.f32.mrb[1].mxu0 }
  0xfd   : > { %v1311_v19 = vpop.f32.mrb[1].mxu1  ;;  %v1290_v25 = vadd.f32 %v1289_v23, %v1288_v20  ;;  %v1291_v26 = vpop.f32.mrb[2].mxu0 }
  0xfe   : > { %v1312_v21 = vadd.f32 %v1311_v19, %v1310_v18  ;;  %v1313_v22 = vpop.f32.mrb[2].mxu1  ;;  %v1292_v27 = vpop.f32.mrb[3].mxu0 }
  0xff   : > { %v1314_v24 = vpop.f32.mrb[3].mxu1 }
 0x100   : > { %v698_v28 = vadd.f32 %v1312_v21, %v1290_v25 }
 0x11b   : > { %v1332_v31 = vpop.f32.mrb[4].mxu0 }
 0x11c   : > { %v1354_v29 = vpop.f32.mrb[4].mxu1  ;;  %v1333_v34 = vpop.f32.mrb[5].mxu0 }
 0x11d   : > { %v1355_v30 = vpop.f32.mrb[5].mxu1  ;;  %v1334_v36 = vadd.f32 %v1333_v34, %v1332_v31  ;;  %v1335_v37 = vpop.f32.mrb[6].mxu0 }
 0x11e   : > { %v1356_v32 = vadd.f32 %v1355_v30, %v1354_v29  ;;  %v1357_v33 = vpop.f32.mrb[6].mxu1  ;;  %v1336_v38 = vpop.f32.mrb[7].mxu0 }
 0x11f   : > { %v1358_v35 = vpop.f32.mrb[7].mxu1  ;;  %v864_v39 = vadd.f32 %v1334_v36, %v698_v28 }
 0x121   : > { %v1009_v41 = vadd.f32 %v1356_v32, %v864_v39 }
 0x123   : > { %v1010_v42 = vadd.f32 %v1009_v41, %v395_v40 }
 0x125   : > { %1011 = vst [vmem:[%s262_s30] sm:$0x1] %v1010_v42 }
 0x126 PF: > { %s14_s17 = sadd.s32 1, %s1471_s17   ;;  %s1753_s15 = smov %s1467_s16 }
 0x127   : > { %p11_p5 = scmp.ge.s32.totalorder %s14_s17, 4   ;;  %s1754_s16 = smov %s1756_s18 }
 0x129   :  { %13 = sbr.rel (!%p11_p5) target bundleno = 2 (0x2), region = 72 }

</bundles_post_ra>
